<compile_context>
chip_gen: v7x
topology: tpu7x:2x2x1
jax: 0.10.0
libtpu: 0.0.40
codegen_flags: <defaults>
</compile_context>

<pallas_src>
import functools

import jax
import jax.numpy as jnp
from jax.experimental import pallas as pl
from jax.experimental.pallas import tpu as pltpu

_MIB = 1024 * 1024


# ----------------------------------------------------------------------------
# helpers
# ----------------------------------------------------------------------------
def _round_up(x, m):
    return ((x + m - 1) // m) * m


def _largest_divisor_leq(n, cap, multiple=1):
    """Largest divisor of n that is a multiple of `multiple` and <= cap."""
    cap = min(cap, n)
    d = (cap // multiple) * multiple
    while d >= multiple:
        if d > 0 and n % d == 0:
            return d
        d -= multiple
    return multiple


def _vmem_budget_bytes():
    """Per-generation VMEM budget (leave headroom for compiler scratch)."""
    try:
        info = pltpu.get_tpu_info()
        cap = int(getattr(info, "vmem_capacity_bytes", 64 * _MIB))
    except Exception:
        cap = 64 * _MIB          # conservative: v7x per-core VMEM
    return int(min(max(cap * 3 // 4, 32 * _MIB), 112 * _MIB))


def _pick_t_chunk(T, Bp, Dp, Hp, budget):
    """Timesteps per grid step, sized from the double-buffered VMEM footprint."""
    fixed = (2 * (Dp * 4 * Hp * 2)            # W_ih^T bf16 (buffered)
             + 2 * (Hp * 4 * Hp * 2)          # W_hh^T bf16 (buffered)
             + 2 * (4 * Hp * 4)               # bias f32
             + 2 * (Bp * Hp * 2)              # h0 bf16
             + 2 * (Bp * Hp * 4)              # c0 f32
             + 4 * (Bp * Hp * 4)              # h_n / c_n output buffers
             + Bp * Hp * 2 + Bp * Hp * 4)     # h / c carries
    per_t = (2 * (Bp * Dp * 2)                # x chunk in (double-buffered)
             + 2 * (Bp * Hp * 2)              # h_seq chunk out (double-buffered)
             + 2 * (Bp * 4 * Hp * 4))         # gx scratch + matmul temporary
    # TODO(synk): for very large Hp on v7x, `fixed` alone can exceed the 64 MiB
    # budget; gate-wise W_hh tiling not implemented.
    avail = max(budget - fixed, per_t)
    cap = max(1, min(32, avail // per_t))     # cap keeps the unrolled loop sane
    return _largest_divisor_leq(T, int(cap), 1)


# ----------------------------------------------------------------------------
# Head matmul (x @ W + b), operand-size-aware grid order
# ----------------------------------------------------------------------------
def _matmul_bias_kernel(x_ref, w_ref, b_ref, o_ref):
    # bf16 x bf16 -> f32 accumulate on the MXU, bias added in f32.
    o_ref[...] = (jnp.dot(x_ref[...], w_ref[...],
                          preferred_element_type=jnp.float32)
                  + b_ref[...])


def matmul_bias(x, w, b, *, row_tile=512, col_tile=512, vmem_limit_bytes=None):
    """x: (N, K) bf16, w: (K, F) bf16, b: (F,) f32 -> (N, F) f32.

    K and F must be multiples of 128 (caller pads the feature dims); the row
    dimension is padded here to a full row tile (no collapsing to 8-row tiles)."""
    N, K = x.shape
    Kw, F = w.shape
    assert K == Kw, "contraction-dim mismatch"
    assert K % 128 == 0 and F % 128 == 0, "K and F must be lane-padded (x128)"

    tn = min(row_tile, _round_up(N, 8))
    Np = _round_up(N, tn)
    if Np != N:
        x = jnp.pad(x, ((0, Np - N), (0, 0)))
    tf = _largest_divisor_leq(F, col_tile, 128)
    n_row, n_col = Np // tn, F // tf

    x_bytes = Np * K * x.dtype.itemsize
    w_bytes = K * F * w.dtype.itemsize

    if w_bytes >= x_bytes:
        # Weight is the big operand: row axis innermost so each W column tile
        # stays resident across all row tiles -> W streamed from HBM once.
        grid = (n_col, n_row)
        x_spec = pl.BlockSpec((tn, K), lambda j, i: (i, 0))
        w_spec = pl.BlockSpec((K, tf), lambda j, i: (0, j))
        b_spec = pl.BlockSpec((1, tf), lambda j, i: (0, j))
        o_spec = pl.BlockSpec((tn, tf), lambda j, i: (i, j))
    else:
        # Activations are the big operand: column axis innermost so each X row
        # tile stays resident -> X streamed from HBM once.
        grid = (n_row, n_col)
        x_spec = pl.BlockSpec((tn, K), lambda i, j: (i, 0))
        w_spec = pl.BlockSpec((K, tf), lambda i, j: (0, j))
        b_spec = pl.BlockSpec((1, tf), lambda i, j: (0, j))
        o_spec = pl.BlockSpec((tn, tf), lambda i, j: (i, j))

    out = pl.pallas_call(
        _matmul_bias_kernel,
        out_shape=jax.ShapeDtypeStruct((Np, F), jnp.float32),
        grid_spec=pltpu.PrefetchScalarGridSpec(
            num_scalar_prefetch=0,
            grid=grid,
            in_specs=[x_spec, w_spec, b_spec],
            out_specs=o_spec,
        ),
        compiler_params=pltpu.CompilerParams(
            dimension_semantics=("parallel", "parallel"),
            vmem_limit_bytes=vmem_limit_bytes),
    )(x, w, b.reshape(1, F))
    return out[:N] if Np != N else out


# ----------------------------------------------------------------------------
# Fused LSTM layer kernel: chunked input projection + serial recurrence
# ----------------------------------------------------------------------------
def _lstm_layer_kernel(x_ref, w_ih_ref, w_hh_ref, b_ref, h0_ref, c0_ref,
                       hseq_ref, hlast_ref, clast_ref,
                       gx_sc, h_sc, c_sc):
    g_idx = pl.program_id(0)
    Bp, Hp = h_sc.shape
    t_chunk = x_ref.shape[0] // Bp

    @pl.when(g_idx == 0)
    def _():
        h_sc[...] = h0_ref[...]            # bf16 carry
        c_sc[...] = c0_ref[...]            # f32 carry

    # Hoisted input projection for the whole chunk: ONE large-M MXU matmul
    # (M = t_chunk*Bp) with the bias folded in, straight into VMEM scratch.
    # The serial loop below only has the (Bp,Hp)@(Hp,4Hp) recurrent matmul
    # plus elementwise gate math on its critical path.
    gx_sc[...] = (jnp.dot(x_ref[...], w_ih_ref[...],
                          preferred_element_type=jnp.float32) + b_ref[...])

    for t in range(t_chunk):               # static, fully unrolled; static slices
        row = t * Bp
        gates = gx_sc[pl.ds(row, Bp), :] + jnp.dot(
            h_sc[...], w_hh_ref[...], preferred_element_type=jnp.float32)
        # 128-lane aligned gate slices (Hp is a multiple of 128); f32 math.
        i_g = jax.nn.sigmoid(gates[:, 0 * Hp:1 * Hp])
        f_g = jax.nn.sigmoid(gates[:, 1 * Hp:2 * Hp])
        g_g = jnp.tanh(gates[:, 2 * Hp:3 * Hp])
        o_g = jax.nn.sigmoid(gates[:, 3 * Hp:4 * Hp])

        c_new = f_g * c_sc[...] + i_g * g_g
        h_new = (o_g * jnp.tanh(c_new)).astype(jnp.bfloat16)

        c_sc[...] = c_new
        h_sc[...] = h_new
        hseq_ref[pl.ds(row, Bp), :] = h_new

    # h_n / c_n are resident output blocks: write only on the final grid step.
    @pl.when(g_idx == pl.num_programs(0) - 1)
    def _():
        hlast_ref[...] = h_sc[...].astype(jnp.float32)
        clast_ref[...] = c_sc[...]


def lstm_layer(x2d, w_ih_t, w_hh_t, bias, h0, c0, *, t_chunk, vmem_limit_bytes):
    """x2d: (T*Bp, Din) bf16 time-major input.  Returns
    (h_seq (T*Bp, Hp) bf16, h_n (Bp, Hp) f32, c_n (Bp, Hp) f32)."""
    TB, Din = x2d.shape
    Hp = w_hh_t.shape[0]
    Bp = h0.shape[0]
    T = TB // Bp
    assert TB == T * Bp and T % t_chunk == 0
    assert Bp % 8 == 0 and Hp % 128 == 0 and Din % 128 == 0
    n_chunks = T // t_chunk
    rows = t_chunk * Bp

    return pl.pallas_call(
        _lstm_layer_kernel,
        out_shape=(
            jax.ShapeDtypeStruct((TB, Hp), jnp.bfloat16),      # h sequence
            jax.ShapeDtypeStruct((Bp, Hp), jnp.float32),       # h_n
            jax.ShapeDtypeStruct((Bp, Hp), jnp.float32),       # c_n
        ),
        grid_spec=pltpu.PrefetchScalarGridSpec(
            num_scalar_prefetch=0,
            grid=(n_chunks,),
            in_specs=[
                pl.BlockSpec((rows, Din), lambda g: (g, 0)),     # x chunk (bf16)
                pl.BlockSpec((Din, 4 * Hp), lambda g: (0, 0)),   # W_ih^T (fetched once)
                pl.BlockSpec((Hp, 4 * Hp), lambda g: (0, 0)),    # W_hh^T (fetched once)
                pl.BlockSpec((1, 4 * Hp), lambda g: (0, 0)),     # bias (f32)
                pl.BlockSpec((Bp, Hp), lambda g: (0, 0)),        # h0 (bf16)
                pl.BlockSpec((Bp, Hp), lambda g: (0, 0)),        # c0 (f32)
            ],
            out_specs=[
                pl.BlockSpec((rows, Hp), lambda g: (g, 0)),      # h sequence chunk
                pl.BlockSpec((Bp, Hp), lambda g: (0, 0)),        # h_n (resident)
                pl.BlockSpec((Bp, Hp), lambda g: (0, 0)),        # c_n (resident)
            ],
            scratch_shapes=[
                pltpu.VMEM((rows, 4 * Hp), jnp.float32),         # gate-preact chunk
                pltpu.VMEM((Bp, Hp), jnp.bfloat16),              # h carry (bf16)
                pltpu.VMEM((Bp, Hp), jnp.float32),               # c carry (f32)
            ],
        ),
        compiler_params=pltpu.CompilerParams(
            dimension_semantics=("arbitrary",),                  # time is sequential
            vmem_limit_bytes=vmem_limit_bytes),
    )(x2d, w_ih_t, w_hh_t, bias.reshape(1, 4 * Hp), h0, c0)


# ----------------------------------------------------------------------------
# Parameters (PyTorch-style init, stored padded + bf16 for the MXU)
# ----------------------------------------------------------------------------
def init_params(key, input_size, vocab_size, hidden_size, num_layers):
    H = hidden_size
    Hp = _round_up(H, 128)
    Dp0 = _round_up(input_size, 128)
    Vp = _round_up(vocab_size, 128)
    bound = 1.0 / (hidden_size ** 0.5)

    params = {"lstm": [], "linear": None}
    for layer in range(num_layers):
        d_in = input_size if layer == 0 else H
        d_in_p = Dp0 if layer == 0 else Hp
        key, k1, k2, k3, k4 = jax.random.split(key, 5)
        w_ih = jax.random.uniform(k1, (4 * H, d_in), jnp.float32, -bound, bound)
        w_hh = jax.random.uniform(k2, (4 * H, H), jnp.float32, -bound, bound)
        b_ih = jax.random.uniform(k3, (4 * H,), jnp.float32, -bound, bound)
        b_hh = jax.random.uniform(k4, (4 * H,), jnp.float32, -bound, bound)
        bias = b_ih + b_hh

        # Pad per gate so each gate occupies a full 128-aligned Hp-wide slot.
        w_ih_t = jnp.zeros((d_in_p, 4 * Hp), jnp.float32)
        w_hh_t = jnp.zeros((Hp, 4 * Hp), jnp.float32)
        bias_p = jnp.zeros((4 * Hp,), jnp.float32)
        for g in range(4):
            w_ih_t = w_ih_t.at[:d_in, g * Hp:g * Hp + H].set(w_ih[g * H:(g + 1) * H, :].T)
            w_hh_t = w_hh_t.at[:H, g * Hp:g * Hp + H].set(w_hh[g * H:(g + 1) * H, :].T)
            bias_p = bias_p.at[g * Hp:g * Hp + H].set(bias[g * H:(g + 1) * H])

        params["lstm"].append({
            "w_ih_t": w_ih_t.astype(jnp.bfloat16),   # (d_in_p, 4Hp)
            "w_hh_t": w_hh_t.astype(jnp.bfloat16),   # (Hp, 4Hp)
            "bias": bias_p,                          # (4Hp,) f32
        })

    key, k1, k2 = jax.random.split(key, 3)
    lb = 1.0 / (hidden_size ** 0.5)
    w_lin = jax.random.uniform(k1, (vocab_size, H), jnp.float32, -lb, lb)
    b_lin = jax.random.uniform(k2, (vocab_size,), jnp.float32, -lb, lb)
    w_t = jnp.zeros((Hp, Vp), jnp.float32).at[:H, :vocab_size].set(w_lin.T)
    b_p = jnp.zeros((Vp,), jnp.float32).at[:vocab_size].set(b_lin)
    params["linear"] = {"w_t": w_t.astype(jnp.bfloat16), "b": b_p}
    return params


# ----------------------------------------------------------------------------
# Forward pass (batch_first wrapper, like the PyTorch module)
# ----------------------------------------------------------------------------
@functools.partial(jax.jit, static_argnames=("hidden_size", "num_layers", "vocab_size"))
def rnn_model_forward(xs, params, hidden_size, num_layers, vocab_size, hid=None):
    """xs: (B, T, input_size).  Returns (logits (B,T,vocab), (h_n, c_n)) with
    h_n, c_n of shape (num_layers, B, hidden_size)."""
    B, T, D = xs.shape
    H = hidden_size
    Hp = params["lstm"][0]["w_hh_t"].shape[0]
    Dp = params["lstm"][0]["w_ih_t"].shape[0]
    Vp = params["linear"]["w_t"].shape[1]
    Bp = _round_up(B, 8)

    budget = _vmem_budget_bytes()
    t_chunk = _pick_t_chunk(T, Bp, max(Dp, Hp), Hp, budget)

    if hid is None:
        h0 = jnp.zeros((num_layers, Bp, Hp), jnp.bfloat16)
        c0 = jnp.zeros((num_layers, Bp, Hp), jnp.float32)
    else:
        h0_u, c0_u = hid
        h0 = jnp.zeros((num_layers, Bp, Hp), jnp.bfloat16
                       ).at[:, :B, :H].set(h0_u.astype(jnp.bfloat16))
        c0 = jnp.zeros((num_layers, Bp, Hp), jnp.float32).at[:, :B, :H].set(c0_u)

    # time-major + sublane/lane padding, bf16 MXU operand, flattened to 2D
    x_tm = jnp.transpose(xs, (1, 0, 2)).astype(jnp.float32)          # (T, B, D)
    x_tm = jnp.pad(x_tm, ((0, 0), (0, Bp - B), (0, Dp - D)))
    layer_in = x_tm.astype(jnp.bfloat16).reshape(T * Bp, Dp)

    h_ns, c_ns = [], []
    for layer in range(num_layers):
        p = params["lstm"][layer]
        h_seq, h_n, c_n = lstm_layer(layer_in, p["w_ih_t"], p["w_hh_t"], p["bias"],
                                     h0[layer], c0[layer],
                                     t_chunk=t_chunk, vmem_limit_bytes=budget)
        h_ns.append(h_n)
        c_ns.append(c_n)
        layer_in = h_seq                                              # (T*Bp, Hp) bf16
        # (eval mode: no inter-layer dropout)

    # Transpose the Hp-wide hidden states to batch-major BEFORE the head so the
    # head writes (B*T, Vp) directly — no Vp-wide logits transpose afterwards.
    h_bt = jnp.transpose(layer_in.reshape(T, Bp, Hp)[:, :B, :], (1, 0, 2))
    h_bt = h_bt.reshape(B * T, Hp)
    logits2d = matmul_bias(h_bt, params["linear"]["w_t"], params["linear"]["b"],
                           vmem_limit_bytes=budget)
    logits = logits2d.reshape(B, T, Vp)[:, :, :vocab_size]

    h_all = jnp.stack(h_ns)[:, :B, :H]
    c_all = jnp.stack(c_ns)[:, :B, :H]
    return logits, (h_all, c_all)


# ----------------------------------------------------------------------------
# Pure-JAX reference mirroring the same bf16-operand / f32-accumulate numerics
# ----------------------------------------------------------------------------
def reference_forward(xs, params, hidden_size, num_layers, vocab_size):
    B, T, D = xs.shape
    H = hidden_size
    Hp = params["lstm"][0]["w_hh_t"].shape[0]
    Dp = params["lstm"][0]["w_ih_t"].shape[0]
    Vp = params["linear"]["w_t"].shape[1]
    Bp = _round_up(B, 8)

    x_tm = jnp.transpose(xs, (1, 0, 2)).astype(jnp.float32)
    x_tm = jnp.pad(x_tm, ((0, 0), (0, Bp - B), (0, Dp - D)))
    layer_in = x_tm.astype(jnp.bfloat16)                              # (T, Bp, Dp)

    h_ns, c_ns = [], []
    for layer in range(num_layers):
        p = params["lstm"][layer]
        d_in = layer_in.shape[-1]
        gx = (jnp.dot(layer_in.reshape(T * Bp, d_in), p["w_ih_t"],
                      preferred_element_type=jnp.float32) + p["bias"])
        gx = gx.reshape(T, Bp, 4 * Hp)

        def step(carry, g_t, whh=p["w_hh_t"]):
            h, c = carry                                   # h: bf16, c: f32
            gates = g_t + jnp.dot(h, whh, preferred_element_type=jnp.float32)
            i, f, g, o = jnp.split(gates, 4, axis=-1)
            c = jax.nn.sigmoid(f) * c + jax.nn.sigmoid(i) * jnp.tanh(g)
            h = (jax.nn.sigmoid(o) * jnp.tanh(c)).astype(jnp.bfloat16)
            return (h, c), h

        (h_n, c_n), h_seq = jax.lax.scan(
            step,
            (jnp.zeros((Bp, Hp), jnp.bfloat16), jnp.zeros((Bp, Hp), jnp.float32)),
            gx)
        h_ns.append(h_n.astype(jnp.float32))
        c_ns.append(c_n)
        layer_in = h_seq                                              # (T, Bp, Hp) bf16

    h_bt = jnp.transpose(layer_in[:, :B, :], (1, 0, 2)).reshape(B * T, Hp)
    logits = (jnp.dot(h_bt, params["linear"]["w_t"],
                      preferred_element_type=jnp.float32) + params["linear"]["b"])
    logits = logits.reshape(B, T, Vp)[:, :, :vocab_size]
    h_all = jnp.stack(h_ns)[:, :B, :H]
    c_all = jnp.stack(c_ns)[:, :B, :H]
    return logits, (h_all, c_all)


# ----------------------------------------------------------------------------
if __name__ == "__main__":
    # Small shapes consistent with the module's forward.
    B, T = 2, 8
    INPUT_SIZE, HIDDEN_SIZE, NUM_LAYERS, VOCAB_SIZE = 16, 32, 2, 10

    key = jax.random.PRNGKey(0)
    key, pkey, xkey = jax.random.split(key, 3)
    params = init_params(pkey, INPUT_SIZE, VOCAB_SIZE, HIDDEN_SIZE, NUM_LAYERS)
    xs = jax.random.normal(xkey, (B, T, INPUT_SIZE), jnp.float32)

    logits, (h_n, c_n) = rnn_model_forward(xs, params, HIDDEN_SIZE, NUM_LAYERS, VOCAB_SIZE)
    jax.block_until_ready((logits, h_n, c_n))

    # Sanity check against a pure-JAX reference with identical bf16 numerics.
    ref_logits, (ref_h, ref_c) = reference_forward(xs, params, HIDDEN_SIZE,
                                                   NUM_LAYERS, VOCAB_SIZE)
    assert logits.shape == (B, T, VOCAB_SIZE)
    assert h_n.shape == (NUM_LAYERS, B, HIDDEN_SIZE)
    assert c_n.shape == (NUM_LAYERS, B, HIDDEN_SIZE)
    assert jnp.allclose(logits, ref_logits, atol=1e-3, rtol=1e-3)
    assert jnp.allclose(h_n, ref_h, atol=1e-3, rtol=1e-3)
    assert jnp.allclose(c_n, ref_c, atol=1e-3, rtol=1e-3)

    print("KERNEL_OK")
</pallas_src>

<mosaic_0001>
module attributes {stable_mosaic.version = 11 : i64} {
  func.func @_lstm_layer_kernel(%arg0: i32, %arg1: memref<64x128xbf16, #tpu.memory_space<vmem>>, %arg2: memref<128x512xbf16, #tpu.memory_space<vmem>>, %arg3: memref<128x512xbf16, #tpu.memory_space<vmem>>, %arg4: memref<1x512xf32, #tpu.memory_space<vmem>>, %arg5: memref<8x128xbf16, #tpu.memory_space<vmem>>, %arg6: memref<8x128xf32, #tpu.memory_space<vmem>>, %arg7: memref<64x128xbf16, #tpu.memory_space<vmem>>, %arg8: memref<8x128xf32, #tpu.memory_space<vmem>>, %arg9: memref<8x128xf32, #tpu.memory_space<vmem>>, %arg10: memref<64x512xf32, #tpu.memory_space<vmem>>, %arg11: memref<8x128xbf16, #tpu.memory_space<vmem>>, %arg12: memref<8x128xf32, #tpu.memory_space<vmem>>) attributes {dimension_semantics = [#tpu.dimension_semantics<arbitrary>], iteration_bounds = array<i64: 1>, scalar_prefetch = 0 : i64, scratch_operands = 3 : i64, tpu.core_type = #tpu.core_type<tc>, window_params = [{transform_indices = @transform_0, window_bounds = array<i64: 64, 128>}, {pipeline_mode = #tpu.pipeline_mode<synchronous>, transform_indices = @transform_1, window_bounds = array<i64: 128, 512>}, {pipeline_mode = #tpu.pipeline_mode<synchronous>, transform_indices = @transform_2, window_bounds = array<i64: 128, 512>}, {pipeline_mode = #tpu.pipeline_mode<synchronous>, transform_indices = @transform_3, window_bounds = array<i64: 1, 512>}, {pipeline_mode = #tpu.pipeline_mode<synchronous>, transform_indices = @transform_4, window_bounds = array<i64: 8, 128>}, {pipeline_mode = #tpu.pipeline_mode<synchronous>, transform_indices = @transform_5, window_bounds = array<i64: 8, 128>}, {transform_indices = @transform_6, window_bounds = array<i64: 64, 128>}, {pipeline_mode = #tpu.pipeline_mode<synchronous>, transform_indices = @transform_7, window_bounds = array<i64: 8, 128>}, {pipeline_mode = #tpu.pipeline_mode<synchronous>, transform_indices = @transform_8, window_bounds = array<i64: 8, 128>}]} {
    %c0_i32 = arith.constant 0 : i32
    %0 = arith.cmpi eq, %arg0, %c0_i32 : i32
    %1 = arith.extui %0 : i1 to i32
    %c0_i32_0 = arith.constant 0 : i32
    %2 = arith.cmpi ne, %1, %c0_i32_0 : i32
    scf.if %2 {
      %c0_147 = arith.constant 0 : index
      %c0_148 = arith.constant 0 : index
      %293 = vector.load %arg5[%c0_147, %c0_148] : memref<8x128xbf16, #tpu.memory_space<vmem>>, vector<8x128xbf16>
      %c0_149 = arith.constant 0 : index
      %c0_150 = arith.constant 0 : index
      %294 = vector.load %arg11[%c0_149, %c0_150] : memref<8x128xbf16, #tpu.memory_space<vmem>>, vector<8x128xbf16>
      tpu.vector_store %arg11[%c0_149, %c0_150], %293 {strides = array<i32>} : memref<8x128xbf16, #tpu.memory_space<vmem>>, vector<8x128xbf16>,
      %c0_151 = arith.constant 0 : index
      %c0_152 = arith.constant 0 : index
      %295 = vector.load %arg6[%c0_151, %c0_152] : memref<8x128xf32, #tpu.memory_space<vmem>>, vector<8x128xf32>
      %c0_153 = arith.constant 0 : index
      %c0_154 = arith.constant 0 : index
      %296 = vector.load %arg12[%c0_153, %c0_154] : memref<8x128xf32, #tpu.memory_space<vmem>>, vector<8x128xf32>
      tpu.vector_store %arg12[%c0_153, %c0_154], %295 {strides = array<i32>} : memref<8x128xf32, #tpu.memory_space<vmem>>, vector<8x128xf32>,
    } else {
    }
    %c0 = arith.constant 0 : index
    %c0_1 = arith.constant 0 : index
    %3 = vector.load %arg1[%c0, %c0_1] : memref<64x128xbf16, #tpu.memory_space<vmem>>, vector<64x128xbf16>
    %c0_2 = arith.constant 0 : index
    %c0_3 = arith.constant 0 : index
    %4 = vector.load %arg2[%c0_2, %c0_3] : memref<128x512xbf16, #tpu.memory_space<vmem>>, vector<128x512xbf16>
    %cst = arith.constant dense<0.000000e+00> : vector<64x512xf32>
    %5 = tpu.matmul %3, %4, %cst {dimension_numbers = #tpu.dot_dimension_numbers<[1], [0], [0], [1], [0, 0, 1, 1], [], []>} : vector<64x128xbf16>, vector<128x512xbf16>, vector<64x512xf32> -> vector<64x512xf32>
    %c0_4 = arith.constant 0 : index
    %c0_5 = arith.constant 0 : index
    %6 = vector.load %arg4[%c0_4, %c0_5] : memref<1x512xf32, #tpu.memory_space<vmem>>, vector<1x512xf32>
    %7 = vector.broadcast %6 : vector<1x512xf32> to vector<64x512xf32>
    %8 = arith.addf %5, %7 : vector<64x512xf32>
    %c0_6 = arith.constant 0 : index
    %c0_7 = arith.constant 0 : index
    %9 = vector.load %arg10[%c0_6, %c0_7] : memref<64x512xf32, #tpu.memory_space<vmem>>, vector<64x512xf32>
    tpu.vector_store %arg10[%c0_6, %c0_7], %8 {strides = array<i32>} : memref<64x512xf32, #tpu.memory_space<vmem>>, vector<64x512xf32>,
    %c0_8 = arith.constant 0 : index
    %c0_9 = arith.constant 0 : index
    %10 = vector.load %arg10[%c0_8, %c0_9] : memref<64x512xf32, #tpu.memory_space<vmem>>, vector<8x512xf32>
    %c0_10 = arith.constant 0 : index
    %c0_11 = arith.constant 0 : index
    %11 = vector.load %arg11[%c0_10, %c0_11] : memref<8x128xbf16, #tpu.memory_space<vmem>>, vector<8x128xbf16>
    %c0_12 = arith.constant 0 : index
    %c0_13 = arith.constant 0 : index
    %12 = vector.load %arg3[%c0_12, %c0_13] : memref<128x512xbf16, #tpu.memory_space<vmem>>, vector<128x512xbf16>
    %cst_14 = arith.constant dense<0.000000e+00> : vector<8x512xf32>
    %13 = tpu.matmul %11, %12, %cst_14 {dimension_numbers = #tpu.dot_dimension_numbers<[1], [0], [0], [1], [0, 0, 1, 1], [], []>} : vector<8x128xbf16>, vector<128x512xbf16>, vector<8x512xf32> -> vector<8x512xf32>
    %14 = arith.addf %10, %13 : vector<8x512xf32>
    %15 = vector.extract_strided_slice %14 {offsets = [0, 0], sizes = [8, 128], strides = [1, 1]} : vector<8x512xf32> to vector<8x128xf32>
    %16 = arith.negf %15 : vector<8x128xf32>
    %17 = math.exp %16 : vector<8x128xf32>
    %cst_15 = arith.constant 1.000000e+00 : f32
    %18 = vector.broadcast %cst_15 : f32 to vector<8x128xf32>
    %19 = arith.addf %18, %17 : vector<8x128xf32>
    %20 = arith.divf %18, %19 : vector<8x128xf32>
    %21 = vector.extract_strided_slice %14 {offsets = [0, 128], sizes = [8, 128], strides = [1, 1]} : vector<8x512xf32> to vector<8x128xf32>
    %22 = arith.negf %21 : vector<8x128xf32>
    %23 = math.exp %22 : vector<8x128xf32>
    %cst_16 = arith.constant 1.000000e+00 : f32
    %24 = vector.broadcast %cst_16 : f32 to vector<8x128xf32>
    %25 = arith.addf %24, %23 : vector<8x128xf32>
    %26 = arith.divf %24, %25 : vector<8x128xf32>
    %27 = vector.extract_strided_slice %14 {offsets = [0, 256], sizes = [8, 128], strides = [1, 1]} : vector<8x512xf32> to vector<8x128xf32>
    %28 = math.tanh %27 : vector<8x128xf32>
    %29 = vector.extract_strided_slice %14 {offsets = [0, 384], sizes = [8, 128], strides = [1, 1]} : vector<8x512xf32> to vector<8x128xf32>
    %30 = arith.negf %29 : vector<8x128xf32>
    %31 = math.exp %30 : vector<8x128xf32>
    %cst_17 = arith.constant 1.000000e+00 : f32
    %32 = vector.broadcast %cst_17 : f32 to vector<8x128xf32>
    %33 = arith.addf %32, %31 : vector<8x128xf32>
    %34 = arith.divf %32, %33 : vector<8x128xf32>
    %c0_18 = arith.constant 0 : index
    %c0_19 = arith.constant 0 : index
    %35 = vector.load %arg12[%c0_18, %c0_19] : memref<8x128xf32, #tpu.memory_space<vmem>>, vector<8x128xf32>
    %36 = arith.mulf %26, %35 : vector<8x128xf32>
    %37 = arith.mulf %20, %28 : vector<8x128xf32>
    %38 = arith.addf %36, %37 : vector<8x128xf32>
    %39 = math.tanh %38 : vector<8x128xf32>
    %40 = arith.mulf %34, %39 : vector<8x128xf32>
    %41 = arith.truncf %40 : vector<8x128xf32> to vector<8x128xbf16>
    %c0_20 = arith.constant 0 : index
    %c0_21 = arith.constant 0 : index
    %42 = vector.load %arg12[%c0_20, %c0_21] : memref<8x128xf32, #tpu.memory_space<vmem>>, vector<8x128xf32>
    tpu.vector_store %arg12[%c0_20, %c0_21], %38 {strides = array<i32>} : memref<8x128xf32, #tpu.memory_space<vmem>>, vector<8x128xf32>,
    %c0_22 = arith.constant 0 : index
    %c0_23 = arith.constant 0 : index
    %43 = vector.load %arg11[%c0_22, %c0_23] : memref<8x128xbf16, #tpu.memory_space<vmem>>, vector<8x128xbf16>
    tpu.vector_store %arg11[%c0_22, %c0_23], %41 {strides = array<i32>} : memref<8x128xbf16, #tpu.memory_space<vmem>>, vector<8x128xbf16>,
    %c0_24 = arith.constant 0 : index
    %c0_25 = arith.constant 0 : index
    %44 = vector.load %arg7[%c0_24, %c0_25] : memref<64x128xbf16, #tpu.memory_space<vmem>>, vector<8x128xbf16>
    tpu.vector_store %arg7[%c0_24, %c0_25], %41 {strides = array<i32>} : memref<64x128xbf16, #tpu.memory_space<vmem>>, vector<8x128xbf16>,
    %c8 = arith.constant 8 : index
    %c0_26 = arith.constant 0 : index
    %45 = vector.load %arg10[%c8, %c0_26] : memref<64x512xf32, #tpu.memory_space<vmem>>, vector<8x512xf32>
    %c0_27 = arith.constant 0 : index
    %c0_28 = arith.constant 0 : index
    %46 = vector.load %arg11[%c0_27, %c0_28] : memref<8x128xbf16, #tpu.memory_space<vmem>>, vector<8x128xbf16>
    %c0_29 = arith.constant 0 : index
    %c0_30 = arith.constant 0 : index
    %47 = vector.load %arg3[%c0_29, %c0_30] : memref<128x512xbf16, #tpu.memory_space<vmem>>, vector<128x512xbf16>
    %cst_31 = arith.constant dense<0.000000e+00> : vector<8x512xf32>
    %48 = tpu.matmul %46, %47, %cst_31 {dimension_numbers = #tpu.dot_dimension_numbers<[1], [0], [0], [1], [0, 0, 1, 1], [], []>} : vector<8x128xbf16>, vector<128x512xbf16>, vector<8x512xf32> -> vector<8x512xf32>
    %49 = arith.addf %45, %48 : vector<8x512xf32>
    %50 = vector.extract_strided_slice %49 {offsets = [0, 0], sizes = [8, 128], strides = [1, 1]} : vector<8x512xf32> to vector<8x128xf32>
    %51 = arith.negf %50 : vector<8x128xf32>
    %52 = math.exp %51 : vector<8x128xf32>
    %cst_32 = arith.constant 1.000000e+00 : f32
    %53 = vector.broadcast %cst_32 : f32 to vector<8x128xf32>
    %54 = arith.addf %53, %52 : vector<8x128xf32>
    %55 = arith.divf %53, %54 : vector<8x128xf32>
    %56 = vector.extract_strided_slice %49 {offsets = [0, 128], sizes = [8, 128], strides = [1, 1]} : vector<8x512xf32> to vector<8x128xf32>
    %57 = arith.negf %56 : vector<8x128xf32>
    %58 = math.exp %57 : vector<8x128xf32>
    %cst_33 = arith.constant 1.000000e+00 : f32
    %59 = vector.broadcast %cst_33 : f32 to vector<8x128xf32>
    %60 = arith.addf %59, %58 : vector<8x128xf32>
    %61 = arith.divf %59, %60 : vector<8x128xf32>
    %62 = vector.extract_strided_slice %49 {offsets = [0, 256], sizes = [8, 128], strides = [1, 1]} : vector<8x512xf32> to vector<8x128xf32>
    %63 = math.tanh %62 : vector<8x128xf32>
    %64 = vector.extract_strided_slice %49 {offsets = [0, 384], sizes = [8, 128], strides = [1, 1]} : vector<8x512xf32> to vector<8x128xf32>
    %65 = arith.negf %64 : vector<8x128xf32>
    %66 = math.exp %65 : vector<8x128xf32>
    %cst_34 = arith.constant 1.000000e+00 : f32
    %67 = vector.broadcast %cst_34 : f32 to vector<8x128xf32>
    %68 = arith.addf %67, %66 : vector<8x128xf32>
    %69 = arith.divf %67, %68 : vector<8x128xf32>
    %c0_35 = arith.constant 0 : index
    %c0_36 = arith.constant 0 : index
    %70 = vector.load %arg12[%c0_35, %c0_36] : memref<8x128xf32, #tpu.memory_space<vmem>>, vector<8x128xf32>
    %71 = arith.mulf %61, %70 : vector<8x128xf32>
    %72 = arith.mulf %55, %63 : vector<8x128xf32>
    %73 = arith.addf %71, %72 : vector<8x128xf32>
    %74 = math.tanh %73 : vector<8x128xf32>
    %75 = arith.mulf %69, %74 : vector<8x128xf32>
    %76 = arith.truncf %75 : vector<8x128xf32> to vector<8x128xbf16>
    %c0_37 = arith.constant 0 : index
    %c0_38 = arith.constant 0 : index
    %77 = vector.load %arg12[%c0_37, %c0_38] : memref<8x128xf32, #tpu.memory_space<vmem>>, vector<8x128xf32>
    tpu.vector_store %arg12[%c0_37, %c0_38], %73 {strides = array<i32>} : memref<8x128xf32, #tpu.memory_space<vmem>>, vector<8x128xf32>,
    %c0_39 = arith.constant 0 : index
    %c0_40 = arith.constant 0 : index
    %78 = vector.load %arg11[%c0_39, %c0_40] : memref<8x128xbf16, #tpu.memory_space<vmem>>, vector<8x128xbf16>
    tpu.vector_store %arg11[%c0_39, %c0_40], %76 {strides = array<i32>} : memref<8x128xbf16, #tpu.memory_space<vmem>>, vector<8x128xbf16>,
    %c8_41 = arith.constant 8 : index
    %c0_42 = arith.constant 0 : index
    %79 = vector.load %arg7[%c8_41, %c0_42] : memref<64x128xbf16, #tpu.memory_space<vmem>>, vector<8x128xbf16>
    tpu.vector_store %arg7[%c8_41, %c0_42], %76 {strides = array<i32>} : memref<64x128xbf16, #tpu.memory_space<vmem>>, vector<8x128xbf16>,
    %c16 = arith.constant 16 : index
    %c0_43 = arith.constant 0 : index
    %80 = vector.load %arg10[%c16, %c0_43] : memref<64x512xf32, #tpu.memory_space<vmem>>, vector<8x512xf32>
    %c0_44 = arith.constant 0 : index
    %c0_45 = arith.constant 0 : index
    %81 = vector.load %arg11[%c0_44, %c0_45] : memref<8x128xbf16, #tpu.memory_space<vmem>>, vector<8x128xbf16>
    %c0_46 = arith.constant 0 : index
    %c0_47 = arith.constant 0 : index
    %82 = vector.load %arg3[%c0_46, %c0_47] : memref<128x512xbf16, #tpu.memory_space<vmem>>, vector<128x512xbf16>
    %cst_48 = arith.constant dense<0.000000e+00> : vector<8x512xf32>
    %83 = tpu.matmul %81, %82, %cst_48 {dimension_numbers = #tpu.dot_dimension_numbers<[1], [0], [0], [1], [0, 0, 1, 1], [], []>} : vector<8x128xbf16>, vector<128x512xbf16>, vector<8x512xf32> -> vector<8x512xf32>
    %84 = arith.addf %80, %83 : vector<8x512xf32>
    %85 = vector.extract_strided_slice %84 {offsets = [0, 0], sizes = [8, 128], strides = [1, 1]} : vector<8x512xf32> to vector<8x128xf32>
    %86 = arith.negf %85 : vector<8x128xf32>
    %87 = math.exp %86 : vector<8x128xf32>
    %cst_49 = arith.constant 1.000000e+00 : f32
    %88 = vector.broadcast %cst_49 : f32 to vector<8x128xf32>
    %89 = arith.addf %88, %87 : vector<8x128xf32>
    %90 = arith.divf %88, %89 : vector<8x128xf32>
    %91 = vector.extract_strided_slice %84 {offsets = [0, 128], sizes = [8, 128], strides = [1, 1]} : vector<8x512xf32> to vector<8x128xf32>
    %92 = arith.negf %91 : vector<8x128xf32>
    %93 = math.exp %92 : vector<8x128xf32>
    %cst_50 = arith.constant 1.000000e+00 : f32
    %94 = vector.broadcast %cst_50 : f32 to vector<8x128xf32>
    %95 = arith.addf %94, %93 : vector<8x128xf32>
    %96 = arith.divf %94, %95 : vector<8x128xf32>
    %97 = vector.extract_strided_slice %84 {offsets = [0, 256], sizes = [8, 128], strides = [1, 1]} : vector<8x512xf32> to vector<8x128xf32>
    %98 = math.tanh %97 : vector<8x128xf32>
    %99 = vector.extract_strided_slice %84 {offsets = [0, 384], sizes = [8, 128], strides = [1, 1]} : vector<8x512xf32> to vector<8x128xf32>
    %100 = arith.negf %99 : vector<8x128xf32>
    %101 = math.exp %100 : vector<8x128xf32>
    %cst_51 = arith.constant 1.000000e+00 : f32
    %102 = vector.broadcast %cst_51 : f32 to vector<8x128xf32>
    %103 = arith.addf %102, %101 : vector<8x128xf32>
    %104 = arith.divf %102, %103 : vector<8x128xf32>
    %c0_52 = arith.constant 0 : index
    %c0_53 = arith.constant 0 : index
    %105 = vector.load %arg12[%c0_52, %c0_53] : memref<8x128xf32, #tpu.memory_space<vmem>>, vector<8x128xf32>
    %106 = arith.mulf %96, %105 : vector<8x128xf32>
    %107 = arith.mulf %90, %98 : vector<8x128xf32>
    %108 = arith.addf %106, %107 : vector<8x128xf32>
    %109 = math.tanh %108 : vector<8x128xf32>
    %110 = arith.mulf %104, %109 : vector<8x128xf32>
    %111 = arith.truncf %110 : vector<8x128xf32> to vector<8x128xbf16>
    %c0_54 = arith.constant 0 : index
    %c0_55 = arith.constant 0 : index
    %112 = vector.load %arg12[%c0_54, %c0_55] : memref<8x128xf32, #tpu.memory_space<vmem>>, vector<8x128xf32>
    tpu.vector_store %arg12[%c0_54, %c0_55], %108 {strides = array<i32>} : memref<8x128xf32, #tpu.memory_space<vmem>>, vector<8x128xf32>,
    %c0_56 = arith.constant 0 : index
    %c0_57 = arith.constant 0 : index
    %113 = vector.load %arg11[%c0_56, %c0_57] : memref<8x128xbf16, #tpu.memory_space<vmem>>, vector<8x128xbf16>
    tpu.vector_store %arg11[%c0_56, %c0_57], %111 {strides = array<i32>} : memref<8x128xbf16, #tpu.memory_space<vmem>>, vector<8x128xbf16>,
    %c16_58 = arith.constant 16 : index
    %c0_59 = arith.constant 0 : index
    %114 = vector.load %arg7[%c16_58, %c0_59] : memref<64x128xbf16, #tpu.memory_space<vmem>>, vector<8x128xbf16>
    tpu.vector_store %arg7[%c16_58, %c0_59], %111 {strides = array<i32>} : memref<64x128xbf16, #tpu.memory_space<vmem>>, vector<8x128xbf16>,
    %c24 = arith.constant 24 : index
    %c0_60 = arith.constant 0 : index
    %115 = vector.load %arg10[%c24, %c0_60] : memref<64x512xf32, #tpu.memory_space<vmem>>, vector<8x512xf32>
    %c0_61 = arith.constant 0 : index
    %c0_62 = arith.constant 0 : index
    %116 = vector.load %arg11[%c0_61, %c0_62] : memref<8x128xbf16, #tpu.memory_space<vmem>>, vector<8x128xbf16>
    %c0_63 = arith.constant 0 : index
    %c0_64 = arith.constant 0 : index
    %117 = vector.load %arg3[%c0_63, %c0_64] : memref<128x512xbf16, #tpu.memory_space<vmem>>, vector<128x512xbf16>
    %cst_65 = arith.constant dense<0.000000e+00> : vector<8x512xf32>
    %118 = tpu.matmul %116, %117, %cst_65 {dimension_numbers = #tpu.dot_dimension_numbers<[1], [0], [0], [1], [0, 0, 1, 1], [], []>} : vector<8x128xbf16>, vector<128x512xbf16>, vector<8x512xf32> -> vector<8x512xf32>
    %119 = arith.addf %115, %118 : vector<8x512xf32>
    %120 = vector.extract_strided_slice %119 {offsets = [0, 0], sizes = [8, 128], strides = [1, 1]} : vector<8x512xf32> to vector<8x128xf32>
    %121 = arith.negf %120 : vector<8x128xf32>
    %122 = math.exp %121 : vector<8x128xf32>
    %cst_66 = arith.constant 1.000000e+00 : f32
    %123 = vector.broadcast %cst_66 : f32 to vector<8x128xf32>
    %124 = arith.addf %123, %122 : vector<8x128xf32>
    %125 = arith.divf %123, %124 : vector<8x128xf32>
    %126 = vector.extract_strided_slice %119 {offsets = [0, 128], sizes = [8, 128], strides = [1, 1]} : vector<8x512xf32> to vector<8x128xf32>
    %127 = arith.negf %126 : vector<8x128xf32>
    %128 = math.exp %127 : vector<8x128xf32>
    %cst_67 = arith.constant 1.000000e+00 : f32
    %129 = vector.broadcast %cst_67 : f32 to vector<8x128xf32>
    %130 = arith.addf %129, %128 : vector<8x128xf32>
    %131 = arith.divf %129, %130 : vector<8x128xf32>
    %132 = vector.extract_strided_slice %119 {offsets = [0, 256], sizes = [8, 128], strides = [1, 1]} : vector<8x512xf32> to vector<8x128xf32>
    %133 = math.tanh %132 : vector<8x128xf32>
    %134 = vector.extract_strided_slice %119 {offsets = [0, 384], sizes = [8, 128], strides = [1, 1]} : vector<8x512xf32> to vector<8x128xf32>
    %135 = arith.negf %134 : vector<8x128xf32>
    %136 = math.exp %135 : vector<8x128xf32>
    %cst_68 = arith.constant 1.000000e+00 : f32
    %137 = vector.broadcast %cst_68 : f32 to vector<8x128xf32>
    %138 = arith.addf %137, %136 : vector<8x128xf32>
    %139 = arith.divf %137, %138 : vector<8x128xf32>
    %c0_69 = arith.constant 0 : index
    %c0_70 = arith.constant 0 : index
    %140 = vector.load %arg12[%c0_69, %c0_70] : memref<8x128xf32, #tpu.memory_space<vmem>>, vector<8x128xf32>
    %141 = arith.mulf %131, %140 : vector<8x128xf32>
    %142 = arith.mulf %125, %133 : vector<8x128xf32>
    %143 = arith.addf %141, %142 : vector<8x128xf32>
    %144 = math.tanh %143 : vector<8x128xf32>
    %145 = arith.mulf %139, %144 : vector<8x128xf32>
    %146 = arith.truncf %145 : vector<8x128xf32> to vector<8x128xbf16>
    %c0_71 = arith.constant 0 : index
    %c0_72 = arith.constant 0 : index
    %147 = vector.load %arg12[%c0_71, %c0_72] : memref<8x128xf32, #tpu.memory_space<vmem>>, vector<8x128xf32>
    tpu.vector_store %arg12[%c0_71, %c0_72], %143 {strides = array<i32>} : memref<8x128xf32, #tpu.memory_space<vmem>>, vector<8x128xf32>,
    %c0_73 = arith.constant 0 : index
    %c0_74 = arith.constant 0 : index
    %148 = vector.load %arg11[%c0_73, %c0_74] : memref<8x128xbf16, #tpu.memory_space<vmem>>, vector<8x128xbf16>
    tpu.vector_store %arg11[%c0_73, %c0_74], %146 {strides = array<i32>} : memref<8x128xbf16, #tpu.memory_space<vmem>>, vector<8x128xbf16>,
    %c24_75 = arith.constant 24 : index
    %c0_76 = arith.constant 0 : index
    %149 = vector.load %arg7[%c24_75, %c0_76] : memref<64x128xbf16, #tpu.memory_space<vmem>>, vector<8x128xbf16>
    tpu.vector_store %arg7[%c24_75, %c0_76], %146 {strides = array<i32>} : memref<64x128xbf16, #tpu.memory_space<vmem>>, vector<8x128xbf16>,
    %c32 = arith.constant 32 : index
    %c0_77 = arith.constant 0 : index
    %150 = vector.load %arg10[%c32, %c0_77] : memref<64x512xf32, #tpu.memory_space<vmem>>, vector<8x512xf32>
    %c0_78 = arith.constant 0 : index
    %c0_79 = arith.constant 0 : index
    %151 = vector.load %arg11[%c0_78, %c0_79] : memref<8x128xbf16, #tpu.memory_space<vmem>>, vector<8x128xbf16>
    %c0_80 = arith.constant 0 : index
    %c0_81 = arith.constant 0 : index
    %152 = vector.load %arg3[%c0_80, %c0_81] : memref<128x512xbf16, #tpu.memory_space<vmem>>, vector<128x512xbf16>
    %cst_82 = arith.constant dense<0.000000e+00> : vector<8x512xf32>
    %153 = tpu.matmul %151, %152, %cst_82 {dimension_numbers = #tpu.dot_dimension_numbers<[1], [0], [0], [1], [0, 0, 1, 1], [], []>} : vector<8x128xbf16>, vector<128x512xbf16>, vector<8x512xf32> -> vector<8x512xf32>
    %154 = arith.addf %150, %153 : vector<8x512xf32>
    %155 = vector.extract_strided_slice %154 {offsets = [0, 0], sizes = [8, 128], strides = [1, 1]} : vector<8x512xf32> to vector<8x128xf32>
    %156 = arith.negf %155 : vector<8x128xf32>
    %157 = math.exp %156 : vector<8x128xf32>
    %cst_83 = arith.constant 1.000000e+00 : f32
    %158 = vector.broadcast %cst_83 : f32 to vector<8x128xf32>
    %159 = arith.addf %158, %157 : vector<8x128xf32>
    %160 = arith.divf %158, %159 : vector<8x128xf32>
    %161 = vector.extract_strided_slice %154 {offsets = [0, 128], sizes = [8, 128], strides = [1, 1]} : vector<8x512xf32> to vector<8x128xf32>
    %162 = arith.negf %161 : vector<8x128xf32>
    %163 = math.exp %162 : vector<8x128xf32>
    %cst_84 = arith.constant 1.000000e+00 : f32
    %164 = vector.broadcast %cst_84 : f32 to vector<8x128xf32>
    %165 = arith.addf %164, %163 : vector<8x128xf32>
    %166 = arith.divf %164, %165 : vector<8x128xf32>
    %167 = vector.extract_strided_slice %154 {offsets = [0, 256], sizes = [8, 128], strides = [1, 1]} : vector<8x512xf32> to vector<8x128xf32>
    %168 = math.tanh %167 : vector<8x128xf32>
    %169 = vector.extract_strided_slice %154 {offsets = [0, 384], sizes = [8, 128], strides = [1, 1]} : vector<8x512xf32> to vector<8x128xf32>
    %170 = arith.negf %169 : vector<8x128xf32>
    %171 = math.exp %170 : vector<8x128xf32>
    %cst_85 = arith.constant 1.000000e+00 : f32
    %172 = vector.broadcast %cst_85 : f32 to vector<8x128xf32>
    %173 = arith.addf %172, %171 : vector<8x128xf32>
    %174 = arith.divf %172, %173 : vector<8x128xf32>
    %c0_86 = arith.constant 0 : index
    %c0_87 = arith.constant 0 : index
    %175 = vector.load %arg12[%c0_86, %c0_87] : memref<8x128xf32, #tpu.memory_space<vmem>>, vector<8x128xf32>
    %176 = arith.mulf %166, %175 : vector<8x128xf32>
    %177 = arith.mulf %160, %168 : vector<8x128xf32>
    %178 = arith.addf %176, %177 : vector<8x128xf32>
    %179 = math.tanh %178 : vector<8x128xf32>
    %180 = arith.mulf %174, %179 : vector<8x128xf32>
    %181 = arith.truncf %180 : vector<8x128xf32> to vector<8x128xbf16>
    %c0_88 = arith.constant 0 : index
    %c0_89 = arith.constant 0 : index
    %182 = vector.load %arg12[%c0_88, %c0_89] : memref<8x128xf32, #tpu.memory_space<vmem>>, vector<8x128xf32>
    tpu.vector_store %arg12[%c0_88, %c0_89], %178 {strides = array<i32>} : memref<8x128xf32, #tpu.memory_space<vmem>>, vector<8x128xf32>,
    %c0_90 = arith.constant 0 : index
    %c0_91 = arith.constant 0 : index
    %183 = vector.load %arg11[%c0_90, %c0_91] : memref<8x128xbf16, #tpu.memory_space<vmem>>, vector<8x128xbf16>
    tpu.vector_store %arg11[%c0_90, %c0_91], %181 {strides = array<i32>} : memref<8x128xbf16, #tpu.memory_space<vmem>>, vector<8x128xbf16>,
    %c32_92 = arith.constant 32 : index
    %c0_93 = arith.constant 0 : index
    %184 = vector.load %arg7[%c32_92, %c0_93] : memref<64x128xbf16, #tpu.memory_space<vmem>>, vector<8x128xbf16>
    tpu.vector_store %arg7[%c32_92, %c0_93], %181 {strides = array<i32>} : memref<64x128xbf16, #tpu.memory_space<vmem>>, vector<8x128xbf16>,
    %c40 = arith.constant 40 : index
    %c0_94 = arith.constant 0 : index
    %185 = vector.load %arg10[%c40, %c0_94] : memref<64x512xf32, #tpu.memory_space<vmem>>, vector<8x512xf32>
    %c0_95 = arith.constant 0 : index
    %c0_96 = arith.constant 0 : index
    %186 = vector.load %arg11[%c0_95, %c0_96] : memref<8x128xbf16, #tpu.memory_space<vmem>>, vector<8x128xbf16>
    %c0_97 = arith.constant 0 : index
    %c0_98 = arith.constant 0 : index
    %187 = vector.load %arg3[%c0_97, %c0_98] : memref<128x512xbf16, #tpu.memory_space<vmem>>, vector<128x512xbf16>
    %cst_99 = arith.constant dense<0.000000e+00> : vector<8x512xf32>
    %188 = tpu.matmul %186, %187, %cst_99 {dimension_numbers = #tpu.dot_dimension_numbers<[1], [0], [0], [1], [0, 0, 1, 1], [], []>} : vector<8x128xbf16>, vector<128x512xbf16>, vector<8x512xf32> -> vector<8x512xf32>
    %189 = arith.addf %185, %188 : vector<8x512xf32>
    %190 = vector.extract_strided_slice %189 {offsets = [0, 0], sizes = [8, 128], strides = [1, 1]} : vector<8x512xf32> to vector<8x128xf32>
    %191 = arith.negf %190 : vector<8x128xf32>
    %192 = math.exp %191 : vector<8x128xf32>
    %cst_100 = arith.constant 1.000000e+00 : f32
    %193 = vector.broadcast %cst_100 : f32 to vector<8x128xf32>
    %194 = arith.addf %193, %192 : vector<8x128xf32>
    %195 = arith.divf %193, %194 : vector<8x128xf32>
    %196 = vector.extract_strided_slice %189 {offsets = [0, 128], sizes = [8, 128], strides = [1, 1]} : vector<8x512xf32> to vector<8x128xf32>
    %197 = arith.negf %196 : vector<8x128xf32>
    %198 = math.exp %197 : vector<8x128xf32>
    %cst_101 = arith.constant 1.000000e+00 : f32
    %199 = vector.broadcast %cst_101 : f32 to vector<8x128xf32>
    %200 = arith.addf %199, %198 : vector<8x128xf32>
    %201 = arith.divf %199, %200 : vector<8x128xf32>
    %202 = vector.extract_strided_slice %189 {offsets = [0, 256], sizes = [8, 128], strides = [1, 1]} : vector<8x512xf32> to vector<8x128xf32>
    %203 = math.tanh %202 : vector<8x128xf32>
    %204 = vector.extract_strided_slice %189 {offsets = [0, 384], sizes = [8, 128], strides = [1, 1]} : vector<8x512xf32> to vector<8x128xf32>
    %205 = arith.negf %204 : vector<8x128xf32>
    %206 = math.exp %205 : vector<8x128xf32>
    %cst_102 = arith.constant 1.000000e+00 : f32
    %207 = vector.broadcast %cst_102 : f32 to vector<8x128xf32>
    %208 = arith.addf %207, %206 : vector<8x128xf32>
    %209 = arith.divf %207, %208 : vector<8x128xf32>
    %c0_103 = arith.constant 0 : index
    %c0_104 = arith.constant 0 : index
    %210 = vector.load %arg12[%c0_103, %c0_104] : memref<8x128xf32, #tpu.memory_space<vmem>>, vector<8x128xf32>
    %211 = arith.mulf %201, %210 : vector<8x128xf32>
    %212 = arith.mulf %195, %203 : vector<8x128xf32>
    %213 = arith.addf %211, %212 : vector<8x128xf32>
    %214 = math.tanh %213 : vector<8x128xf32>
    %215 = arith.mulf %209, %214 : vector<8x128xf32>
    %216 = arith.truncf %215 : vector<8x128xf32> to vector<8x128xbf16>
    %c0_105 = arith.constant 0 : index
    %c0_106 = arith.constant 0 : index
    %217 = vector.load %arg12[%c0_105, %c0_106] : memref<8x128xf32, #tpu.memory_space<vmem>>, vector<8x128xf32>
    tpu.vector_store %arg12[%c0_105, %c0_106], %213 {strides = array<i32>} : memref<8x128xf32, #tpu.memory_space<vmem>>, vector<8x128xf32>,
    %c0_107 = arith.constant 0 : index
    %c0_108 = arith.constant 0 : index
    %218 = vector.load %arg11[%c0_107, %c0_108] : memref<8x128xbf16, #tpu.memory_space<vmem>>, vector<8x128xbf16>
    tpu.vector_store %arg11[%c0_107, %c0_108], %216 {strides = array<i32>} : memref<8x128xbf16, #tpu.memory_space<vmem>>, vector<8x128xbf16>,
    %c40_109 = arith.constant 40 : index
    %c0_110 = arith.constant 0 : index
    %219 = vector.load %arg7[%c40_109, %c0_110] : memref<64x128xbf16, #tpu.memory_space<vmem>>, vector<8x128xbf16>
    tpu.vector_store %arg7[%c40_109, %c0_110], %216 {strides = array<i32>} : memref<64x128xbf16, #tpu.memory_space<vmem>>, vector<8x128xbf16>,
    %c48 = arith.constant 48 : index
    %c0_111 = arith.constant 0 : index
    %220 = vector.load %arg10[%c48, %c0_111] : memref<64x512xf32, #tpu.memory_space<vmem>>, vector<8x512xf32>
    %c0_112 = arith.constant 0 : index
    %c0_113 = arith.constant 0 : index
    %221 = vector.load %arg11[%c0_112, %c0_113] : memref<8x128xbf16, #tpu.memory_space<vmem>>, vector<8x128xbf16>
    %c0_114 = arith.constant 0 : index
    %c0_115 = arith.constant 0 : index
    %222 = vector.load %arg3[%c0_114, %c0_115] : memref<128x512xbf16, #tpu.memory_space<vmem>>, vector<128x512xbf16>
    %cst_116 = arith.constant dense<0.000000e+00> : vector<8x512xf32>
    %223 = tpu.matmul %221, %222, %cst_116 {dimension_numbers = #tpu.dot_dimension_numbers<[1], [0], [0], [1], [0, 0, 1, 1], [], []>} : vector<8x128xbf16>, vector<128x512xbf16>, vector<8x512xf32> -> vector<8x512xf32>
    %224 = arith.addf %220, %223 : vector<8x512xf32>
    %225 = vector.extract_strided_slice %224 {offsets = [0, 0], sizes = [8, 128], strides = [1, 1]} : vector<8x512xf32> to vector<8x128xf32>
    %226 = arith.negf %225 : vector<8x128xf32>
    %227 = math.exp %226 : vector<8x128xf32>
    %cst_117 = arith.constant 1.000000e+00 : f32
    %228 = vector.broadcast %cst_117 : f32 to vector<8x128xf32>
    %229 = arith.addf %228, %227 : vector<8x128xf32>
    %230 = arith.divf %228, %229 : vector<8x128xf32>
    %231 = vector.extract_strided_slice %224 {offsets = [0, 128], sizes = [8, 128], strides = [1, 1]} : vector<8x512xf32> to vector<8x128xf32>
    %232 = arith.negf %231 : vector<8x128xf32>
    %233 = math.exp %232 : vector<8x128xf32>
    %cst_118 = arith.constant 1.000000e+00 : f32
    %234 = vector.broadcast %cst_118 : f32 to vector<8x128xf32>
    %235 = arith.addf %234, %233 : vector<8x128xf32>
    %236 = arith.divf %234, %235 : vector<8x128xf32>
    %237 = vector.extract_strided_slice %224 {offsets = [0, 256], sizes = [8, 128], strides = [1, 1]} : vector<8x512xf32> to vector<8x128xf32>
    %238 = math.tanh %237 : vector<8x128xf32>
    %239 = vector.extract_strided_slice %224 {offsets = [0, 384], sizes = [8, 128], strides = [1, 1]} : vector<8x512xf32> to vector<8x128xf32>
    %240 = arith.negf %239 : vector<8x128xf32>
    %241 = math.exp %240 : vector<8x128xf32>
    %cst_119 = arith.constant 1.000000e+00 : f32
    %242 = vector.broadcast %cst_119 : f32 to vector<8x128xf32>
    %243 = arith.addf %242, %241 : vector<8x128xf32>
    %244 = arith.divf %242, %243 : vector<8x128xf32>
    %c0_120 = arith.constant 0 : index
    %c0_121 = arith.constant 0 : index
    %245 = vector.load %arg12[%c0_120, %c0_121] : memref<8x128xf32, #tpu.memory_space<vmem>>, vector<8x128xf32>
    %246 = arith.mulf %236, %245 : vector<8x128xf32>
    %247 = arith.mulf %230, %238 : vector<8x128xf32>
    %248 = arith.addf %246, %247 : vector<8x128xf32>
    %249 = math.tanh %248 : vector<8x128xf32>
    %250 = arith.mulf %244, %249 : vector<8x128xf32>
    %251 = arith.truncf %250 : vector<8x128xf32> to vector<8x128xbf16>
    %c0_122 = arith.constant 0 : index
    %c0_123 = arith.constant 0 : index
    %252 = vector.load %arg12[%c0_122, %c0_123] : memref<8x128xf32, #tpu.memory_space<vmem>>, vector<8x128xf32>
    tpu.vector_store %arg12[%c0_122, %c0_123], %248 {strides = array<i32>} : memref<8x128xf32, #tpu.memory_space<vmem>>, vector<8x128xf32>,
    %c0_124 = arith.constant 0 : index
    %c0_125 = arith.constant 0 : index
    %253 = vector.load %arg11[%c0_124, %c0_125] : memref<8x128xbf16, #tpu.memory_space<vmem>>, vector<8x128xbf16>
    tpu.vector_store %arg11[%c0_124, %c0_125], %251 {strides = array<i32>} : memref<8x128xbf16, #tpu.memory_space<vmem>>, vector<8x128xbf16>,
    %c48_126 = arith.constant 48 : index
    %c0_127 = arith.constant 0 : index
    %254 = vector.load %arg7[%c48_126, %c0_127] : memref<64x128xbf16, #tpu.memory_space<vmem>>, vector<8x128xbf16>
    tpu.vector_store %arg7[%c48_126, %c0_127], %251 {strides = array<i32>} : memref<64x128xbf16, #tpu.memory_space<vmem>>, vector<8x128xbf16>,
    %c56 = arith.constant 56 : index
    %c0_128 = arith.constant 0 : index
    %255 = vector.load %arg10[%c56, %c0_128] : memref<64x512xf32, #tpu.memory_space<vmem>>, vector<8x512xf32>
    %c0_129 = arith.constant 0 : index
    %c0_130 = arith.constant 0 : index
    %256 = vector.load %arg11[%c0_129, %c0_130] : memref<8x128xbf16, #tpu.memory_space<vmem>>, vector<8x128xbf16>
    %c0_131 = arith.constant 0 : index
    %c0_132 = arith.constant 0 : index
    %257 = vector.load %arg3[%c0_131, %c0_132] : memref<128x512xbf16, #tpu.memory_space<vmem>>, vector<128x512xbf16>
    %cst_133 = arith.constant dense<0.000000e+00> : vector<8x512xf32>
    %258 = tpu.matmul %256, %257, %cst_133 {dimension_numbers = #tpu.dot_dimension_numbers<[1], [0], [0], [1], [0, 0, 1, 1], [], []>} : vector<8x128xbf16>, vector<128x512xbf16>, vector<8x512xf32> -> vector<8x512xf32>
    %259 = arith.addf %255, %258 : vector<8x512xf32>
    %260 = vector.extract_strided_slice %259 {offsets = [0, 0], sizes = [8, 128], strides = [1, 1]} : vector<8x512xf32> to vector<8x128xf32>
    %261 = arith.negf %260 : vector<8x128xf32>
    %262 = math.exp %261 : vector<8x128xf32>
    %cst_134 = arith.constant 1.000000e+00 : f32
    %263 = vector.broadcast %cst_134 : f32 to vector<8x128xf32>
    %264 = arith.addf %263, %262 : vector<8x128xf32>
    %265 = arith.divf %263, %264 : vector<8x128xf32>
    %266 = vector.extract_strided_slice %259 {offsets = [0, 128], sizes = [8, 128], strides = [1, 1]} : vector<8x512xf32> to vector<8x128xf32>
    %267 = arith.negf %266 : vector<8x128xf32>
    %268 = math.exp %267 : vector<8x128xf32>
    %cst_135 = arith.constant 1.000000e+00 : f32
    %269 = vector.broadcast %cst_135 : f32 to vector<8x128xf32>
    %270 = arith.addf %269, %268 : vector<8x128xf32>
    %271 = arith.divf %269, %270 : vector<8x128xf32>
    %272 = vector.extract_strided_slice %259 {offsets = [0, 256], sizes = [8, 128], strides = [1, 1]} : vector<8x512xf32> to vector<8x128xf32>
    %273 = math.tanh %272 : vector<8x128xf32>
    %274 = vector.extract_strided_slice %259 {offsets = [0, 384], sizes = [8, 128], strides = [1, 1]} : vector<8x512xf32> to vector<8x128xf32>
    %275 = arith.negf %274 : vector<8x128xf32>
    %276 = math.exp %275 : vector<8x128xf32>
    %cst_136 = arith.constant 1.000000e+00 : f32
    %277 = vector.broadcast %cst_136 : f32 to vector<8x128xf32>
    %278 = arith.addf %277, %276 : vector<8x128xf32>
    %279 = arith.divf %277, %278 : vector<8x128xf32>
    %c0_137 = arith.constant 0 : index
    %c0_138 = arith.constant 0 : index
    %280 = vector.load %arg12[%c0_137, %c0_138] : memref<8x128xf32, #tpu.memory_space<vmem>>, vector<8x128xf32>
    %281 = arith.mulf %271, %280 : vector<8x128xf32>
    %282 = arith.mulf %265, %273 : vector<8x128xf32>
    %283 = arith.addf %281, %282 : vector<8x128xf32>
    %284 = math.tanh %283 : vector<8x128xf32>
    %285 = arith.mulf %279, %284 : vector<8x128xf32>
    %286 = arith.truncf %285 : vector<8x128xf32> to vector<8x128xbf16>
    %c0_139 = arith.constant 0 : index
    %c0_140 = arith.constant 0 : index
    %287 = vector.load %arg12[%c0_139, %c0_140] : memref<8x128xf32, #tpu.memory_space<vmem>>, vector<8x128xf32>
    tpu.vector_store %arg12[%c0_139, %c0_140], %283 {strides = array<i32>} : memref<8x128xf32, #tpu.memory_space<vmem>>, vector<8x128xf32>,
    %c0_141 = arith.constant 0 : index
    %c0_142 = arith.constant 0 : index
    %288 = vector.load %arg11[%c0_141, %c0_142] : memref<8x128xbf16, #tpu.memory_space<vmem>>, vector<8x128xbf16>
    tpu.vector_store %arg11[%c0_141, %c0_142], %286 {strides = array<i32>} : memref<8x128xbf16, #tpu.memory_space<vmem>>, vector<8x128xbf16>,
    %c56_143 = arith.constant 56 : index
    %c0_144 = arith.constant 0 : index
    %289 = vector.load %arg7[%c56_143, %c0_144] : memref<64x128xbf16, #tpu.memory_space<vmem>>, vector<8x128xbf16>
    tpu.vector_store %arg7[%c56_143, %c0_144], %286 {strides = array<i32>} : memref<64x128xbf16, #tpu.memory_space<vmem>>, vector<8x128xbf16>,
    %c0_i32_145 = arith.constant 0 : i32
    %290 = arith.cmpi eq, %arg0, %c0_i32_145 : i32
    %291 = arith.extui %290 : i1 to i32
    %c0_i32_146 = arith.constant 0 : i32
    %292 = arith.cmpi ne, %291, %c0_i32_146 : i32
    scf.if %292 {
      %c0_147 = arith.constant 0 : index
      %c0_148 = arith.constant 0 : index
      %293 = vector.load %arg11[%c0_147, %c0_148] : memref<8x128xbf16, #tpu.memory_space<vmem>>, vector<8x128xbf16>
      %294 = arith.extf %293 : vector<8x128xbf16> to vector<8x128xf32>
      %c0_149 = arith.constant 0 : index
      %c0_150 = arith.constant 0 : index
      %295 = vector.load %arg8[%c0_149, %c0_150] : memref<8x128xf32, #tpu.memory_space<vmem>>, vector<8x128xf32>
      tpu.vector_store %arg8[%c0_149, %c0_150], %294 {strides = array<i32>} : memref<8x128xf32, #tpu.memory_space<vmem>>, vector<8x128xf32>,
      %c0_151 = arith.constant 0 : index
      %c0_152 = arith.constant 0 : index
      %296 = vector.load %arg12[%c0_151, %c0_152] : memref<8x128xf32, #tpu.memory_space<vmem>>, vector<8x128xf32>
      %c0_153 = arith.constant 0 : index
      %c0_154 = arith.constant 0 : index
      %297 = vector.load %arg9[%c0_153, %c0_154] : memref<8x128xf32, #tpu.memory_space<vmem>>, vector<8x128xf32>
      tpu.vector_store %arg9[%c0_153, %c0_154], %296 {strides = array<i32>} : memref<8x128xf32, #tpu.memory_space<vmem>>, vector<8x128xf32>,
    } else {
    }
    return
  }
  func.func @transform_0(%arg0: i32) -> (i32, i32) {
    %c0_i32 = arith.constant 0 : i32
    %c0_i32_0 = arith.constant 0 : i32
    return %arg0, %c0_i32 : i32, i32
  }
  func.func @transform_1(%arg0: i32) -> (i32, i32) {
    %c0_i32 = arith.constant 0 : i32
    %c0_i32_0 = arith.constant 0 : i32
    %c0_i32_1 = arith.constant 0 : i32
    return %c0_i32, %c0_i32_0 : i32, i32
  }
  func.func @transform_2(%arg0: i32) -> (i32, i32) {
    %c0_i32 = arith.constant 0 : i32
    %c0_i32_0 = arith.constant 0 : i32
    %c0_i32_1 = arith.constant 0 : i32
    return %c0_i32, %c0_i32_0 : i32, i32
  }
  func.func @transform_3(%arg0: i32) -> (i32, i32) {
    %c0_i32 = arith.constant 0 : i32
    %c0_i32_0 = arith.constant 0 : i32
    %c0_i32_1 = arith.constant 0 : i32
    return %c0_i32, %c0_i32_0 : i32, i32
  }
  func.func @transform_4(%arg0: i32) -> (i32, i32) {
    %c0_i32 = arith.constant 0 : i32
    %c0_i32_0 = arith.constant 0 : i32
    %c0_i32_1 = arith.constant 0 : i32
    return %c0_i32, %c0_i32_0 : i32, i32
  }
  func.func @transform_5(%arg0: i32) -> (i32, i32) {
    %c0_i32 = arith.constant 0 : i32
    %c0_i32_0 = arith.constant 0 : i32
    %c0_i32_1 = arith.constant 0 : i32
    return %c0_i32, %c0_i32_0 : i32, i32
  }
  func.func @transform_6(%arg0: i32) -> (i32, i32) {
    %c0_i32 = arith.constant 0 : i32
    %c0_i32_0 = arith.constant 0 : i32
    return %arg0, %c0_i32 : i32, i32
  }
  func.func @transform_7(%arg0: i32) -> (i32, i32) {
    %c0_i32 = arith.constant 0 : i32
    %c0_i32_0 = arith.constant 0 : i32
    %c0_i32_1 = arith.constant 0 : i32
    return %c0_i32, %c0_i32_0 : i32, i32
  }
  func.func @transform_8(%arg0: i32) -> (i32, i32) {
    %c0_i32 = arith.constant 0 : i32
    %c0_i32_0 = arith.constant 0 : i32
    %c0_i32_1 = arith.constant 0 : i32
    return %c0_i32, %c0_i32_0 : i32, i32
  }
}

module attributes {stable_mosaic.version = 11 : i64} {
  func.func @_lstm_layer_kernel(%arg0: i32, %arg1: memref<64x128xbf16, #tpu.memory_space<vmem>>, %arg2: memref<128x512xbf16, #tpu.memory_space<vmem>>, %arg3: memref<128x512xbf16, #tpu.memory_space<vmem>>, %arg4: memref<1x512xf32, #tpu.memory_space<vmem>>, %arg5: memref<8x128xbf16, #tpu.memory_space<vmem>>, %arg6: memref<8x128xf32, #tpu.memory_space<vmem>>, %arg7: memref<64x128xbf16, #tpu.memory_space<vmem>>, %arg8: memref<8x128xf32, #tpu.memory_space<vmem>>, %arg9: memref<8x128xf32, #tpu.memory_space<vmem>>, %arg10: memref<64x512xf32, #tpu.memory_space<vmem>>, %arg11: memref<8x128xbf16, #tpu.memory_space<vmem>>, %arg12: memref<8x128xf32, #tpu.memory_space<vmem>>) attributes {dimension_semantics = [#tpu.dimension_semantics<arbitrary>], iteration_bounds = array<i64: 1>, scalar_prefetch = 0 : i64, scratch_operands = 3 : i64, tpu.core_type = #tpu.core_type<tc>, window_params = [{transform_indices = @transform_0, window_bounds = array<i64: 64, 128>}, {pipeline_mode = #tpu.pipeline_mode<synchronous>, transform_indices = @transform_1, window_bounds = array<i64: 128, 512>}, {pipeline_mode = #tpu.pipeline_mode<synchronous>, transform_indices = @transform_2, window_bounds = array<i64: 128, 512>}, {pipeline_mode = #tpu.pipeline_mode<synchronous>, transform_indices = @transform_3, window_bounds = array<i64: 1, 512>}, {pipeline_mode = #tpu.pipeline_mode<synchronous>, transform_indices = @transform_4, window_bounds = array<i64: 8, 128>}, {pipeline_mode = #tpu.pipeline_mode<synchronous>, transform_indices = @transform_5, window_bounds = array<i64: 8, 128>}, {transform_indices = @transform_6, window_bounds = array<i64: 64, 128>}, {pipeline_mode = #tpu.pipeline_mode<synchronous>, transform_indices = @transform_7, window_bounds = array<i64: 8, 128>}, {pipeline_mode = #tpu.pipeline_mode<synchronous>, transform_indices = @transform_8, window_bounds = array<i64: 8, 128>}]} {
    %c0_i32 = arith.constant 0 : i32
    %0 = arith.cmpi eq, %arg0, %c0_i32 : i32
    %1 = arith.extui %0 : i1 to i32
    %c0_i32_0 = arith.constant 0 : i32
    %2 = arith.cmpi ne, %1, %c0_i32_0 : i32
    scf.if %2 {
      %c0_147 = arith.constant 0 : index
      %c0_148 = arith.constant 0 : index
      %293 = vector.load %arg5[%c0_147, %c0_148] : memref<8x128xbf16, #tpu.memory_space<vmem>>, vector<8x128xbf16>
      %c0_149 = arith.constant 0 : index
      %c0_150 = arith.constant 0 : index
      %294 = vector.load %arg11[%c0_149, %c0_150] : memref<8x128xbf16, #tpu.memory_space<vmem>>, vector<8x128xbf16>
      tpu.vector_store %arg11[%c0_149, %c0_150], %293 {strides = array<i32>} : memref<8x128xbf16, #tpu.memory_space<vmem>>, vector<8x128xbf16>,
      %c0_151 = arith.constant 0 : index
      %c0_152 = arith.constant 0 : index
      %295 = vector.load %arg6[%c0_151, %c0_152] : memref<8x128xf32, #tpu.memory_space<vmem>>, vector<8x128xf32>
      %c0_153 = arith.constant 0 : index
      %c0_154 = arith.constant 0 : index
      %296 = vector.load %arg12[%c0_153, %c0_154] : memref<8x128xf32, #tpu.memory_space<vmem>>, vector<8x128xf32>
      tpu.vector_store %arg12[%c0_153, %c0_154], %295 {strides = array<i32>} : memref<8x128xf32, #tpu.memory_space<vmem>>, vector<8x128xf32>,
    } else {
    }
    %c0 = arith.constant 0 : index
    %c0_1 = arith.constant 0 : index
    %3 = vector.load %arg1[%c0, %c0_1] : memref<64x128xbf16, #tpu.memory_space<vmem>>, vector<64x128xbf16>
    %c0_2 = arith.constant 0 : index
    %c0_3 = arith.constant 0 : index
    %4 = vector.load %arg2[%c0_2, %c0_3] : memref<128x512xbf16, #tpu.memory_space<vmem>>, vector<128x512xbf16>
    %cst = arith.constant dense<0.000000e+00> : vector<64x512xf32>
    %5 = tpu.matmul %3, %4, %cst {dimension_numbers = #tpu.dot_dimension_numbers<[1], [0], [0], [1], [0, 0, 1, 1], [], []>} : vector<64x128xbf16>, vector<128x512xbf16>, vector<64x512xf32> -> vector<64x512xf32>
    %c0_4 = arith.constant 0 : index
    %c0_5 = arith.constant 0 : index
    %6 = vector.load %arg4[%c0_4, %c0_5] : memref<1x512xf32, #tpu.memory_space<vmem>>, vector<1x512xf32>
    %7 = vector.broadcast %6 : vector<1x512xf32> to vector<64x512xf32>
    %8 = arith.addf %5, %7 : vector<64x512xf32>
    %c0_6 = arith.constant 0 : index
    %c0_7 = arith.constant 0 : index
    %9 = vector.load %arg10[%c0_6, %c0_7] : memref<64x512xf32, #tpu.memory_space<vmem>>, vector<64x512xf32>
    tpu.vector_store %arg10[%c0_6, %c0_7], %8 {strides = array<i32>} : memref<64x512xf32, #tpu.memory_space<vmem>>, vector<64x512xf32>,
    %c0_8 = arith.constant 0 : index
    %c0_9 = arith.constant 0 : index
    %10 = vector.load %arg10[%c0_8, %c0_9] : memref<64x512xf32, #tpu.memory_space<vmem>>, vector<8x512xf32>
    %c0_10 = arith.constant 0 : index
    %c0_11 = arith.constant 0 : index
    %11 = vector.load %arg11[%c0_10, %c0_11] : memref<8x128xbf16, #tpu.memory_space<vmem>>, vector<8x128xbf16>
    %c0_12 = arith.constant 0 : index
    %c0_13 = arith.constant 0 : index
    %12 = vector.load %arg3[%c0_12, %c0_13] : memref<128x512xbf16, #tpu.memory_space<vmem>>, vector<128x512xbf16>
    %cst_14 = arith.constant dense<0.000000e+00> : vector<8x512xf32>
    %13 = tpu.matmul %11, %12, %cst_14 {dimension_numbers = #tpu.dot_dimension_numbers<[1], [0], [0], [1], [0, 0, 1, 1], [], []>} : vector<8x128xbf16>, vector<128x512xbf16>, vector<8x512xf32> -> vector<8x512xf32>
    %14 = arith.addf %10, %13 : vector<8x512xf32>
    %15 = vector.extract_strided_slice %14 {offsets = [0, 0], sizes = [8, 128], strides = [1, 1]} : vector<8x512xf32> to vector<8x128xf32>
    %16 = arith.negf %15 : vector<8x128xf32>
    %17 = math.exp %16 : vector<8x128xf32>
    %cst_15 = arith.constant 1.000000e+00 : f32
    %18 = vector.broadcast %cst_15 : f32 to vector<8x128xf32>
    %19 = arith.addf %18, %17 : vector<8x128xf32>
    %20 = arith.divf %18, %19 : vector<8x128xf32>
    %21 = vector.extract_strided_slice %14 {offsets = [0, 128], sizes = [8, 128], strides = [1, 1]} : vector<8x512xf32> to vector<8x128xf32>
    %22 = arith.negf %21 : vector<8x128xf32>
    %23 = math.exp %22 : vector<8x128xf32>
    %cst_16 = arith.constant 1.000000e+00 : f32
    %24 = vector.broadcast %cst_16 : f32 to vector<8x128xf32>
    %25 = arith.addf %24, %23 : vector<8x128xf32>
    %26 = arith.divf %24, %25 : vector<8x128xf32>
    %27 = vector.extract_strided_slice %14 {offsets = [0, 256], sizes = [8, 128], strides = [1, 1]} : vector<8x512xf32> to vector<8x128xf32>
    %28 = math.tanh %27 : vector<8x128xf32>
    %29 = vector.extract_strided_slice %14 {offsets = [0, 384], sizes = [8, 128], strides = [1, 1]} : vector<8x512xf32> to vector<8x128xf32>
    %30 = arith.negf %29 : vector<8x128xf32>
    %31 = math.exp %30 : vector<8x128xf32>
    %cst_17 = arith.constant 1.000000e+00 : f32
    %32 = vector.broadcast %cst_17 : f32 to vector<8x128xf32>
    %33 = arith.addf %32, %31 : vector<8x128xf32>
    %34 = arith.divf %32, %33 : vector<8x128xf32>
    %c0_18 = arith.constant 0 : index
    %c0_19 = arith.constant 0 : index
    %35 = vector.load %arg12[%c0_18, %c0_19] : memref<8x128xf32, #tpu.memory_space<vmem>>, vector<8x128xf32>
    %36 = arith.mulf %26, %35 : vector<8x128xf32>
    %37 = arith.mulf %20, %28 : vector<8x128xf32>
    %38 = arith.addf %36, %37 : vector<8x128xf32>
    %39 = math.tanh %38 : vector<8x128xf32>
    %40 = arith.mulf %34, %39 : vector<8x128xf32>
    %41 = arith.truncf %40 : vector<8x128xf32> to vector<8x128xbf16>
    %c0_20 = arith.constant 0 : index
    %c0_21 = arith.constant 0 : index
    %42 = vector.load %arg12[%c0_20, %c0_21] : memref<8x128xf32, #tpu.memory_space<vmem>>, vector<8x128xf32>
    tpu.vector_store %arg12[%c0_20, %c0_21], %38 {strides = array<i32>} : memref<8x128xf32, #tpu.memory_space<vmem>>, vector<8x128xf32>,
    %c0_22 = arith.constant 0 : index
    %c0_23 = arith.constant 0 : index
    %43 = vector.load %arg11[%c0_22, %c0_23] : memref<8x128xbf16, #tpu.memory_space<vmem>>, vector<8x128xbf16>
    tpu.vector_store %arg11[%c0_22, %c0_23], %41 {strides = array<i32>} : memref<8x128xbf16, #tpu.memory_space<vmem>>, vector<8x128xbf16>,
    %c0_24 = arith.constant 0 : index
    %c0_25 = arith.constant 0 : index
    %44 = vector.load %arg7[%c0_24, %c0_25] : memref<64x128xbf16, #tpu.memory_space<vmem>>, vector<8x128xbf16>
    tpu.vector_store %arg7[%c0_24, %c0_25], %41 {strides = array<i32>} : memref<64x128xbf16, #tpu.memory_space<vmem>>, vector<8x128xbf16>,
    %c8 = arith.constant 8 : index
    %c0_26 = arith.constant 0 : index
    %45 = vector.load %arg10[%c8, %c0_26] : memref<64x512xf32, #tpu.memory_space<vmem>>, vector<8x512xf32>
    %c0_27 = arith.constant 0 : index
    %c0_28 = arith.constant 0 : index
    %46 = vector.load %arg11[%c0_27, %c0_28] : memref<8x128xbf16, #tpu.memory_space<vmem>>, vector<8x128xbf16>
    %c0_29 = arith.constant 0 : index
    %c0_30 = arith.constant 0 : index
    %47 = vector.load %arg3[%c0_29, %c0_30] : memref<128x512xbf16, #tpu.memory_space<vmem>>, vector<128x512xbf16>
    %cst_31 = arith.constant dense<0.000000e+00> : vector<8x512xf32>
    %48 = tpu.matmul %46, %47, %cst_31 {dimension_numbers = #tpu.dot_dimension_numbers<[1], [0], [0], [1], [0, 0, 1, 1], [], []>} : vector<8x128xbf16>, vector<128x512xbf16>, vector<8x512xf32> -> vector<8x512xf32>
    %49 = arith.addf %45, %48 : vector<8x512xf32>
    %50 = vector.extract_strided_slice %49 {offsets = [0, 0], sizes = [8, 128], strides = [1, 1]} : vector<8x512xf32> to vector<8x128xf32>
    %51 = arith.negf %50 : vector<8x128xf32>
    %52 = math.exp %51 : vector<8x128xf32>
    %cst_32 = arith.constant 1.000000e+00 : f32
    %53 = vector.broadcast %cst_32 : f32 to vector<8x128xf32>
    %54 = arith.addf %53, %52 : vector<8x128xf32>
    %55 = arith.divf %53, %54 : vector<8x128xf32>
    %56 = vector.extract_strided_slice %49 {offsets = [0, 128], sizes = [8, 128], strides = [1, 1]} : vector<8x512xf32> to vector<8x128xf32>
    %57 = arith.negf %56 : vector<8x128xf32>
    %58 = math.exp %57 : vector<8x128xf32>
    %cst_33 = arith.constant 1.000000e+00 : f32
    %59 = vector.broadcast %cst_33 : f32 to vector<8x128xf32>
    %60 = arith.addf %59, %58 : vector<8x128xf32>
    %61 = arith.divf %59, %60 : vector<8x128xf32>
    %62 = vector.extract_strided_slice %49 {offsets = [0, 256], sizes = [8, 128], strides = [1, 1]} : vector<8x512xf32> to vector<8x128xf32>
    %63 = math.tanh %62 : vector<8x128xf32>
    %64 = vector.extract_strided_slice %49 {offsets = [0, 384], sizes = [8, 128], strides = [1, 1]} : vector<8x512xf32> to vector<8x128xf32>
    %65 = arith.negf %64 : vector<8x128xf32>
    %66 = math.exp %65 : vector<8x128xf32>
    %cst_34 = arith.constant 1.000000e+00 : f32
    %67 = vector.broadcast %cst_34 : f32 to vector<8x128xf32>
    %68 = arith.addf %67, %66 : vector<8x128xf32>
    %69 = arith.divf %67, %68 : vector<8x128xf32>
    %c0_35 = arith.constant 0 : index
    %c0_36 = arith.constant 0 : index
    %70 = vector.load %arg12[%c0_35, %c0_36] : memref<8x128xf32, #tpu.memory_space<vmem>>, vector<8x128xf32>
    %71 = arith.mulf %61, %70 : vector<8x128xf32>
    %72 = arith.mulf %55, %63 : vector<8x128xf32>
    %73 = arith.addf %71, %72 : vector<8x128xf32>
    %74 = math.tanh %73 : vector<8x128xf32>
    %75 = arith.mulf %69, %74 : vector<8x128xf32>
    %76 = arith.truncf %75 : vector<8x128xf32> to vector<8x128xbf16>
    %c0_37 = arith.constant 0 : index
    %c0_38 = arith.constant 0 : index
    %77 = vector.load %arg12[%c0_37, %c0_38] : memref<8x128xf32, #tpu.memory_space<vmem>>, vector<8x128xf32>
    tpu.vector_store %arg12[%c0_37, %c0_38], %73 {strides = array<i32>} : memref<8x128xf32, #tpu.memory_space<vmem>>, vector<8x128xf32>,
    %c0_39 = arith.constant 0 : index
    %c0_40 = arith.constant 0 : index
    %78 = vector.load %arg11[%c0_39, %c0_40] : memref<8x128xbf16, #tpu.memory_space<vmem>>, vector<8x128xbf16>
    tpu.vector_store %arg11[%c0_39, %c0_40], %76 {strides = array<i32>} : memref<8x128xbf16, #tpu.memory_space<vmem>>, vector<8x128xbf16>,
    %c8_41 = arith.constant 8 : index
    %c0_42 = arith.constant 0 : index
    %79 = vector.load %arg7[%c8_41, %c0_42] : memref<64x128xbf16, #tpu.memory_space<vmem>>, vector<8x128xbf16>
    tpu.vector_store %arg7[%c8_41, %c0_42], %76 {strides = array<i32>} : memref<64x128xbf16, #tpu.memory_space<vmem>>, vector<8x128xbf16>,
    %c16 = arith.constant 16 : index
    %c0_43 = arith.constant 0 : index
    %80 = vector.load %arg10[%c16, %c0_43] : memref<64x512xf32, #tpu.memory_space<vmem>>, vector<8x512xf32>
    %c0_44 = arith.constant 0 : index
    %c0_45 = arith.constant 0 : index
    %81 = vector.load %arg11[%c0_44, %c0_45] : memref<8x128xbf16, #tpu.memory_space<vmem>>, vector<8x128xbf16>
    %c0_46 = arith.constant 0 : index
    %c0_47 = arith.constant 0 : index
    %82 = vector.load %arg3[%c0_46, %c0_47] : memref<128x512xbf16, #tpu.memory_space<vmem>>, vector<128x512xbf16>
    %cst_48 = arith.constant dense<0.000000e+00> : vector<8x512xf32>
    %83 = tpu.matmul %81, %82, %cst_48 {dimension_numbers = #tpu.dot_dimension_numbers<[1], [0], [0], [1], [0, 0, 1, 1], [], []>} : vector<8x128xbf16>, vector<128x512xbf16>, vector<8x512xf32> -> vector<8x512xf32>
    %84 = arith.addf %80, %83 : vector<8x512xf32>
    %85 = vector.extract_strided_slice %84 {offsets = [0, 0], sizes = [8, 128], strides = [1, 1]} : vector<8x512xf32> to vector<8x128xf32>
    %86 = arith.negf %85 : vector<8x128xf32>
    %87 = math.exp %86 : vector<8x128xf32>
    %cst_49 = arith.constant 1.000000e+00 : f32
    %88 = vector.broadcast %cst_49 : f32 to vector<8x128xf32>
    %89 = arith.addf %88, %87 : vector<8x128xf32>
    %90 = arith.divf %88, %89 : vector<8x128xf32>
    %91 = vector.extract_strided_slice %84 {offsets = [0, 128], sizes = [8, 128], strides = [1, 1]} : vector<8x512xf32> to vector<8x128xf32>
    %92 = arith.negf %91 : vector<8x128xf32>
    %93 = math.exp %92 : vector<8x128xf32>
    %cst_50 = arith.constant 1.000000e+00 : f32
    %94 = vector.broadcast %cst_50 : f32 to vector<8x128xf32>
    %95 = arith.addf %94, %93 : vector<8x128xf32>
    %96 = arith.divf %94, %95 : vector<8x128xf32>
    %97 = vector.extract_strided_slice %84 {offsets = [0, 256], sizes = [8, 128], strides = [1, 1]} : vector<8x512xf32> to vector<8x128xf32>
    %98 = math.tanh %97 : vector<8x128xf32>
    %99 = vector.extract_strided_slice %84 {offsets = [0, 384], sizes = [8, 128], strides = [1, 1]} : vector<8x512xf32> to vector<8x128xf32>
    %100 = arith.negf %99 : vector<8x128xf32>
    %101 = math.exp %100 : vector<8x128xf32>
    %cst_51 = arith.constant 1.000000e+00 : f32
    %102 = vector.broadcast %cst_51 : f32 to vector<8x128xf32>
    %103 = arith.addf %102, %101 : vector<8x128xf32>
    %104 = arith.divf %102, %103 : vector<8x128xf32>
    %c0_52 = arith.constant 0 : index
    %c0_53 = arith.constant 0 : index
    %105 = vector.load %arg12[%c0_52, %c0_53] : memref<8x128xf32, #tpu.memory_space<vmem>>, vector<8x128xf32>
    %106 = arith.mulf %96, %105 : vector<8x128xf32>
    %107 = arith.mulf %90, %98 : vector<8x128xf32>
    %108 = arith.addf %106, %107 : vector<8x128xf32>
    %109 = math.tanh %108 : vector<8x128xf32>
    %110 = arith.mulf %104, %109 : vector<8x128xf32>
    %111 = arith.truncf %110 : vector<8x128xf32> to vector<8x128xbf16>
    %c0_54 = arith.constant 0 : index
    %c0_55 = arith.constant 0 : index
    %112 = vector.load %arg12[%c0_54, %c0_55] : memref<8x128xf32, #tpu.memory_space<vmem>>, vector<8x128xf32>
    tpu.vector_store %arg12[%c0_54, %c0_55], %108 {strides = array<i32>} : memref<8x128xf32, #tpu.memory_space<vmem>>, vector<8x128xf32>,
    %c0_56 = arith.constant 0 : index
    %c0_57 = arith.constant 0 : index
    %113 = vector.load %arg11[%c0_56, %c0_57] : memref<8x128xbf16, #tpu.memory_space<vmem>>, vector<8x128xbf16>
    tpu.vector_store %arg11[%c0_56, %c0_57], %111 {strides = array<i32>} : memref<8x128xbf16, #tpu.memory_space<vmem>>, vector<8x128xbf16>,
    %c16_58 = arith.constant 16 : index
    %c0_59 = arith.constant 0 : index
    %114 = vector.load %arg7[%c16_58, %c0_59] : memref<64x128xbf16, #tpu.memory_space<vmem>>, vector<8x128xbf16>
    tpu.vector_store %arg7[%c16_58, %c0_59], %111 {strides = array<i32>} : memref<64x128xbf16, #tpu.memory_space<vmem>>, vector<8x128xbf16>,
    %c24 = arith.constant 24 : index
    %c0_60 = arith.constant 0 : index
    %115 = vector.load %arg10[%c24, %c0_60] : memref<64x512xf32, #tpu.memory_space<vmem>>, vector<8x512xf32>
    %c0_61 = arith.constant 0 : index
    %c0_62 = arith.constant 0 : index
    %116 = vector.load %arg11[%c0_61, %c0_62] : memref<8x128xbf16, #tpu.memory_space<vmem>>, vector<8x128xbf16>
    %c0_63 = arith.constant 0 : index
    %c0_64 = arith.constant 0 : index
    %117 = vector.load %arg3[%c0_63, %c0_64] : memref<128x512xbf16, #tpu.memory_space<vmem>>, vector<128x512xbf16>
    %cst_65 = arith.constant dense<0.000000e+00> : vector<8x512xf32>
    %118 = tpu.matmul %116, %117, %cst_65 {dimension_numbers = #tpu.dot_dimension_numbers<[1], [0], [0], [1], [0, 0, 1, 1], [], []>} : vector<8x128xbf16>, vector<128x512xbf16>, vector<8x512xf32> -> vector<8x512xf32>
    %119 = arith.addf %115, %118 : vector<8x512xf32>
    %120 = vector.extract_strided_slice %119 {offsets = [0, 0], sizes = [8, 128], strides = [1, 1]} : vector<8x512xf32> to vector<8x128xf32>
    %121 = arith.negf %120 : vector<8x128xf32>
    %122 = math.exp %121 : vector<8x128xf32>
    %cst_66 = arith.constant 1.000000e+00 : f32
    %123 = vector.broadcast %cst_66 : f32 to vector<8x128xf32>
    %124 = arith.addf %123, %122 : vector<8x128xf32>
    %125 = arith.divf %123, %124 : vector<8x128xf32>
    %126 = vector.extract_strided_slice %119 {offsets = [0, 128], sizes = [8, 128], strides = [1, 1]} : vector<8x512xf32> to vector<8x128xf32>
    %127 = arith.negf %126 : vector<8x128xf32>
    %128 = math.exp %127 : vector<8x128xf32>
    %cst_67 = arith.constant 1.000000e+00 : f32
    %129 = vector.broadcast %cst_67 : f32 to vector<8x128xf32>
    %130 = arith.addf %129, %128 : vector<8x128xf32>
    %131 = arith.divf %129, %130 : vector<8x128xf32>
    %132 = vector.extract_strided_slice %119 {offsets = [0, 256], sizes = [8, 128], strides = [1, 1]} : vector<8x512xf32> to vector<8x128xf32>
    %133 = math.tanh %132 : vector<8x128xf32>
    %134 = vector.extract_strided_slice %119 {offsets = [0, 384], sizes = [8, 128], strides = [1, 1]} : vector<8x512xf32> to vector<8x128xf32>
    %135 = arith.negf %134 : vector<8x128xf32>
    %136 = math.exp %135 : vector<8x128xf32>
    %cst_68 = arith.constant 1.000000e+00 : f32
    %137 = vector.broadcast %cst_68 : f32 to vector<8x128xf32>
    %138 = arith.addf %137, %136 : vector<8x128xf32>
    %139 = arith.divf %137, %138 : vector<8x128xf32>
    %c0_69 = arith.constant 0 : index
    %c0_70 = arith.constant 0 : index
    %140 = vector.load %arg12[%c0_69, %c0_70] : memref<8x128xf32, #tpu.memory_space<vmem>>, vector<8x128xf32>
    %141 = arith.mulf %131, %140 : vector<8x128xf32>
    %142 = arith.mulf %125, %133 : vector<8x128xf32>
    %143 = arith.addf %141, %142 : vector<8x128xf32>
    %144 = math.tanh %143 : vector<8x128xf32>
    %145 = arith.mulf %139, %144 : vector<8x128xf32>
    %146 = arith.truncf %145 : vector<8x128xf32> to vector<8x128xbf16>
    %c0_71 = arith.constant 0 : index
    %c0_72 = arith.constant 0 : index
    %147 = vector.load %arg12[%c0_71, %c0_72] : memref<8x128xf32, #tpu.memory_space<vmem>>, vector<8x128xf32>
    tpu.vector_store %arg12[%c0_71, %c0_72], %143 {strides = array<i32>} : memref<8x128xf32, #tpu.memory_space<vmem>>, vector<8x128xf32>,
    %c0_73 = arith.constant 0 : index
    %c0_74 = arith.constant 0 : index
    %148 = vector.load %arg11[%c0_73, %c0_74] : memref<8x128xbf16, #tpu.memory_space<vmem>>, vector<8x128xbf16>
    tpu.vector_store %arg11[%c0_73, %c0_74], %146 {strides = array<i32>} : memref<8x128xbf16, #tpu.memory_space<vmem>>, vector<8x128xbf16>,
    %c24_75 = arith.constant 24 : index
    %c0_76 = arith.constant 0 : index
    %149 = vector.load %arg7[%c24_75, %c0_76] : memref<64x128xbf16, #tpu.memory_space<vmem>>, vector<8x128xbf16>
    tpu.vector_store %arg7[%c24_75, %c0_76], %146 {strides = array<i32>} : memref<64x128xbf16, #tpu.memory_space<vmem>>, vector<8x128xbf16>,
    %c32 = arith.constant 32 : index
    %c0_77 = arith.constant 0 : index
    %150 = vector.load %arg10[%c32, %c0_77] : memref<64x512xf32, #tpu.memory_space<vmem>>, vector<8x512xf32>
    %c0_78 = arith.constant 0 : index
    %c0_79 = arith.constant 0 : index
    %151 = vector.load %arg11[%c0_78, %c0_79] : memref<8x128xbf16, #tpu.memory_space<vmem>>, vector<8x128xbf16>
    %c0_80 = arith.constant 0 : index
    %c0_81 = arith.constant 0 : index
    %152 = vector.load %arg3[%c0_80, %c0_81] : memref<128x512xbf16, #tpu.memory_space<vmem>>, vector<128x512xbf16>
    %cst_82 = arith.constant dense<0.000000e+00> : vector<8x512xf32>
    %153 = tpu.matmul %151, %152, %cst_82 {dimension_numbers = #tpu.dot_dimension_numbers<[1], [0], [0], [1], [0, 0, 1, 1], [], []>} : vector<8x128xbf16>, vector<128x512xbf16>, vector<8x512xf32> -> vector<8x512xf32>
    %154 = arith.addf %150, %153 : vector<8x512xf32>
    %155 = vector.extract_strided_slice %154 {offsets = [0, 0], sizes = [8, 128], strides = [1, 1]} : vector<8x512xf32> to vector<8x128xf32>
    %156 = arith.negf %155 : vector<8x128xf32>
    %157 = math.exp %156 : vector<8x128xf32>
    %cst_83 = arith.constant 1.000000e+00 : f32
    %158 = vector.broadcast %cst_83 : f32 to vector<8x128xf32>
    %159 = arith.addf %158, %157 : vector<8x128xf32>
    %160 = arith.divf %158, %159 : vector<8x128xf32>
    %161 = vector.extract_strided_slice %154 {offsets = [0, 128], sizes = [8, 128], strides = [1, 1]} : vector<8x512xf32> to vector<8x128xf32>
    %162 = arith.negf %161 : vector<8x128xf32>
    %163 = math.exp %162 : vector<8x128xf32>
    %cst_84 = arith.constant 1.000000e+00 : f32
    %164 = vector.broadcast %cst_84 : f32 to vector<8x128xf32>
    %165 = arith.addf %164, %163 : vector<8x128xf32>
    %166 = arith.divf %164, %165 : vector<8x128xf32>
    %167 = vector.extract_strided_slice %154 {offsets = [0, 256], sizes = [8, 128], strides = [1, 1]} : vector<8x512xf32> to vector<8x128xf32>
    %168 = math.tanh %167 : vector<8x128xf32>
    %169 = vector.extract_strided_slice %154 {offsets = [0, 384], sizes = [8, 128], strides = [1, 1]} : vector<8x512xf32> to vector<8x128xf32>
    %170 = arith.negf %169 : vector<8x128xf32>
    %171 = math.exp %170 : vector<8x128xf32>
    %cst_85 = arith.constant 1.000000e+00 : f32
    %172 = vector.broadcast %cst_85 : f32 to vector<8x128xf32>
    %173 = arith.addf %172, %171 : vector<8x128xf32>
    %174 = arith.divf %172, %173 : vector<8x128xf32>
    %c0_86 = arith.constant 0 : index
    %c0_87 = arith.constant 0 : index
    %175 = vector.load %arg12[%c0_86, %c0_87] : memref<8x128xf32, #tpu.memory_space<vmem>>, vector<8x128xf32>
    %176 = arith.mulf %166, %175 : vector<8x128xf32>
    %177 = arith.mulf %160, %168 : vector<8x128xf32>
    %178 = arith.addf %176, %177 : vector<8x128xf32>
    %179 = math.tanh %178 : vector<8x128xf32>
    %180 = arith.mulf %174, %179 : vector<8x128xf32>
    %181 = arith.truncf %180 : vector<8x128xf32> to vector<8x128xbf16>
    %c0_88 = arith.constant 0 : index
    %c0_89 = arith.constant 0 : index
    %182 = vector.load %arg12[%c0_88, %c0_89] : memref<8x128xf32, #tpu.memory_space<vmem>>, vector<8x128xf32>
    tpu.vector_store %arg12[%c0_88, %c0_89], %178 {strides = array<i32>} : memref<8x128xf32, #tpu.memory_space<vmem>>, vector<8x128xf32>,
    %c0_90 = arith.constant 0 : index
    %c0_91 = arith.constant 0 : index
    %183 = vector.load %arg11[%c0_90, %c0_91] : memref<8x128xbf16, #tpu.memory_space<vmem>>, vector<8x128xbf16>
    tpu.vector_store %arg11[%c0_90, %c0_91], %181 {strides = array<i32>} : memref<8x128xbf16, #tpu.memory_space<vmem>>, vector<8x128xbf16>,
    %c32_92 = arith.constant 32 : index
    %c0_93 = arith.constant 0 : index
    %184 = vector.load %arg7[%c32_92, %c0_93] : memref<64x128xbf16, #tpu.memory_space<vmem>>, vector<8x128xbf16>
    tpu.vector_store %arg7[%c32_92, %c0_93], %181 {strides = array<i32>} : memref<64x128xbf16, #tpu.memory_space<vmem>>, vector<8x128xbf16>,
    %c40 = arith.constant 40 : index
    %c0_94 = arith.constant 0 : index
    %185 = vector.load %arg10[%c40, %c0_94] : memref<64x512xf32, #tpu.memory_space<vmem>>, vector<8x512xf32>
    %c0_95 = arith.constant 0 : index
    %c0_96 = arith.constant 0 : index
    %186 = vector.load %arg11[%c0_95, %c0_96] : memref<8x128xbf16, #tpu.memory_space<vmem>>, vector<8x128xbf16>
    %c0_97 = arith.constant 0 : index
    %c0_98 = arith.constant 0 : index
    %187 = vector.load %arg3[%c0_97, %c0_98] : memref<128x512xbf16, #tpu.memory_space<vmem>>, vector<128x512xbf16>
    %cst_99 = arith.constant dense<0.000000e+00> : vector<8x512xf32>
    %188 = tpu.matmul %186, %187, %cst_99 {dimension_numbers = #tpu.dot_dimension_numbers<[1], [0], [0], [1], [0, 0, 1, 1], [], []>} : vector<8x128xbf16>, vector<128x512xbf16>, vector<8x512xf32> -> vector<8x512xf32>
    %189 = arith.addf %185, %188 : vector<8x512xf32>
    %190 = vector.extract_strided_slice %189 {offsets = [0, 0], sizes = [8, 128], strides = [1, 1]} : vector<8x512xf32> to vector<8x128xf32>
    %191 = arith.negf %190 : vector<8x128xf32>
    %192 = math.exp %191 : vector<8x128xf32>
    %cst_100 = arith.constant 1.000000e+00 : f32
    %193 = vector.broadcast %cst_100 : f32 to vector<8x128xf32>
    %194 = arith.addf %193, %192 : vector<8x128xf32>
    %195 = arith.divf %193, %194 : vector<8x128xf32>
    %196 = vector.extract_strided_slice %189 {offsets = [0, 128], sizes = [8, 128], strides = [1, 1]} : vector<8x512xf32> to vector<8x128xf32>
    %197 = arith.negf %196 : vector<8x128xf32>
    %198 = math.exp %197 : vector<8x128xf32>
    %cst_101 = arith.constant 1.000000e+00 : f32
    %199 = vector.broadcast %cst_101 : f32 to vector<8x128xf32>
    %200 = arith.addf %199, %198 : vector<8x128xf32>
    %201 = arith.divf %199, %200 : vector<8x128xf32>
    %202 = vector.extract_strided_slice %189 {offsets = [0, 256], sizes = [8, 128], strides = [1, 1]} : vector<8x512xf32> to vector<8x128xf32>
    %203 = math.tanh %202 : vector<8x128xf32>
    %204 = vector.extract_strided_slice %189 {offsets = [0, 384], sizes = [8, 128], strides = [1, 1]} : vector<8x512xf32> to vector<8x128xf32>
    %205 = arith.negf %204 : vector<8x128xf32>
    %206 = math.exp %205 : vector<8x128xf32>
    %cst_102 = arith.constant 1.000000e+00 : f32
    %207 = vector.broadcast %cst_102 : f32 to vector<8x128xf32>
    %208 = arith.addf %207, %206 : vector<8x128xf32>
    %209 = arith.divf %207, %208 : vector<8x128xf32>
    %c0_103 = arith.constant 0 : index
    %c0_104 = arith.constant 0 : index
    %210 = vector.load %arg12[%c0_103, %c0_104] : memref<8x128xf32, #tpu.memory_space<vmem>>, vector<8x128xf32>
    %211 = arith.mulf %201, %210 : vector<8x128xf32>
    %212 = arith.mulf %195, %203 : vector<8x128xf32>
    %213 = arith.addf %211, %212 : vector<8x128xf32>
    %214 = math.tanh %213 : vector<8x128xf32>
    %215 = arith.mulf %209, %214 : vector<8x128xf32>
    %216 = arith.truncf %215 : vector<8x128xf32> to vector<8x128xbf16>
    %c0_105 = arith.constant 0 : index
    %c0_106 = arith.constant 0 : index
    %217 = vector.load %arg12[%c0_105, %c0_106] : memref<8x128xf32, #tpu.memory_space<vmem>>, vector<8x128xf32>
    tpu.vector_store %arg12[%c0_105, %c0_106], %213 {strides = array<i32>} : memref<8x128xf32, #tpu.memory_space<vmem>>, vector<8x128xf32>,
    %c0_107 = arith.constant 0 : index
    %c0_108 = arith.constant 0 : index
    %218 = vector.load %arg11[%c0_107, %c0_108] : memref<8x128xbf16, #tpu.memory_space<vmem>>, vector<8x128xbf16>
    tpu.vector_store %arg11[%c0_107, %c0_108], %216 {strides = array<i32>} : memref<8x128xbf16, #tpu.memory_space<vmem>>, vector<8x128xbf16>,
    %c40_109 = arith.constant 40 : index
    %c0_110 = arith.constant 0 : index
    %219 = vector.load %arg7[%c40_109, %c0_110] : memref<64x128xbf16, #tpu.memory_space<vmem>>, vector<8x128xbf16>
    tpu.vector_store %arg7[%c40_109, %c0_110], %216 {strides = array<i32>} : memref<64x128xbf16, #tpu.memory_space<vmem>>, vector<8x128xbf16>,
    %c48 = arith.constant 48 : index
    %c0_111 = arith.constant 0 : index
    %220 = vector.load %arg10[%c48, %c0_111] : memref<64x512xf32, #tpu.memory_space<vmem>>, vector<8x512xf32>
    %c0_112 = arith.constant 0 : index
    %c0_113 = arith.constant 0 : index
    %221 = vector.load %arg11[%c0_112, %c0_113] : memref<8x128xbf16, #tpu.memory_space<vmem>>, vector<8x128xbf16>
    %c0_114 = arith.constant 0 : index
    %c0_115 = arith.constant 0 : index
    %222 = vector.load %arg3[%c0_114, %c0_115] : memref<128x512xbf16, #tpu.memory_space<vmem>>, vector<128x512xbf16>
    %cst_116 = arith.constant dense<0.000000e+00> : vector<8x512xf32>
    %223 = tpu.matmul %221, %222, %cst_116 {dimension_numbers = #tpu.dot_dimension_numbers<[1], [0], [0], [1], [0, 0, 1, 1], [], []>} : vector<8x128xbf16>, vector<128x512xbf16>, vector<8x512xf32> -> vector<8x512xf32>
    %224 = arith.addf %220, %223 : vector<8x512xf32>
    %225 = vector.extract_strided_slice %224 {offsets = [0, 0], sizes = [8, 128], strides = [1, 1]} : vector<8x512xf32> to vector<8x128xf32>
    %226 = arith.negf %225 : vector<8x128xf32>
    %227 = math.exp %226 : vector<8x128xf32>
    %cst_117 = arith.constant 1.000000e+00 : f32
    %228 = vector.broadcast %cst_117 : f32 to vector<8x128xf32>
    %229 = arith.addf %228, %227 : vector<8x128xf32>
    %230 = arith.divf %228, %229 : vector<8x128xf32>
    %231 = vector.extract_strided_slice %224 {offsets = [0, 128], sizes = [8, 128], strides = [1, 1]} : vector<8x512xf32> to vector<8x128xf32>
    %232 = arith.negf %231 : vector<8x128xf32>
    %233 = math.exp %232 : vector<8x128xf32>
    %cst_118 = arith.constant 1.000000e+00 : f32
    %234 = vector.broadcast %cst_118 : f32 to vector<8x128xf32>
    %235 = arith.addf %234, %233 : vector<8x128xf32>
    %236 = arith.divf %234, %235 : vector<8x128xf32>
    %237 = vector.extract_strided_slice %224 {offsets = [0, 256], sizes = [8, 128], strides = [1, 1]} : vector<8x512xf32> to vector<8x128xf32>
    %238 = math.tanh %237 : vector<8x128xf32>
    %239 = vector.extract_strided_slice %224 {offsets = [0, 384], sizes = [8, 128], strides = [1, 1]} : vector<8x512xf32> to vector<8x128xf32>
    %240 = arith.negf %239 : vector<8x128xf32>
    %241 = math.exp %240 : vector<8x128xf32>
    %cst_119 = arith.constant 1.000000e+00 : f32
    %242 = vector.broadcast %cst_119 : f32 to vector<8x128xf32>
    %243 = arith.addf %242, %241 : vector<8x128xf32>
    %244 = arith.divf %242, %243 : vector<8x128xf32>
    %c0_120 = arith.constant 0 : index
    %c0_121 = arith.constant 0 : index
    %245 = vector.load %arg12[%c0_120, %c0_121] : memref<8x128xf32, #tpu.memory_space<vmem>>, vector<8x128xf32>
    %246 = arith.mulf %236, %245 : vector<8x128xf32>
    %247 = arith.mulf %230, %238 : vector<8x128xf32>
    %248 = arith.addf %246, %247 : vector<8x128xf32>
    %249 = math.tanh %248 : vector<8x128xf32>
    %250 = arith.mulf %244, %249 : vector<8x128xf32>
    %251 = arith.truncf %250 : vector<8x128xf32> to vector<8x128xbf16>
    %c0_122 = arith.constant 0 : index
    %c0_123 = arith.constant 0 : index
    %252 = vector.load %arg12[%c0_122, %c0_123] : memref<8x128xf32, #tpu.memory_space<vmem>>, vector<8x128xf32>
    tpu.vector_store %arg12[%c0_122, %c0_123], %248 {strides = array<i32>} : memref<8x128xf32, #tpu.memory_space<vmem>>, vector<8x128xf32>,
    %c0_124 = arith.constant 0 : index
    %c0_125 = arith.constant 0 : index
    %253 = vector.load %arg11[%c0_124, %c0_125] : memref<8x128xbf16, #tpu.memory_space<vmem>>, vector<8x128xbf16>
    tpu.vector_store %arg11[%c0_124, %c0_125], %251 {strides = array<i32>} : memref<8x128xbf16, #tpu.memory_space<vmem>>, vector<8x128xbf16>,
    %c48_126 = arith.constant 48 : index
    %c0_127 = arith.constant 0 : index
    %254 = vector.load %arg7[%c48_126, %c0_127] : memref<64x128xbf16, #tpu.memory_space<vmem>>, vector<8x128xbf16>
    tpu.vector_store %arg7[%c48_126, %c0_127], %251 {strides = array<i32>} : memref<64x128xbf16, #tpu.memory_space<vmem>>, vector<8x128xbf16>,
    %c56 = arith.constant 56 : index
    %c0_128 = arith.constant 0 : index
    %255 = vector.load %arg10[%c56, %c0_128] : memref<64x512xf32, #tpu.memory_space<vmem>>, vector<8x512xf32>
    %c0_129 = arith.constant 0 : index
    %c0_130 = arith.constant 0 : index
    %256 = vector.load %arg11[%c0_129, %c0_130] : memref<8x128xbf16, #tpu.memory_space<vmem>>, vector<8x128xbf16>
    %c0_131 = arith.constant 0 : index
    %c0_132 = arith.constant 0 : index
    %257 = vector.load %arg3[%c0_131, %c0_132] : memref<128x512xbf16, #tpu.memory_space<vmem>>, vector<128x512xbf16>
    %cst_133 = arith.constant dense<0.000000e+00> : vector<8x512xf32>
    %258 = tpu.matmul %256, %257, %cst_133 {dimension_numbers = #tpu.dot_dimension_numbers<[1], [0], [0], [1], [0, 0, 1, 1], [], []>} : vector<8x128xbf16>, vector<128x512xbf16>, vector<8x512xf32> -> vector<8x512xf32>
    %259 = arith.addf %255, %258 : vector<8x512xf32>
    %260 = vector.extract_strided_slice %259 {offsets = [0, 0], sizes = [8, 128], strides = [1, 1]} : vector<8x512xf32> to vector<8x128xf32>
    %261 = arith.negf %260 : vector<8x128xf32>
    %262 = math.exp %261 : vector<8x128xf32>
    %cst_134 = arith.constant 1.000000e+00 : f32
    %263 = vector.broadcast %cst_134 : f32 to vector<8x128xf32>
    %264 = arith.addf %263, %262 : vector<8x128xf32>
    %265 = arith.divf %263, %264 : vector<8x128xf32>
    %266 = vector.extract_strided_slice %259 {offsets = [0, 128], sizes = [8, 128], strides = [1, 1]} : vector<8x512xf32> to vector<8x128xf32>
    %267 = arith.negf %266 : vector<8x128xf32>
    %268 = math.exp %267 : vector<8x128xf32>
    %cst_135 = arith.constant 1.000000e+00 : f32
    %269 = vector.broadcast %cst_135 : f32 to vector<8x128xf32>
    %270 = arith.addf %269, %268 : vector<8x128xf32>
    %271 = arith.divf %269, %270 : vector<8x128xf32>
    %272 = vector.extract_strided_slice %259 {offsets = [0, 256], sizes = [8, 128], strides = [1, 1]} : vector<8x512xf32> to vector<8x128xf32>
    %273 = math.tanh %272 : vector<8x128xf32>
    %274 = vector.extract_strided_slice %259 {offsets = [0, 384], sizes = [8, 128], strides = [1, 1]} : vector<8x512xf32> to vector<8x128xf32>
    %275 = arith.negf %274 : vector<8x128xf32>
    %276 = math.exp %275 : vector<8x128xf32>
    %cst_136 = arith.constant 1.000000e+00 : f32
    %277 = vector.broadcast %cst_136 : f32 to vector<8x128xf32>
    %278 = arith.addf %277, %276 : vector<8x128xf32>
    %279 = arith.divf %277, %278 : vector<8x128xf32>
    %c0_137 = arith.constant 0 : index
    %c0_138 = arith.constant 0 : index
    %280 = vector.load %arg12[%c0_137, %c0_138] : memref<8x128xf32, #tpu.memory_space<vmem>>, vector<8x128xf32>
    %281 = arith.mulf %271, %280 : vector<8x128xf32>
    %282 = arith.mulf %265, %273 : vector<8x128xf32>
    %283 = arith.addf %281, %282 : vector<8x128xf32>
    %284 = math.tanh %283 : vector<8x128xf32>
    %285 = arith.mulf %279, %284 : vector<8x128xf32>
    %286 = arith.truncf %285 : vector<8x128xf32> to vector<8x128xbf16>
    %c0_139 = arith.constant 0 : index
    %c0_140 = arith.constant 0 : index
    %287 = vector.load %arg12[%c0_139, %c0_140] : memref<8x128xf32, #tpu.memory_space<vmem>>, vector<8x128xf32>
    tpu.vector_store %arg12[%c0_139, %c0_140], %283 {strides = array<i32>} : memref<8x128xf32, #tpu.memory_space<vmem>>, vector<8x128xf32>,
    %c0_141 = arith.constant 0 : index
    %c0_142 = arith.constant 0 : index
    %288 = vector.load %arg11[%c0_141, %c0_142] : memref<8x128xbf16, #tpu.memory_space<vmem>>, vector<8x128xbf16>
    tpu.vector_store %arg11[%c0_141, %c0_142], %286 {strides = array<i32>} : memref<8x128xbf16, #tpu.memory_space<vmem>>, vector<8x128xbf16>,
    %c56_143 = arith.constant 56 : index
    %c0_144 = arith.constant 0 : index
    %289 = vector.load %arg7[%c56_143, %c0_144] : memref<64x128xbf16, #tpu.memory_space<vmem>>, vector<8x128xbf16>
    tpu.vector_store %arg7[%c56_143, %c0_144], %286 {strides = array<i32>} : memref<64x128xbf16, #tpu.memory_space<vmem>>, vector<8x128xbf16>,
    %c0_i32_145 = arith.constant 0 : i32
    %290 = arith.cmpi eq, %arg0, %c0_i32_145 : i32
    %291 = arith.extui %290 : i1 to i32
    %c0_i32_146 = arith.constant 0 : i32
    %292 = arith.cmpi ne, %291, %c0_i32_146 : i32
    scf.if %292 {
      %c0_147 = arith.constant 0 : index
      %c0_148 = arith.constant 0 : index
      %293 = vector.load %arg11[%c0_147, %c0_148] : memref<8x128xbf16, #tpu.memory_space<vmem>>, vector<8x128xbf16>
      %294 = arith.extf %293 : vector<8x128xbf16> to vector<8x128xf32>
      %c0_149 = arith.constant 0 : index
      %c0_150 = arith.constant 0 : index
      %295 = vector.load %arg8[%c0_149, %c0_150] : memref<8x128xf32, #tpu.memory_space<vmem>>, vector<8x128xf32>
      tpu.vector_store %arg8[%c0_149, %c0_150], %294 {strides = array<i32>} : memref<8x128xf32, #tpu.memory_space<vmem>>, vector<8x128xf32>,
      %c0_151 = arith.constant 0 : index
      %c0_152 = arith.constant 0 : index
      %296 = vector.load %arg12[%c0_151, %c0_152] : memref<8x128xf32, #tpu.memory_space<vmem>>, vector<8x128xf32>
      %c0_153 = arith.constant 0 : index
      %c0_154 = arith.constant 0 : index
      %297 = vector.load %arg9[%c0_153, %c0_154] : memref<8x128xf32, #tpu.memory_space<vmem>>, vector<8x128xf32>
      tpu.vector_store %arg9[%c0_153, %c0_154], %296 {strides = array<i32>} : memref<8x128xf32, #tpu.memory_space<vmem>>, vector<8x128xf32>,
    } else {
    }
    return
  }
  func.func @transform_0(%arg0: i32) -> (i32, i32) {
    %c0_i32 = arith.constant 0 : i32
    %c0_i32_0 = arith.constant 0 : i32
    return %arg0, %c0_i32 : i32, i32
  }
  func.func @transform_1(%arg0: i32) -> (i32, i32) {
    %c0_i32 = arith.constant 0 : i32
    %c0_i32_0 = arith.constant 0 : i32
    %c0_i32_1 = arith.constant 0 : i32
    return %c0_i32, %c0_i32_0 : i32, i32
  }
  func.func @transform_2(%arg0: i32) -> (i32, i32) {
    %c0_i32 = arith.constant 0 : i32
    %c0_i32_0 = arith.constant 0 : i32
    %c0_i32_1 = arith.constant 0 : i32
    return %c0_i32, %c0_i32_0 : i32, i32
  }
  func.func @transform_3(%arg0: i32) -> (i32, i32) {
    %c0_i32 = arith.constant 0 : i32
    %c0_i32_0 = arith.constant 0 : i32
    %c0_i32_1 = arith.constant 0 : i32
    return %c0_i32, %c0_i32_0 : i32, i32
  }
  func.func @transform_4(%arg0: i32) -> (i32, i32) {
    %c0_i32 = arith.constant 0 : i32
    %c0_i32_0 = arith.constant 0 : i32
    %c0_i32_1 = arith.constant 0 : i32
    return %c0_i32, %c0_i32_0 : i32, i32
  }
  func.func @transform_5(%arg0: i32) -> (i32, i32) {
    %c0_i32 = arith.constant 0 : i32
    %c0_i32_0 = arith.constant 0 : i32
    %c0_i32_1 = arith.constant 0 : i32
    return %c0_i32, %c0_i32_0 : i32, i32
  }
  func.func @transform_6(%arg0: i32) -> (i32, i32) {
    %c0_i32 = arith.constant 0 : i32
    %c0_i32_0 = arith.constant 0 : i32
    return %arg0, %c0_i32 : i32, i32
  }
  func.func @transform_7(%arg0: i32) -> (i32, i32) {
    %c0_i32 = arith.constant 0 : i32
    %c0_i32_0 = arith.constant 0 : i32
    %c0_i32_1 = arith.constant 0 : i32
    return %c0_i32, %c0_i32_0 : i32, i32
  }
  func.func @transform_8(%arg0: i32) -> (i32, i32) {
    %c0_i32 = arith.constant 0 : i32
    %c0_i32_0 = arith.constant 0 : i32
    %c0_i32_1 = arith.constant 0 : i32
    return %c0_i32, %c0_i32_0 : i32, i32
  }
}

module attributes {stable_mosaic.version = 11 : i64} {
  func.func @_matmul_bias_kernel(%arg0: i32, %arg1: i32, %arg2: memref<16x128xbf16, #tpu.memory_space<vmem>>, %arg3: memref<128x128xbf16, #tpu.memory_space<vmem>>, %arg4: memref<1x128xf32, #tpu.memory_space<vmem>>, %arg5: memref<16x128xf32, #tpu.memory_space<vmem>>) attributes {dimension_semantics = [#tpu.dimension_semantics<parallel>, #tpu.dimension_semantics<parallel>], iteration_bounds = array<i64: 1, 1>, scalar_prefetch = 0 : i64, scratch_operands = 0 : i64, tpu.core_type = #tpu.core_type<tc>, window_params = [{transform_indices = @transform_0, window_bounds = array<i64: 16, 128>}, {transform_indices = @transform_1, window_bounds = array<i64: 128, 128>}, {transform_indices = @transform_2, window_bounds = array<i64: 1, 128>}, {transform_indices = @transform_3, window_bounds = array<i64: 16, 128>}]} {
    %c0 = arith.constant 0 : index
    %c0_0 = arith.constant 0 : index
    %0 = vector.load %arg2[%c0, %c0_0] : memref<16x128xbf16, #tpu.memory_space<vmem>>, vector<16x128xbf16>
    %c0_1 = arith.constant 0 : index
    %c0_2 = arith.constant 0 : index
    %1 = vector.load %arg3[%c0_1, %c0_2] : memref<128x128xbf16, #tpu.memory_space<vmem>>, vector<128x128xbf16>
    %cst = arith.constant dense<0.000000e+00> : vector<16x128xf32>
    %2 = tpu.matmul %0, %1, %cst {dimension_numbers = #tpu.dot_dimension_numbers<[1], [0], [0], [1], [0, 0, 1, 1], [], []>} : vector<16x128xbf16>, vector<128x128xbf16>, vector<16x128xf32> -> vector<16x128xf32>
    %c0_3 = arith.constant 0 : index
    %c0_4 = arith.constant 0 : index
    %3 = vector.load %arg4[%c0_3, %c0_4] : memref<1x128xf32, #tpu.memory_space<vmem>>, vector<1x128xf32>
    %4 = vector.broadcast %3 : vector<1x128xf32> to vector<16x128xf32>
    %5 = arith.addf %2, %4 : vector<16x128xf32>
    %c0_5 = arith.constant 0 : index
    %c0_6 = arith.constant 0 : index
    %6 = vector.load %arg5[%c0_5, %c0_6] : memref<16x128xf32, #tpu.memory_space<vmem>>, vector<16x128xf32>
    tpu.vector_store %arg5[%c0_5, %c0_6], %5 {strides = array<i32>} : memref<16x128xf32, #tpu.memory_space<vmem>>, vector<16x128xf32>,
    return
  }
  func.func @transform_0(%arg0: i32, %arg1: i32) -> (i32, i32) {
    %c0_i32 = arith.constant 0 : i32
    %c0_i32_0 = arith.constant 0 : i32
    return %arg1, %c0_i32 : i32, i32
  }
  func.func @transform_1(%arg0: i32, %arg1: i32) -> (i32, i32) {
    %c0_i32 = arith.constant 0 : i32
    %c0_i32_0 = arith.constant 0 : i32
    return %c0_i32, %arg0 : i32, i32
  }
  func.func @transform_2(%arg0: i32, %arg1: i32) -> (i32, i32) {
    %c0_i32 = arith.constant 0 : i32
    %c0_i32_0 = arith.constant 0 : i32
    return %c0_i32, %arg0 : i32, i32
  }
  func.func @transform_3(%arg0: i32, %arg1: i32) -> (i32, i32) {
    %c0_i32 = arith.constant 0 : i32
    return %arg1, %arg0 : i32, i32
  }
}

</mosaic_0001>

<bundles_post_ra>
// kernel: rnn_model_forward.5
= control target key start
LH: loop header
LB: loop body
LE: loop exit
PB: predicated region body
PF: predicated region fallthrough
CT: control target
= control target key end

     0   :  { %v231_v1 = vmov 0.0   ;;  %vm232_vm0 = vmmov 0   ;;  %s298_s0 = inlined_call_operand.vmem [shape: bf16[16,128], index: 0, kind: input, shape index: {}]   ;;  %s299_s1 = inlined_call_operand.vmem [shape: bf16[128,128], index: 1, kind: input, shape index: {}]   ;;  %s300_s2 = inlined_call_operand.vmem [shape: f32[1,128], index: 2, kind: input, shape index: {}]   ;;  %s301_s3 = inlined_call_operand.hbm [shape: f32[16,128], index: 3, kind: output, shape index: {}]  }
   0x1   :  { %v198_v0 = vld [vmem:[%s299_s1] sm:$0xff]   ;;  %173 = vmatprep.subr.bf16.mxu0 %v231_v1  ;;  %v199_v2 = vld [vmem:[%s299_s1 + $0x8] sm:$0xff]   ;;  %189 = vmatprep.mubr.msk.bf16.mxu0 %vm232_vm0, %v231_v1  ;;  %v200_v3 = vld [vmem:[%s299_s1 + $0x10] sm:$0xff]  }
   0x2   :  { %174 = vmatpush3.bf16.msra.mxu0 %v198_v0 }
   0x3   :  { %175 = vmatprep.subr.bf16.mxu0 %v231_v1 }
   0x6   :  { %176 = vmatpush3.bf16.msra.mxu0 %v199_v2 }
   0x7   :  { %177 = vmatprep.subr.bf16.mxu0 %v231_v1 }
   0x8   :  { %8 = vsyncpa [#allocation3], 0  ;;  %v201_v4 = vld [vmem:[%s299_s1 + $0x18] sm:$0xff]   ;;  %v202_v5 = vld [vmem:[%s299_s1 + $0x20] sm:$0xff]   ;;  %s233_s5 = smov [#allocation2]  }
   0x9   :  { %v203_v6 = vld [vmem:[%s299_s1 + $0x28] sm:$0xff]   ;;  %v204_v7 = vld [vmem:[%s299_s1 + $0x30] sm:$0xff]   ;;  %v205_v8 = vld [vmem:[%s299_s1 + $0x38] sm:$0xff]   ;;  %s143_s6 = sshll.u32 %s233_s5, 4  ;;  %s144_s6 = int_to_ptr.vmem [resolvable:$true] %s143_s6 }
   0xa   :  { %178 = vmatpush3.bf16.msra.mxu0 %v200_v3  ;;  %v206_v9 = vld [vmem:[%s298_s0] sm:$0xff]   ;;  %s207_s1 = scalar_lea.vmem %s144_s6, 256  ;;  %p212_p1 = scmp.lt.s32.totalorder %s144_s6, %s144_s6 }
   0xb   :  { %179 = vmatprep.subr.bf16.mxu0 %v231_v1  ;;  %v154_v10 = vld [vmem:[%s300_s2] ss:$0 sm:$0xff]  ;;  %p208_p0 = scmp.ne.s32.totalorder %s144_s6, %s207_s1  ;;  %p213_p2 = scmp.lt.s32.totalorder %s207_s1, %s207_s1 }
   0xd   :  { %p214_p3 = por %p213_p2, %p212_p1 }
   0xe   :  { %180 = vmatpush3.bf16.msra.mxu0 %v201_v4 }
   0xf   :  { %181 = vmatprep.subr.bf16.mxu0 %v231_v1  ;;  %p215_p4 = pnand %p214_p3, %p208_p0 }
  0x12   :  { %182 = vmatpush3.bf16.msra.mxu0 %v202_v5 }
  0x13   :  { %183 = vmatprep.subr.bf16.mxu0 %v231_v1 }
  0x16   :  { %184 = vmatpush3.bf16.msra.mxu0 %v203_v6 }
  0x17   :  { %185 = vmatprep.subr.bf16.mxu0 %v231_v1 }
  0x1a   :  { %186 = vmatpush3.bf16.msra.mxu0 %v204_v7 }
  0x1b   :  { %187 = vmatprep.subr.bf16.mxu0 %v231_v1 }
  0x1e   :  { %188 = vmatpush3.bf16.msra.mxu0 %v205_v8 }
  0x21   :  { %190 = vmatmul.mubr.bf16.vlgmr.msra.gmra.mrb[0].mxu0 %v206_v9 }
  0xf4   :  { %v129_v11 = vpop.f32.mrb[0].mxu0 }
  0xf5   :  { %v130_v12 = vadd.f32 %v154_v10, %v129_v11  ;;  %v191_v13 = vpop.f32.mrb[1].mxu0 }
  0xf6   :  { %v132_v14 = vpop.f32.mrb[2].mxu0 }
  0xf7   :  { %136 = vst [vmem:[#allocation2] sm:$0xff] %v130_v12  ;;  %v133_v15 = vadd.f32 %v154_v10, %v132_v14  ;;  %v192_v16 = vpop.f32.mrb[3].mxu0 }
  0xf9   :  { %137 = vst [vmem:[#allocation2 + $0x8] sm:$0xff] %v133_v15 }
  0xfa   :  { %218 = shalt.err (!%p215_p4)
}
  0xfb   :  { %s219_s7 = scalar_lea.hbm %s301_s3, 256 }
  0xfc   :  { %p220_p5 = scmp.ne.s32.totalorder %s301_s3, %s219_s7  ;;  %p223_p6 = scmp.lt.u32.totalorder %s219_s7, %s301_s3 }
  0xfe   :  { %p225_p7 = pnand %p223_p6, %p220_p5 }
 0x100   :  { %228 = shalt.err (!%p225_p7)
}
 0x101   :  { %s234_s12 = smov 128   ;;  %s235_s13 = smov 8  }
 0x102   :  { %149 = dma.vmem_to_hbm [thread:$0]  %s144_s6, 256, %s301_s3, [#allocation3], %s234_s12, %s234_s12, %s235_s13  }
 0x103   :  { %229 = dma.done.wait [#allocation3], 256  }
 0x104   :  { %230 = vsyncadd [#allocation3], 4294967040 }
 0x105   :  { %153 = vsyncpa [#allocation3], 1 }

// kernel: rnn_model_forward.3
= control target key start
LH: loop header
LB: loop body
LE: loop exit
PB: predicated region body
PF: predicated region fallthrough
CT: control target
= control target key end

     0   :  { %14 = vsyncpa [#allocation6], 0  ;;  %s4317_s0 = inlined_call_operand.vmem [shape: bf16[64,128], index: 0, kind: input, shape index: {}]   ;;  %s4318_s1 = inlined_call_operand.hbm [shape: bf16[128,512], index: 1, kind: input, shape index: {}]   ;;  %s4319_s2 = inlined_call_operand.hbm [shape: bf16[128,512], index: 2, kind: input, shape index: {}]   ;;  %s4320_s3 = inlined_call_operand.vmem [shape: f32[1,512], index: 3, kind: input, shape index: {}]   ;;  %s4321_s4 = inlined_call_operand.vmem [shape: bf16[8,128], index: 4, kind: input, shape index: {}]   ;;  %s4322_s5 = inlined_call_operand.vmem [shape: f32[8,128], index: 5, kind: input, shape index: {}]   ;;  %s4323_s6 = inlined_call_operand.vmem [shape: bf16[64,128], index: 6, kind: output, shape index: {0}]   ;;  %s4324_s7 = inlined_call_operand.vmem [shape: f32[8,128], index: 7, kind: output, shape index: {1}]   ;;  %s4325_s8 = inlined_call_operand.vmem [shape: f32[8,128], index: 8, kind: output, shape index: {2}]  }
   0x1   :  { %15 = vsyncpa [#allocation8], 0  ;;  %s3650_s27 = smov [#allocation5]   ;;  %s3602_s9 = scalar_lea.hbm %s4318_s1, 4096 }
   0x2   :  { %s23_s28 = sshll.u32 %s3650_s27, 4  ;;  %p3603_p0 = scmp.ne.s32.totalorder %s4318_s1, %s3602_s9  ;;  %s24_s28 = int_to_ptr.vmem [resolvable:$true] %s23_s28 }
   0x3   :  { %p3606_p1 = scmp.lt.u32.totalorder %s3602_s9, %s4318_s1 }
   0x5   :  { %p3608_p2 = pnand %p3606_p1, %p3603_p0 }
   0x7   :  { %3611 = shalt.err (!%p3608_p2)
}
   0x8   :  { %s3612_s14 = scalar_lea.vmem %s24_s28, 4096  ;;  %p3617_p4 = scmp.lt.s32.totalorder %s24_s28, %s24_s28 }
   0x9   :  { %p3613_p3 = scmp.ne.s32.totalorder %s24_s28, %s3612_s14  ;;  %p3618_p5 = scmp.lt.s32.totalorder %s3612_s14, %s3612_s14 }
   0xb   :  { %p3619_p6 = por %p3618_p5, %p3617_p4 }
   0xd   :  { %p3620_p7 = pnand %p3619_p6, %p3613_p3 }
   0xf   :  { %3623 = shalt.err (!%p3620_p7)
}
  0x10   :  { %s3651_s15 = smov 256   ;;  %s3652_s16 = smov 16  }
  0x11   :  { %29 = dma.hbm_to_vmem [thread:$0]  %s4318_s1, 4096, %s24_s28, [#allocation6], %s3651_s15, %s3651_s15, %s3652_s16  }
  0x12   :  { %s3653_s19 = smov [#allocation7]   ;;  %s3624_s23 = scalar_lea.hbm %s4319_s2, 4096 }
  0x13   :  { %s35_s20 = sshll.u32 %s3653_s19, 4  ;;  %p3625_p8 = scmp.ne.s32.totalorder %s4319_s2, %s3624_s23  ;;  %s36_s20 = int_to_ptr.vmem [resolvable:$true] %s35_s20 }
  0x14   :  { %p3628_p9 = scmp.lt.u32.totalorder %s3624_s23, %s4319_s2 }
  0x16   :  { %p3630_p10 = pnand %p3628_p9, %p3625_p8 }
  0x18   :  { %3633 = shalt.err (!%p3630_p10)
}
  0x19   :  { %s3634_s29 = scalar_lea.vmem %s36_s20, 4096  ;;  %p3639_p12 = scmp.lt.s32.totalorder %s36_s20, %s36_s20 }
  0x1a   :  { %p3635_p11 = scmp.ne.s32.totalorder %s36_s20, %s3634_s29  ;;  %p3640_p13 = scmp.lt.s32.totalorder %s3634_s29, %s3634_s29 }
  0x1c   :  { %p3641_p0 = por %p3640_p13, %p3639_p12 }
  0x1e   :  { %p3642_p1 = pnand %p3641_p0, %p3635_p11 }
  0x20   :  { %3645 = shalt.err (!%p3642_p1)
}
  0x21   :  { %41 = dma.hbm_to_vmem [thread:$0]  %s4319_s2, 4096, %s36_s20, [#allocation8], %s3651_s15, %s3651_s15, %s3652_s16  }
  0x22   :  { %3646 = dma.done.wait [#allocation6], 4096  }
  0x23   :  { %3647 = vsyncadd [#allocation6], 4294963200 }
  0x24   :  { %3648 = dma.done.wait [#allocation8], 4096  }
  0x25   :  { %3649 = vsyncadd [#allocation8], 4294963200  ;;  %v4326_v0 = vmov 0   ;;  %v3326_v1 = vld [vmem:[#allocation5 + $0x4] ss:$16 sps:$4 sm:$0xff]   ;;  %v3374_v35 = vld [vmem:[%s4317_s0] sm:$0xff]  }
  0x26   :  { %341 = vmatprep.mubr.bf16.mxu0 %v4326_v0  ;;  %414 = vmatprep.mubr.bf16.mxu1 %v4326_v0  ;;  %v3328_v2 = vld [vmem:[#allocation5 + $0xc] ss:$16 sps:$4 sm:$0xff]   ;;  %v3330_v3 = vld [vmem:[#allocation5] ss:$16 sps:$4 sm:$0xff]   ;;  %v3331_v4 = vld [vmem:[#allocation5 + $0x8] ss:$16 sps:$4 sm:$0xff]  }
  0x27   :  { %309 = vmatprep.subr.bf16.mxu0 %v3326_v1  ;;  %382 = vmatprep.subr.bf16.mxu1 %v3328_v2  ;;  %v3332_v5 = vld [vmem:[#allocation5 + $0x24] ss:$16 sps:$4 sm:$0xff]   ;;  %v3334_v6 = vld [vmem:[#allocation5 + $0x2c] ss:$16 sps:$4 sm:$0xff]   ;;  %v3336_v7 = vld [vmem:[#allocation5 + $0x20] ss:$16 sps:$4 sm:$0xff]  }
  0x28   :  { %310 = vmatpush1.bf16.msra.mxu0 %v3330_v3  ;;  %383 = vmatpush1.bf16.msra.mxu1 %v3331_v4  ;;  %v3337_v8 = vld [vmem:[#allocation5 + $0x28] ss:$16 sps:$4 sm:$0xff]   ;;  %v3338_v9 = vld [vmem:[#allocation5 + $0x44] ss:$16 sps:$4 sm:$0xff]   ;;  %v3340_v10 = vld [vmem:[#allocation5 + $0x4c] ss:$16 sps:$4 sm:$0xff]  }
  0x29   :  { %311 = vmatprep.subr.bf16.mxu0 %v3332_v5  ;;  %384 = vmatprep.subr.bf16.mxu1 %v3334_v6  ;;  %v3342_v11 = vld [vmem:[#allocation5 + $0x40] ss:$16 sps:$4 sm:$0xff]   ;;  %v3343_v12 = vld [vmem:[#allocation5 + $0x48] ss:$16 sps:$4 sm:$0xff]   ;;  %v3344_v13 = vld [vmem:[#allocation5 + $0x64] ss:$16 sps:$4 sm:$0xff]  }
  0x2a   :  { %v3346_v14 = vld [vmem:[#allocation5 + $0x6c] ss:$16 sps:$4 sm:$0xff]   ;;  %v3348_v15 = vld [vmem:[#allocation5 + $0x60] ss:$16 sps:$4 sm:$0xff]   ;;  %v3349_v16 = vld [vmem:[#allocation5 + $0x68] ss:$16 sps:$4 sm:$0xff]  }
  0x2b   :  { %v3350_v17 = vld [vmem:[#allocation5 + $0x84] ss:$16 sps:$4 sm:$0xff]   ;;  %v3352_v18 = vld [vmem:[#allocation5 + $0x8c] ss:$16 sps:$4 sm:$0xff]   ;;  %v3354_v19 = vld [vmem:[#allocation5 + $0x80] ss:$16 sps:$4 sm:$0xff]  }
  0x2c   :  { %312 = vmatpush1.bf16.msra.mxu0 %v3336_v7  ;;  %385 = vmatpush1.bf16.msra.mxu1 %v3337_v8  ;;  %v3355_v20 = vld [vmem:[#allocation5 + $0x88] ss:$16 sps:$4 sm:$0xff]   ;;  %v3356_v21 = vld [vmem:[#allocation5 + $0xa4] ss:$16 sps:$4 sm:$0xff]   ;;  %v3358_v22 = vld [vmem:[#allocation5 + $0xac] ss:$16 sps:$4 sm:$0xff]   ;;  %v105_v8 = vlaneseq }
  0x2d   :  { %313 = vmatprep.subr.bf16.mxu0 %v3338_v9  ;;  %386 = vmatprep.subr.bf16.mxu1 %v3340_v10  ;;  %v3360_v23 = vld [vmem:[#allocation5 + $0xa0] ss:$16 sps:$4 sm:$0xff]   ;;  %v3361_v24 = vld [vmem:[#allocation5 + $0xa8] ss:$16 sps:$4 sm:$0xff]   ;;  %v3362_v25 = vld [vmem:[#allocation5 + $0xc4] ss:$16 sps:$4 sm:$0xff]  }
  0x2e   :  { %v3364_v26 = vld [vmem:[#allocation5 + $0xcc] ss:$16 sps:$4 sm:$0xff]   ;;  %v3366_v27 = vld [vmem:[#allocation5 + $0xc0] ss:$16 sps:$4 sm:$0xff]   ;;  %v3367_v28 = vld [vmem:[#allocation5 + $0xc8] ss:$16 sps:$4 sm:$0xff]  }
  0x2f   :  { %v3368_v29 = vld [vmem:[#allocation5 + $0xe4] ss:$16 sps:$4 sm:$0xff]   ;;  %v3370_v30 = vld [vmem:[#allocation5 + $0xec] ss:$16 sps:$4 sm:$0xff]   ;;  %v3372_v31 = vld [vmem:[#allocation5 + $0xe0] ss:$16 sps:$4 sm:$0xff]  }
  0x30   :  { %314 = vmatpush1.bf16.msra.mxu0 %v3342_v11  ;;  %387 = vmatpush1.bf16.msra.mxu1 %v3343_v12  ;;  %v3373_v32 = vld [vmem:[#allocation5 + $0xe8] ss:$16 sps:$4 sm:$0xff]   ;;  %v3726_v33 = vld [vmem:[#allocation7 + $0x4] ss:$16 sps:$4 sm:$0xff]   ;;  %v3728_v34 = vld [vmem:[#allocation7 + $0xc] ss:$16 sps:$4 sm:$0xff]  }
  0x31   :  { %315 = vmatprep.subr.bf16.mxu0 %v3344_v13  ;;  %388 = vmatprep.subr.bf16.mxu1 %v3346_v14  ;;  %v3733_v36 = vld [vmem:[#allocation7] ss:$16 sps:$4 sm:$0xff]   ;;  %v3735_v37 = vld [vmem:[#allocation7 + $0x8] ss:$16 sps:$4 sm:$0xff]   ;;  %v3739_v38 = vld [vmem:[#allocation7 + $0x24] ss:$16 sps:$4 sm:$0xff]  }
  0x32   :  { %v3741_v39 = vld [vmem:[#allocation7 + $0x2c] ss:$16 sps:$4 sm:$0xff]   ;;  %v3743_v40 = vld [vmem:[#allocation7 + $0x20] ss:$16 sps:$4 sm:$0xff]   ;;  %v3747_v41 = vld [vmem:[#allocation7 + $0x28] ss:$16 sps:$4 sm:$0xff]  }
  0x33   :  { %v3751_v42 = vld [vmem:[#allocation7 + $0x44] ss:$16 sps:$4 sm:$0xff]   ;;  %v3753_v43 = vld [vmem:[#allocation7 + $0x4c] ss:$16 sps:$4 sm:$0xff]   ;;  %v3760_v45 = vld [vmem:[#allocation7 + $0x40] ss:$16 sps:$4 sm:$0xff]  }
  0x34   :  { %316 = vmatpush1.bf16.msra.mxu0 %v3348_v15  ;;  %389 = vmatpush1.bf16.msra.mxu1 %v3349_v16  ;;  %v3387_v44 = vld [vmem:[%s4317_s0 + $0x8] sm:$0xff]   ;;  %v3770_v48 = vld [vmem:[#allocation7 + $0x6c] ss:$16 sps:$4 sm:$0xff]   ;;  %v3772_v49 = vld [vmem:[#allocation7 + $0x60] ss:$16 sps:$4 sm:$0xff]   ;;  %v106_v9 = vshrl.u32 %v105_v8, 7 }
  0x35   :  { %317 = vmatprep.subr.bf16.mxu0 %v3350_v17  ;;  %390 = vmatprep.subr.bf16.mxu1 %v3352_v18  ;;  %v3762_v46 = vld [vmem:[#allocation7 + $0x48] ss:$16 sps:$4 sm:$0xff]   ;;  %v3766_v47 = vld [vmem:[#allocation7 + $0x64] ss:$16 sps:$4 sm:$0xff]   ;;  %v3400_v52 = vld [vmem:[%s4317_s0 + $0x10] sm:$0xff]  }
  0x36   :  { %v3774_v50 = vld [vmem:[#allocation7 + $0x68] ss:$16 sps:$4 sm:$0xff]   ;;  %v3778_v51 = vld [vmem:[#allocation7 + $0x84] ss:$16 sps:$4 sm:$0xff]   ;;  %v3785_v53 = vld [vmem:[#allocation7 + $0x8c] ss:$16 sps:$4 sm:$0xff]  }
  0x37   :  { %v3789_v54 = vld [vmem:[#allocation7 + $0x80] ss:$16 sps:$4 sm:$0xff]   ;;  %v3791_v55 = vld [vmem:[#allocation7 + $0x88] ss:$16 sps:$4 sm:$0xff]   ;;  %v59_v56 = vld [vmem:[%s4321_s4] sm:$0xf] }
  0x38   :  { %318 = vmatpush1.bf16.msra.mxu0 %v3354_v19  ;;  %391 = vmatpush1.bf16.msra.mxu1 %v3355_v20  ;;  %v3796_v57 = vld [vmem:[#allocation7 + $0xa4] ss:$16 sps:$4 sm:$0xff]   ;;  %v3798_v58 = vld [vmem:[#allocation7 + $0xac] ss:$16 sps:$4 sm:$0xff]   ;;  %60 = vst [vmem:[#allocation3] sm:$0xf] %v59_v56 }
  0x39   :  { %319 = vmatprep.subr.bf16.mxu0 %v3356_v21  ;;  %392 = vmatprep.subr.bf16.mxu1 %v3358_v22  ;;  %v3804_v59 = vld [vmem:[#allocation7 + $0xa0] ss:$16 sps:$4 sm:$0xff]   ;;  %v3806_v60 = vld [vmem:[#allocation7 + $0xa8] ss:$16 sps:$4 sm:$0xff]   ;;  %v3808_v61 = vld [vmem:[#allocation7 + $0xc4] ss:$16 sps:$4 sm:$0xff]  }
  0x3a   :  { %v3810_v62 = vld [vmem:[#allocation7 + $0xcc] ss:$16 sps:$4 sm:$0xff]   ;;  %v3413_v63 = vld [vmem:[%s4317_s0 + $0x18] sm:$0xff]   ;;  %v3821_v1 = vld [vmem:[#allocation7 + $0xc0] ss:$16 sps:$4 sm:$0xff]   ;;  %v115_v10 = vsub.s32 2, %v106_v9 }
  0x3b   :  { %v3823_v2 = vld [vmem:[#allocation7 + $0xc8] ss:$16 sps:$4 sm:$0xff]   ;;  %v3825_v3 = vld [vmem:[#allocation7 + $0xe4] ss:$16 sps:$4 sm:$0xff]   ;;  %v3827_v4 = vld [vmem:[#allocation7 + $0xec] ss:$16 sps:$4 sm:$0xff]  }
  0x3c   :  { %320 = vmatpush1.bf16.msra.mxu0 %v3360_v23  ;;  %393 = vmatpush1.bf16.msra.mxu1 %v3361_v24  ;;  %v3835_v5 = vld [vmem:[#allocation7 + $0xe0] ss:$16 sps:$4 sm:$0xff]   ;;  %v3837_v6 = vld [vmem:[#allocation7 + $0xe8] ss:$16 sps:$4 sm:$0xff]   ;;  %v119_v11 = vsub.s32 3, %v106_v9  ;;  %v107_v12 = vsub.s32 0, %v106_v9 }
  0x3d   :  { %321 = vmatprep.subr.bf16.mxu0 %v3362_v25  ;;  %394 = vmatprep.subr.bf16.mxu1 %v3364_v26  ;;  %v103_v13 = vld [vmem:[%s4320_s3] sm:$0xf]  ;;  %v111_v14 = vsub.s32 1, %v106_v9 }
  0x3e   :  { %v3884_v15 = vrot.slane %v103_v13, %v115_v10  ;;  %v3890_v18 = vrot.slane %v103_v13, %v119_v11  ;;  %v108_v19 = vrot.slane %v103_v13, %v107_v12 }
  0x3f   :  { %v491_v7 = vld [vmem:[#allocation3] sm:$0xf]  ;;  %v112_v22 = vrot.slane %v103_v13, %v111_v14 }
  0x40   :  { %322 = vmatpush1.bf16.msra.mxu0 %v3366_v27  ;;  %395 = vmatpush1.bf16.msra.mxu1 %v3367_v28 }
  0x41   :  { %323 = vmatprep.subr.bf16.mxu0 %v3368_v29  ;;  %396 = vmatprep.subr.bf16.mxu1 %v3370_v30 }
  0x44   :  { %324 = vmatpush1.bf16.msra.mxu0 %v3372_v31  ;;  %397 = vmatpush1.bf16.msra.mxu1 %v3373_v32 }
  0x45   :  { %684 = vmatprep.subr.bf16.mxu0 %v3726_v33  ;;  %725 = vmatprep.subr.bf16.mxu1 %v3728_v34 }
  0x47   :  { %342 = vmatmul.mubr.bf16.vlgmr.msra.gmra.mrb[0].mxu0 %v3374_v35  ;;  %415 = vmatmul.mubr.bf16.vlgmr.msra.gmra.mrb[0].mxu1 %v3374_v35 }
  0x48   :  { %685 = vmatpush1.bf16.msra.mxu0 %v3733_v36  ;;  %726 = vmatpush1.bf16.msra.mxu1 %v3735_v37 }
  0x49   :  { %686 = vmatprep.subr.bf16.mxu0 %v3739_v38  ;;  %727 = vmatprep.subr.bf16.mxu1 %v3741_v39 }
  0x4a   :  { %351 = vmatprep.mubr.bf16.mxu0 %v4326_v0  ;;  %424 = vmatprep.mubr.bf16.mxu1 %v4326_v0 }
  0x4c   :  { %687 = vmatpush1.bf16.msra.mxu0 %v3743_v40  ;;  %728 = vmatpush1.bf16.msra.mxu1 %v3747_v41 }
  0x4d   :  { %688 = vmatprep.subr.bf16.mxu0 %v3751_v42  ;;  %729 = vmatprep.subr.bf16.mxu1 %v3753_v43 }
  0x4f   :  { %352 = vmatmul.mubr.bf16.gmra.mrb[4].mxu0 %v3387_v44  ;;  %425 = vmatmul.mubr.bf16.gmra.mrb[4].mxu1 %v3387_v44 }
  0x50   :  { %689 = vmatpush1.bf16.msra.mxu0 %v3760_v45  ;;  %730 = vmatpush1.bf16.msra.mxu1 %v3762_v46 }
  0x51   :  { %690 = vmatprep.subr.bf16.mxu0 %v3766_v47  ;;  %731 = vmatprep.subr.bf16.mxu1 %v3770_v48 }
  0x52   :  { %361 = vmatprep.mubr.bf16.mxu0 %v4326_v0  ;;  %434 = vmatprep.mubr.bf16.mxu1 %v4326_v0 }
  0x54   :  { %691 = vmatpush1.bf16.msra.mxu0 %v3772_v49  ;;  %732 = vmatpush1.bf16.msra.mxu1 %v3774_v50 }
  0x55   :  { %692 = vmatprep.subr.bf16.mxu0 %v3778_v51  ;;  %733 = vmatprep.subr.bf16.mxu1 %v3785_v53 }
  0x57   :  { %362 = vmatmul.mubr.bf16.gmra.mrb[8].mxu0 %v3400_v52  ;;  %435 = vmatmul.mubr.bf16.gmra.mrb[8].mxu1 %v3400_v52 }
  0x58   :  { %693 = vmatpush1.bf16.msra.mxu0 %v3789_v54  ;;  %734 = vmatpush1.bf16.msra.mxu1 %v3791_v55 }
  0x59   :  { %694 = vmatprep.subr.bf16.mxu0 %v3796_v57  ;;  %735 = vmatprep.subr.bf16.mxu1 %v3798_v58 }
  0x5a   :  { %371 = vmatprep.mubr.bf16.mxu0 %v4326_v0  ;;  %444 = vmatprep.mubr.bf16.mxu1 %v4326_v0 }
  0x5c   :  { %695 = vmatpush1.bf16.msra.mxu0 %v3804_v59  ;;  %736 = vmatpush1.bf16.msra.mxu1 %v3806_v60 }
  0x5d   :  { %696 = vmatprep.subr.bf16.mxu0 %v3808_v61  ;;  %737 = vmatprep.subr.bf16.mxu1 %v3810_v62 }
  0x5f   :  { %372 = vmatmul.mubr.bf16.gmra.mrb[12].mxu0 %v3413_v63  ;;  %445 = vmatmul.mubr.bf16.gmra.mrb[12].mxu1 %v3413_v63 }
  0x60   :  { %697 = vmatpush1.bf16.msra.mxu0 %v3821_v1  ;;  %738 = vmatpush1.bf16.msra.mxu1 %v3823_v2 }
  0x61   :  { %698 = vmatprep.subr.bf16.mxu0 %v3825_v3  ;;  %739 = vmatprep.subr.bf16.mxu1 %v3827_v4 }
  0x62   :  { %716 = vmatprep.mubr.bf16.mxu0 %v4326_v0  ;;  %757 = vmatprep.mubr.bf16.mxu1 %v4326_v0 }
  0x64   :  { %699 = vmatpush1.bf16.msra.mxu0 %v3835_v5  ;;  %740 = vmatpush1.bf16.msra.mxu1 %v3837_v6 }
  0x65   :  { %996 = vmatprep.subr.bf16.mxu0 %v3726_v33  ;;  %1037 = vmatprep.subr.bf16.mxu1 %v3728_v34 }
  0x67   :  { %717 = vmatmul.mubr.bf16.vlgmr.msra.gmra.mrb[16].mxu0 %v491_v7  ;;  %758 = vmatmul.mubr.bf16.vlgmr.msra.gmra.mrb[16].mxu1 %v491_v7 }
  0x68   :  { %997 = vmatpush1.bf16.msra.mxu0 %v3733_v36  ;;  %1038 = vmatpush1.bf16.msra.mxu1 %v3735_v37 }
  0x69   :  { %998 = vmatprep.subr.bf16.mxu0 %v3739_v38  ;;  %1039 = vmatprep.subr.bf16.mxu1 %v3741_v39 }
  0x6a   :  { %1028 = vmatprep.mubr.bf16.mxu0 %v4326_v0  ;;  %1069 = vmatprep.mubr.bf16.mxu1 %v4326_v0 }
  0x6c   :  { %999 = vmatpush1.bf16.msra.mxu0 %v3743_v40  ;;  %1040 = vmatpush1.bf16.msra.mxu1 %v3747_v41 }
  0x6d   :  { %1000 = vmatprep.subr.bf16.mxu0 %v3751_v42  ;;  %1041 = vmatprep.subr.bf16.mxu1 %v3753_v43 }
  0x70   :  { %1001 = vmatpush1.bf16.msra.mxu0 %v3760_v45  ;;  %1042 = vmatpush1.bf16.msra.mxu1 %v3762_v46 }
  0x71   :  { %1002 = vmatprep.subr.bf16.mxu0 %v3766_v47  ;;  %1043 = vmatprep.subr.bf16.mxu1 %v3770_v48 }
  0x74   :  { %1003 = vmatpush1.bf16.msra.mxu0 %v3772_v49  ;;  %1044 = vmatpush1.bf16.msra.mxu1 %v3774_v50 }
  0x75   :  { %1004 = vmatprep.subr.bf16.mxu0 %v3778_v51  ;;  %1045 = vmatprep.subr.bf16.mxu1 %v3785_v53 }
  0x78   :  { %1005 = vmatpush1.bf16.msra.mxu0 %v3789_v54  ;;  %1046 = vmatpush1.bf16.msra.mxu1 %v3791_v55 }
  0x79   :  { %1006 = vmatprep.subr.bf16.mxu0 %v3796_v57  ;;  %1047 = vmatprep.subr.bf16.mxu1 %v3798_v58 }
  0x7c   :  { %1007 = vmatpush1.bf16.msra.mxu0 %v3804_v59  ;;  %1048 = vmatpush1.bf16.msra.mxu1 %v3806_v60 }
  0x7d   :  { %1008 = vmatprep.subr.bf16.mxu0 %v3808_v61  ;;  %1049 = vmatprep.subr.bf16.mxu1 %v3810_v62 }
  0x80   :  { %1009 = vmatpush1.bf16.msra.mxu0 %v3821_v1  ;;  %1050 = vmatpush1.bf16.msra.mxu1 %v3823_v2 }
  0x81   :  { %1010 = vmatprep.subr.bf16.mxu0 %v3825_v3  ;;  %1051 = vmatprep.subr.bf16.mxu1 %v3827_v4 }
  0x84   :  { %1011 = vmatpush1.bf16.msra.mxu0 %v3835_v5  ;;  %1052 = vmatpush1.bf16.msra.mxu1 %v3837_v6 }
  0x85   :  { %1308 = vmatprep.subr.bf16.mxu0 %v3726_v33  ;;  %1349 = vmatprep.subr.bf16.mxu1 %v3728_v34 }
 0x11a   :  { %v3886_v16 = vpop.f32.mrb[0].mxu0  ;;  %v3888_v17 = vpop.f32.mrb[0].mxu1 }
 0x11b   :  { %v345_v20 = vpop.f32.mrb[1].mxu0  ;;  %v418_v21 = vpop.f32.mrb[1].mxu1 }
 0x11c   :  { %v347_v23 = vpop.f32.mrb[2].mxu0  ;;  %v420_v24 = vpop.f32.mrb[2].mxu1 }
 0x11d   :  { %v3892_v25 = vadd.f32 %v347_v23, %v108_v19  ;;  %v349_v26 = vpop.f32.mrb[3].mxu0  ;;  %v3895_v27 = vadd.f32 %v420_v24, %v3884_v15  ;;  %v422_v28 = vpop.f32.mrb[3].mxu1 }
 0x11e   :  { %v3897_v29 = vadd.f32 %v349_v26, %v112_v22  ;;  %v3900_v30 = vadd.f32 %v422_v28, %v3890_v18 }
 0x122   :  { %v353_v31 = vpop.f32.mrb[4].mxu0  ;;  %v426_v32 = vpop.f32.mrb[4].mxu1 }
 0x123   :  { %v3902_v35 = vadd.f32 %v353_v31, %v108_v19  ;;  %v355_v44 = vpop.f32.mrb[5].mxu0  ;;  %v3905_v52 = vadd.f32 %v426_v32, %v3884_v15  ;;  %v428_v56 = vpop.f32.mrb[5].mxu1 }
 0x124   :  { %v3907_v63 = vadd.f32 %v355_v44, %v112_v22  ;;  %v357_v7 = vpop.f32.mrb[6].mxu0  ;;  %v3910_v8 = vadd.f32 %v428_v56, %v3890_v18  ;;  %v430_v9 = vpop.f32.mrb[6].mxu1 }
 0x125   :  { %v3912_v10 = vadd.f32 %v357_v7, %v108_v19  ;;  %v359_v11 = vpop.f32.mrb[7].mxu0  ;;  %v3915_v12 = vadd.f32 %v430_v9, %v3884_v15  ;;  %v432_v13 = vpop.f32.mrb[7].mxu1 }
 0x126   :  { %4328 = vst [vmem:[#allocation11_spill] sm:$0xff] %v3910_v8  ;;  %v3917_v14 = vadd.f32 %v359_v11, %v112_v22  ;;  %v3920_v23 = vadd.f32 %v432_v13, %v3890_v18 }
 0x127   :  { %4329 = vst [vmem:[#allocation12_spill] sm:$0xff] %v3912_v10  ;;  %4330 = vst [vmem:[#allocation13_spill] sm:$0xff] %v3915_v12 }
 0x128   :  { %4331 = vst [vmem:[#allocation14_spill] sm:$0xff] %v3917_v14  ;;  %4332 = vst [vmem:[#allocation15_spill] sm:$0xff] %v3920_v23 }
 0x12a   :  { %v363_v24 = vpop.f32.mrb[8].mxu0  ;;  %v436_v26 = vpop.f32.mrb[8].mxu1 }
 0x12b   :  { %v3922_v28 = vadd.f32 %v363_v24, %v108_v19  ;;  %v365_v31 = vpop.f32.mrb[9].mxu0  ;;  %v3925_v32 = vadd.f32 %v436_v26, %v3884_v15  ;;  %v438_v44 = vpop.f32.mrb[9].mxu1 }
 0x12c   :  { %v3927_v56 = vadd.f32 %v365_v31, %v112_v22  ;;  %v367_v7 = vpop.f32.mrb[10].mxu0  ;;  %v3930_v9 = vadd.f32 %v438_v44, %v3890_v18  ;;  %v440_v11 = vpop.f32.mrb[10].mxu1 }
 0x12d   :  { %4333 = vst [vmem:[#allocation16_spill] sm:$0xff] %v3922_v28  ;;  %4334 = vst [vmem:[#allocation17_spill] sm:$0xff] %v3925_v32  ;;  %v3932_v0 = vadd.f32 %v367_v7, %v108_v19  ;;  %v369_v13 = vpop.f32.mrb[11].mxu0  ;;  %v3935_v23 = vadd.f32 %v440_v11, %v3884_v15  ;;  %v442_v24 = vpop.f32.mrb[11].mxu1 }
 0x12e   :  { %4335 = vst [vmem:[#allocation18_spill] sm:$0xff] %v3927_v56  ;;  %4336 = vst [vmem:[#allocation19_spill] sm:$0xff] %v3930_v9  ;;  %v3937_v28 = vadd.f32 %v369_v13, %v112_v22  ;;  %v3940_v26 = vadd.f32 %v442_v24, %v3890_v18 }
 0x12f   :  { %4337 = vst [vmem:[#allocation20_spill] sm:$0xff] %v3932_v0  ;;  %4338 = vst [vmem:[#allocation21_spill] sm:$0xff] %v3935_v23 }
 0x130   :  { %4339 = vst [vmem:[#allocation22_spill] sm:$0xff] %v3937_v28  ;;  %4340 = vst [vmem:[#allocation23_spill] sm:$0xff] %v3940_v26 }
 0x132   :  { %v373_v32 = vpop.f32.mrb[12].mxu0  ;;  %v446_v31 = vpop.f32.mrb[12].mxu1 }
 0x133   :  { %v3942_v56 = vadd.f32 %v373_v32, %v108_v19  ;;  %v375_v14 = vpop.f32.mrb[13].mxu0  ;;  %v3945_v44 = vadd.f32 %v446_v31, %v3884_v15  ;;  %v448_v7 = vpop.f32.mrb[13].mxu1 }
 0x134   :  { %v3947_v0 = vadd.f32 %v375_v14, %v112_v22  ;;  %v377_v9 = vpop.f32.mrb[14].mxu0  ;;  %v3950_v11 = vadd.f32 %v448_v7, %v3890_v18  ;;  %v450_v13 = vpop.f32.mrb[14].mxu1  ;;  %v344_v14 = vadd.f32 %v3886_v16, %v108_v19  ;;  %v346_v7 = vadd.f32 %v345_v20, %v112_v22 }
 0x135   :  { %4341 = vst [vmem:[#allocation24_spill] sm:$0xff] %v3942_v56  ;;  %4342 = vst [vmem:[#allocation25_spill] sm:$0xff] %v3945_v44  ;;  %v3952_v28 = vadd.f32 %v377_v9, %v108_v19  ;;  %v379_v24 = vpop.f32.mrb[15].mxu0  ;;  %v3955_v26 = vadd.f32 %v450_v13, %v3884_v15  ;;  %v452_v32 = vpop.f32.mrb[15].mxu1 }
 0x136   :  { %4343 = vst [vmem:[#allocation26_spill] sm:$0xff] %v3947_v0  ;;  %4344 = vst [vmem:[#allocation27_spill] sm:$0xff] %v3950_v11  ;;  %v3957_v56 = vadd.f32 %v379_v24, %v112_v22  ;;  %v3960_v31 = vadd.f32 %v452_v32, %v3890_v18  ;;  %v417_v0 = vadd.f32 %v3888_v17, %v3884_v15  ;;  %v61_v22 = vld [vmem:[%s4322_s5] sm:$0xff] }
 0x137   :  { %4345 = vst [vmem:[#allocation28_spill] sm:$0xff] %v3952_v28  ;;  %4346 = vst [vmem:[#allocation29_spill] sm:$0xff] %v3955_v26  ;;  %v419_v11 = vadd.f32 %v418_v21, %v3890_v18 }
 0x138   :  { %4347 = vst [vmem:[#allocation30_spill] sm:$0xff] %v3957_v56  ;;  %4348 = vst [vmem:[#allocation31_spill] sm:$0xff] %v3960_v31 }
 0x13a   :  { %v718_v9 = vpop.f32.mrb[16].mxu0  ;;  %v759_v28 = vpop.f32.mrb[16].mxu1 }
 0x13b   :  { %v766_v44 = vadd.f32 %v718_v9, %v344_v14  ;;  %v768_v23 = vadd.f32 %v759_v28, %v417_v0  ;;  %v720_v13 = vpop.f32.mrb[17].mxu0  ;;  %v761_v26 = vpop.f32.mrb[17].mxu1 }
 0x13c   :  { %v767_v12 = vadd.f32 %v720_v13, %v346_v7  ;;  %v769_v24 = vadd.f32 %v761_v26, %v419_v11  ;;  %v722_v56 = vpop.f32.mrb[18].mxu0  ;;  %v763_v10 = vpop.f32.mrb[18].mxu1  ;;  %v4349_v7 = vmov 0  }
 0x13d   :  { %v3073_v32 = vmul.f32 -1.442695, %v766_v44  ;;  %v723_v31 = vpop.f32.mrb[19].mxu0  ;;  %v764_v8 = vpop.f32.mrb[19].mxu1 }
 0x13e   :  { %v3074_v16 = vmul.f32 -1.442695, %v767_v12  ;;  %v3075_v15 = vmul.f32 -1.442695, %v769_v24 }
 0x13f   :  { %3474 = vpow2.f32 %v3073_v32 }
 0x140   :  { %3476 = vpow2.f32 %v3074_v16 }
 0x141   :  { %3478 = vpow2.f32 %v3075_v15 }
 0x142   :  { %3480 = vtanh.f32 %v768_v23 }
 0x149   :  { %v3475_v17 = vpop.eup %3474 }
 0x14a   :  { %v3477_v19 = vpop.eup %3476  ;;  %v773_v18 = vadd.f32 1.0, %v3475_v17 }
 0x14b   :  { %v779_v20 = vadd.f32 1.0, %v3477_v19  ;;  %v3479_v0 = vpop.eup %3478 }
 0x14c   :  { %3482 = vrcp.f32 %v773_v18  ;;  %v3481_v21 = vpop.eup %3480  ;;  %v786_v28 = vadd.f32 1.0, %v3479_v0 }
 0x14d   :  { %3484 = vrcp.f32 %v779_v20 }
 0x14e   :  { %3486 = vrcp.f32 %v786_v28 }
 0x156   :  { %v3483_v10 = vpop.eup %3482 }
 0x157   :  { %v3485_v8 = vpop.eup %3484  ;;  %v791_v12 = vmul.f32 %v3483_v10, %v3481_v21 }
 0x158   :  { %v790_v56 = vmul.f32 %v3485_v8, %v61_v22  ;;  %v3487_v23 = vpop.eup %3486 }
 0x15a   :  { %v3969_v26 = vadd.f32 %v791_v12, %v790_v56 }
 0x15c   :  { %3488 = vtanh.f32 %v3969_v26 }
 0x166   :  { %v3489_v44 = vpop.eup %3488 }
 0x167   :  { %v794_v11 = vmul.f32 %v3489_v44, %v3487_v23 }
 0x169   :  { %v795_v31 = vpack.c.bf16 %v794_v11, %v794_v11 }
 0x16b   :  { %797 = vst [vmem:[#allocation3] sm:$0xf] %v795_v31  ;;  %798 = vst [vmem:[%s4323_s6] sm:$0xf] %v795_v31 }
 0x172   :  { %v803_v14 = vld [vmem:[#allocation3] sm:$0xf] }
 0x173   :  { %1029 = vmatmul.mubr.bf16.vlgmr.msra.gmra.mrb[20].mxu0 %v803_v14  ;;  %1070 = vmatmul.mubr.bf16.vlgmr.msra.gmra.mrb[20].mxu1 %v803_v14 }
 0x174   :  { %1309 = vmatpush1.bf16.msra.mxu0 %v3733_v36  ;;  %1350 = vmatpush1.bf16.msra.mxu1 %v3735_v37 }
 0x175   :  { %1310 = vmatprep.subr.bf16.mxu0 %v3739_v38  ;;  %1351 = vmatprep.subr.bf16.mxu1 %v3741_v39 }
 0x176   :  { %1340 = vmatprep.mubr.bf16.mxu0 %v4349_v7  ;;  %1381 = vmatprep.mubr.bf16.mxu1 %v4349_v7 }
 0x178   :  { %1311 = vmatpush1.bf16.msra.mxu0 %v3743_v40  ;;  %1352 = vmatpush1.bf16.msra.mxu1 %v3747_v41 }
 0x179   :  { %1312 = vmatprep.subr.bf16.mxu0 %v3751_v42  ;;  %1353 = vmatprep.subr.bf16.mxu1 %v3753_v43 }
 0x17c   :  { %1313 = vmatpush1.bf16.msra.mxu0 %v3760_v45  ;;  %1354 = vmatpush1.bf16.msra.mxu1 %v3762_v46 }
 0x17d   :  { %1314 = vmatprep.subr.bf16.mxu0 %v3766_v47  ;;  %1355 = vmatprep.subr.bf16.mxu1 %v3770_v48 }
 0x180   :  { %1315 = vmatpush1.bf16.msra.mxu0 %v3772_v49  ;;  %1356 = vmatpush1.bf16.msra.mxu1 %v3774_v50 }
 0x181   :  { %1316 = vmatprep.subr.bf16.mxu0 %v3778_v51  ;;  %1357 = vmatprep.subr.bf16.mxu1 %v3785_v53 }
 0x184   :  { %1317 = vmatpush1.bf16.msra.mxu0 %v3789_v54  ;;  %1358 = vmatpush1.bf16.msra.mxu1 %v3791_v55 }
 0x185   :  { %1318 = vmatprep.subr.bf16.mxu0 %v3796_v57  ;;  %1359 = vmatprep.subr.bf16.mxu1 %v3798_v58 }
 0x188   :  { %1319 = vmatpush1.bf16.msra.mxu0 %v3804_v59  ;;  %1360 = vmatpush1.bf16.msra.mxu1 %v3806_v60 }
 0x189   :  { %1320 = vmatprep.subr.bf16.mxu0 %v3808_v61  ;;  %1361 = vmatprep.subr.bf16.mxu1 %v3810_v62 }
 0x18c   :  { %1321 = vmatpush1.bf16.msra.mxu0 %v3821_v1  ;;  %1362 = vmatpush1.bf16.msra.mxu1 %v3823_v2 }
 0x18d   :  { %1322 = vmatprep.subr.bf16.mxu0 %v3825_v3  ;;  %1363 = vmatprep.subr.bf16.mxu1 %v3827_v4 }
 0x190   :  { %1323 = vmatpush1.bf16.msra.mxu0 %v3835_v5  ;;  %1364 = vmatpush1.bf16.msra.mxu1 %v3837_v6 }
 0x191   :  { %1620 = vmatprep.subr.bf16.mxu0 %v3726_v33  ;;  %1661 = vmatprep.subr.bf16.mxu1 %v3728_v34 }
 0x246   :  { %v1030_v9 = vpop.f32.mrb[20].mxu0  ;;  %v1071_v13 = vpop.f32.mrb[20].mxu1 }
 0x247   :  { %v1078_v24 = vadd.f32 %v1030_v9, %v3892_v25  ;;  %v1080_v32 = vadd.f32 %v1071_v13, %v3895_v27  ;;  %v1032_v16 = vpop.f32.mrb[21].mxu0  ;;  %v1073_v15 = vpop.f32.mrb[21].mxu1 }
 0x248   :  { %v1079_v17 = vadd.f32 %v1032_v16, %v3897_v29  ;;  %v1081_v19 = vadd.f32 %v1073_v15, %v3900_v30  ;;  %v1034_v18 = vpop.f32.mrb[22].mxu0  ;;  %v1075_v20 = vpop.f32.mrb[22].mxu1  ;;  %v4069_v16 = vld [vmem:[#allocation7] ss:$16 sps:$4 sm:$0xff]   ;;  %v4071_v15 = vld [vmem:[#allocation7 + $0x8] ss:$16 sps:$4 sm:$0xff]  }
 0x249   :  { %v3108_v0 = vmul.f32 -1.442695, %v1078_v24  ;;  %v1035_v21 = vpop.f32.mrb[23].mxu0  ;;  %v1076_v22 = vpop.f32.mrb[23].mxu1  ;;  %v4081_v18 = vld [vmem:[#allocation7 + $0x20] ss:$16 sps:$4 sm:$0xff]  }
 0x24a   :  { %v3109_v33 = vmul.f32 -1.442695, %v1079_v17  ;;  %v3110_v34 = vmul.f32 -1.442695, %v1081_v19  ;;  %v4077_v17 = vld [vmem:[#allocation7 + $0x24] ss:$16 sps:$4 sm:$0xff]  }
 0x24b   :  { %3490 = vpow2.f32 %v3108_v0  ;;  %v4079_v19 = vld [vmem:[#allocation7 + $0x2c] ss:$16 sps:$4 sm:$0xff]   ;;  %v4083_v20 = vld [vmem:[#allocation7 + $0x28] ss:$16 sps:$4 sm:$0xff]   ;;  %v4089_v0 = vld [vmem:[#allocation7 + $0x44] ss:$16 sps:$4 sm:$0xff]  }
 0x24c   :  { %3492 = vpow2.f32 %v3109_v33  ;;  %v4091_v21 = vld [vmem:[#allocation7 + $0x4c] ss:$16 sps:$4 sm:$0xff]   ;;  %v4093_v22 = vld [vmem:[#allocation7 + $0x40] ss:$16 sps:$4 sm:$0xff]   ;;  %v4095_v33 = vld [vmem:[#allocation7 + $0x48] ss:$16 sps:$4 sm:$0xff]  }
 0x24d   :  { %3494 = vpow2.f32 %v3110_v34  ;;  %v4101_v34 = vld [vmem:[#allocation7 + $0x64] ss:$16 sps:$4 sm:$0xff]  }
 0x24e   :  { %3496 = vtanh.f32 %v1080_v32  ;;  %v4067_v32 = vld [vmem:[#allocation7 + $0xc] ss:$16 sps:$4 sm:$0xff]  }
 0x255   :  { %v3491_v10 = vpop.eup %3490 }
 0x256   :  { %v3493_v8 = vpop.eup %3492  ;;  %v1085_v25 = vadd.f32 1.0, %v3491_v10  ;;  %v4103_v10 = vld [vmem:[#allocation7 + $0x6c] ss:$16 sps:$4 sm:$0xff]  }
 0x257   :  { %v1091_v27 = vadd.f32 1.0, %v3493_v8  ;;  %v3495_v29 = vpop.eup %3494  ;;  %v4105_v8 = vld [vmem:[#allocation7 + $0x60] ss:$16 sps:$4 sm:$0xff]  }
 0x258   :  { %3498 = vrcp.f32 %v1085_v25  ;;  %v3497_v12 = vpop.eup %3496  ;;  %v1098_v23 = vadd.f32 1.0, %v3495_v29  ;;  %v4107_v25 = vld [vmem:[#allocation7 + $0x68] ss:$16 sps:$4 sm:$0xff]   ;;  %v4115_v29 = vld [vmem:[#allocation7 + $0x8c] ss:$16 sps:$4 sm:$0xff]  }
 0x259   :  { %3500 = vrcp.f32 %v1091_v27  ;;  %v4113_v27 = vld [vmem:[#allocation7 + $0x84] ss:$16 sps:$4 sm:$0xff]  }
 0x25a   :  { %3502 = vrcp.f32 %v1098_v23  ;;  %v4129_v23 = vld [vmem:[#allocation7 + $0xa0] ss:$16 sps:$4 sm:$0xff]  }
 0x262   :  { %v3499_v30 = vpop.eup %3498 }
 0x263   :  { %v3501_v28 = vpop.eup %3500  ;;  %v1103_v56 = vmul.f32 %v3499_v30, %v3497_v12  ;;  %v4117_v12 = vld [vmem:[#allocation7 + $0x80] ss:$16 sps:$4 sm:$0xff]   ;;  %v4119_v30 = vld [vmem:[#allocation7 + $0x88] ss:$16 sps:$4 sm:$0xff]  }
 0x264   :  { %v1102_v44 = vmul.f32 %v3501_v28, %v3969_v26  ;;  %v3503_v31 = vpop.eup %3502  ;;  %v4065_v26 = vld [vmem:[#allocation7 + $0x4] ss:$16 sps:$4 sm:$0xff]  }
 0x265   :  { %v4125_v28 = vld [vmem:[#allocation7 + $0xa4] ss:$16 sps:$4 sm:$0xff]  }
 0x266   :  { %v4014_v11 = vadd.f32 %v1103_v56, %v1102_v44  ;;  %v4127_v56 = vld [vmem:[#allocation7 + $0xac] ss:$16 sps:$4 sm:$0xff]   ;;  %v4131_v44 = vld [vmem:[#allocation7 + $0xa8] ss:$16 sps:$4 sm:$0xff]  }
 0x268   :  { %3504 = vtanh.f32 %v4014_v11 }
 0x272   :  { %v3505_v14 = vpop.eup %3504 }
 0x273   :  { %v1106_v9 = vmul.f32 %v3505_v14, %v3503_v31  ;;  %v4139_v31 = vld [vmem:[#allocation7 + $0xcc] ss:$16 sps:$4 sm:$0xff]   ;;  %v4141_v14 = vld [vmem:[#allocation7 + $0xc0] ss:$16 sps:$4 sm:$0xff]  }
 0x275   :  { %v1107_v13 = vpack.c.bf16 %v1106_v9, %v1106_v9  ;;  %v4143_v9 = vld [vmem:[#allocation7 + $0xc8] ss:$16 sps:$4 sm:$0xff]  }
 0x277   :  { %1109 = vst [vmem:[#allocation3] sm:$0xf] %v1107_v13  ;;  %1110 = vst [vmem:[%s4323_s6 + $0x4] sm:$0xf] %v1107_v13  ;;  %v4147_v13 = vld [vmem:[#allocation7 + $0xe4] ss:$16 sps:$4 sm:$0xff]  }
 0x27e   :  { %v1115_v24 = vld [vmem:[#allocation3] sm:$0xf] }
 0x27f   :  { %1341 = vmatmul.mubr.bf16.vlgmr.msra.gmra.mrb[24].mxu0 %v1115_v24  ;;  %1382 = vmatmul.mubr.bf16.vlgmr.msra.gmra.mrb[24].mxu1 %v1115_v24  ;;  %v4149_v24 = vld [vmem:[#allocation7 + $0xec] ss:$16 sps:$4 sm:$0xff]  }
 0x280   :  { %1621 = vmatpush1.bf16.msra.mxu0 %v3733_v36  ;;  %1662 = vmatpush1.bf16.msra.mxu1 %v3735_v37 }
 0x281   :  { %1622 = vmatprep.subr.bf16.mxu0 %v3739_v38  ;;  %1663 = vmatprep.subr.bf16.mxu1 %v3741_v39 }
 0x282   :  { %1652 = vmatprep.mubr.bf16.mxu0 %v4349_v7  ;;  %1693 = vmatprep.mubr.bf16.mxu1 %v4349_v7 }
 0x284   :  { %1623 = vmatpush1.bf16.msra.mxu0 %v3743_v40  ;;  %1664 = vmatpush1.bf16.msra.mxu1 %v3747_v41 }
 0x285   :  { %1624 = vmatprep.subr.bf16.mxu0 %v3751_v42  ;;  %1665 = vmatprep.subr.bf16.mxu1 %v3753_v43  ;;  %v4350_v43 = vld [vmem:[#allocation11_spill] sm:$0xff] }
 0x288   :  { %1625 = vmatpush1.bf16.msra.mxu0 %v3760_v45  ;;  %1666 = vmatpush1.bf16.msra.mxu1 %v3762_v46 }
 0x289   :  { %1626 = vmatprep.subr.bf16.mxu0 %v3766_v47  ;;  %1667 = vmatprep.subr.bf16.mxu1 %v3770_v48 }
 0x28c   :  { %1627 = vmatpush1.bf16.msra.mxu0 %v3772_v49  ;;  %1668 = vmatpush1.bf16.msra.mxu1 %v3774_v50 }
 0x28d   :  { %1628 = vmatprep.subr.bf16.mxu0 %v3778_v51  ;;  %1669 = vmatprep.subr.bf16.mxu1 %v3785_v53 }
 0x290   :  { %1629 = vmatpush1.bf16.msra.mxu0 %v3789_v54  ;;  %1670 = vmatpush1.bf16.msra.mxu1 %v3791_v55 }
 0x291   :  { %1630 = vmatprep.subr.bf16.mxu0 %v3796_v57  ;;  %1671 = vmatprep.subr.bf16.mxu1 %v3798_v58 }
 0x294   :  { %1631 = vmatpush1.bf16.msra.mxu0 %v3804_v59  ;;  %1672 = vmatpush1.bf16.msra.mxu1 %v3806_v60 }
 0x295   :  { %1632 = vmatprep.subr.bf16.mxu0 %v3808_v61  ;;  %1673 = vmatprep.subr.bf16.mxu1 %v3810_v62 }
 0x298   :  { %1633 = vmatpush1.bf16.msra.mxu0 %v3821_v1  ;;  %1674 = vmatpush1.bf16.msra.mxu1 %v3823_v2 }
 0x299   :  { %1634 = vmatprep.subr.bf16.mxu0 %v3825_v3  ;;  %1675 = vmatprep.subr.bf16.mxu1 %v3827_v4 }
 0x29c   :  { %1635 = vmatpush1.bf16.msra.mxu0 %v3835_v5  ;;  %1676 = vmatpush1.bf16.msra.mxu1 %v3837_v6 }
 0x29d   :  { %1932 = vmatprep.subr.bf16.mxu0 %v4065_v26  ;;  %1973 = vmatprep.subr.bf16.mxu1 %v4067_v32 }
 0x352   :  { %v1342_v36 = vpop.f32.mrb[24].mxu0  ;;  %v1383_v37 = vpop.f32.mrb[24].mxu1 }
 0x353   :  { %v1390_v38 = vadd.f32 %v1342_v36, %v3902_v35  ;;  %v1392_v39 = vadd.f32 %v1383_v37, %v3905_v52  ;;  %v1344_v40 = vpop.f32.mrb[25].mxu0  ;;  %v1385_v41 = vpop.f32.mrb[25].mxu1  ;;  %v4153_v36 = vld [vmem:[#allocation7 + $0xe0] ss:$16 sps:$4 sm:$0xff]   ;;  %v4155_v37 = vld [vmem:[#allocation7 + $0xe8] ss:$16 sps:$4 sm:$0xff]  }
 0x354   :  { %v1391_v42 = vadd.f32 %v1344_v40, %v3907_v63  ;;  %v1393_v45 = vadd.f32 %v1385_v41, %v4350_v43  ;;  %v1346_v46 = vpop.f32.mrb[26].mxu0  ;;  %v1387_v47 = vpop.f32.mrb[26].mxu1  ;;  %v4351_v40 = vld [vmem:[#allocation12_spill] sm:$0xff] }
 0x355   :  { %v3143_v48 = vmul.f32 -1.442695, %v1390_v38  ;;  %v1347_v49 = vpop.f32.mrb[27].mxu0  ;;  %v1388_v50 = vpop.f32.mrb[27].mxu1  ;;  %v4353_v47 = vld [vmem:[#allocation14_spill] sm:$0xff] }
 0x356   :  { %v3144_v51 = vmul.f32 -1.442695, %v1391_v42  ;;  %v3145_v53 = vmul.f32 -1.442695, %v1393_v45  ;;  %v4352_v42 = vld [vmem:[#allocation13_spill] sm:$0xff]  ;;  %v4354_v49 = vld [vmem:[#allocation15_spill] sm:$0xff] }
 0x357   :  { %3506 = vpow2.f32 %v3143_v48 }
 0x358   :  { %3508 = vpow2.f32 %v3144_v51 }
 0x359   :  { %3510 = vpow2.f32 %v3145_v53 }
 0x35a   :  { %3512 = vtanh.f32 %v1392_v39 }
 0x361   :  { %v3507_v54 = vpop.eup %3506 }
 0x362   :  { %v3509_v55 = vpop.eup %3508  ;;  %v1397_v57 = vadd.f32 1.0, %v3507_v54 }
 0x363   :  { %v1403_v58 = vadd.f32 1.0, %v3509_v55  ;;  %v3511_v59 = vpop.eup %3510 }
 0x364   :  { %3514 = vrcp.f32 %v1397_v57  ;;  %v3513_v60 = vpop.eup %3512  ;;  %v1410_v2 = vadd.f32 1.0, %v3511_v59 }
 0x365   :  { %3516 = vrcp.f32 %v1403_v58 }
 0x366   :  { %3518 = vrcp.f32 %v1410_v2 }
 0x36e   :  { %v3515_v61 = vpop.eup %3514 }
 0x36f   :  { %v3517_v62 = vpop.eup %3516  ;;  %v1415_v1 = vmul.f32 %v3515_v61, %v3513_v60 }
 0x370   :  { %v1414_v3 = vmul.f32 %v3517_v62, %v4014_v11  ;;  %v3519_v5 = vpop.eup %3518  ;;  %v4137_v11 = vld [vmem:[#allocation7 + $0xc4] ss:$16 sps:$4 sm:$0xff]  }
 0x372   :  { %v4057_v4 = vadd.f32 %v1415_v1, %v1414_v3 }
 0x374   :  { %3520 = vtanh.f32 %v4057_v4 }
 0x37e   :  { %v3521_v6 = vpop.eup %3520 }
 0x37f   :  { %v1418_v35 = vmul.f32 %v3521_v6, %v3519_v5 }
 0x381   :  { %v1419_v52 = vpack.c.bf16 %v1418_v35, %v1418_v35 }
 0x383   :  { %1421 = vst [vmem:[#allocation3] sm:$0xf] %v1419_v52  ;;  %1422 = vst [vmem:[%s4323_s6 + $0x8] sm:$0xf] %v1419_v52 }
 0x38a   :  { %v1427_v63 = vld [vmem:[#allocation3] sm:$0xf] }
 0x38b   :  { %1653 = vmatmul.mubr.bf16.vlgmr.msra.gmra.mrb[28].mxu0 %v1427_v63  ;;  %1694 = vmatmul.mubr.bf16.vlgmr.msra.gmra.mrb[28].mxu1 %v1427_v63 }
 0x38c   :  { %1964 = vmatprep.mubr.bf16.mxu0 %v4349_v7  ;;  %2005 = vmatprep.mubr.bf16.mxu1 %v4349_v7 }
 0x38d   :  { %1933 = vmatpush1.bf16.msra.mxu0 %v4069_v16  ;;  %1974 = vmatpush1.bf16.msra.mxu1 %v4071_v15 }
 0x38e   :  { %1934 = vmatprep.subr.bf16.mxu0 %v4077_v17  ;;  %1975 = vmatprep.subr.bf16.mxu1 %v4079_v19 }
 0x391   :  { %1935 = vmatpush1.bf16.msra.mxu0 %v4081_v18  ;;  %1976 = vmatpush1.bf16.msra.mxu1 %v4083_v20 }
 0x392   :  { %1936 = vmatprep.subr.bf16.mxu0 %v4089_v0  ;;  %1977 = vmatprep.subr.bf16.mxu1 %v4091_v21 }
 0x395   :  { %1937 = vmatpush1.bf16.msra.mxu0 %v4093_v22  ;;  %1978 = vmatpush1.bf16.msra.mxu1 %v4095_v33 }
 0x396   :  { %1938 = vmatprep.subr.bf16.mxu0 %v4101_v34  ;;  %1979 = vmatprep.subr.bf16.mxu1 %v4103_v10 }
 0x399   :  { %1939 = vmatpush1.bf16.msra.mxu0 %v4105_v8  ;;  %1980 = vmatpush1.bf16.msra.mxu1 %v4107_v25 }
 0x39a   :  { %1940 = vmatprep.subr.bf16.mxu0 %v4113_v27  ;;  %1981 = vmatprep.subr.bf16.mxu1 %v4115_v29 }
 0x39d   :  { %1941 = vmatpush1.bf16.msra.mxu0 %v4117_v12  ;;  %1982 = vmatpush1.bf16.msra.mxu1 %v4119_v30 }
 0x39e   :  { %1942 = vmatprep.subr.bf16.mxu0 %v4125_v28  ;;  %1983 = vmatprep.subr.bf16.mxu1 %v4127_v56 }
 0x3a1   :  { %1943 = vmatpush1.bf16.msra.mxu0 %v4129_v23  ;;  %1984 = vmatpush1.bf16.msra.mxu1 %v4131_v44 }
 0x3a2   :  { %1944 = vmatprep.subr.bf16.mxu0 %v4137_v11  ;;  %1985 = vmatprep.subr.bf16.mxu1 %v4139_v31 }
 0x3a5   :  { %1945 = vmatpush1.bf16.msra.mxu0 %v4141_v14  ;;  %1986 = vmatpush1.bf16.msra.mxu1 %v4143_v9 }
 0x3a6   :  { %1946 = vmatprep.subr.bf16.mxu0 %v4147_v13  ;;  %1987 = vmatprep.subr.bf16.mxu1 %v4149_v24 }
 0x3a9   :  { %1947 = vmatpush1.bf16.msra.mxu0 %v4153_v36  ;;  %1988 = vmatpush1.bf16.msra.mxu1 %v4155_v37 }
 0x3aa   :  { %2244 = vmatprep.subr.bf16.mxu0 %v4065_v26  ;;  %2285 = vmatprep.subr.bf16.mxu1 %v4067_v32 }
 0x45e   :  { %v1654_v38 = vpop.f32.mrb[28].mxu0  ;;  %v1695_v39 = vpop.f32.mrb[28].mxu1 }
 0x45f   :  { %v1702_v41 = vadd.f32 %v1654_v38, %v4351_v40  ;;  %v1704_v43 = vadd.f32 %v1695_v39, %v4352_v42  ;;  %v1656_v45 = vpop.f32.mrb[29].mxu0  ;;  %v1697_v46 = vpop.f32.mrb[29].mxu1 }
 0x460   :  { %v1703_v48 = vadd.f32 %v1656_v45, %v4353_v47  ;;  %v1705_v50 = vadd.f32 %v1697_v46, %v4354_v49  ;;  %v1658_v51 = vpop.f32.mrb[30].mxu0  ;;  %v1699_v53 = vpop.f32.mrb[30].mxu1  ;;  %v4355_v46 = vld [vmem:[#allocation16_spill] sm:$0xff] }
 0x461   :  { %v3178_v54 = vmul.f32 -1.442695, %v1702_v41  ;;  %v1659_v55 = vpop.f32.mrb[31].mxu0  ;;  %v1700_v57 = vpop.f32.mrb[31].mxu1  ;;  %v4357_v53 = vld [vmem:[#allocation18_spill] sm:$0xff] }
 0x462   :  { %v3179_v58 = vmul.f32 -1.442695, %v1703_v48  ;;  %v3180_v59 = vmul.f32 -1.442695, %v1705_v50  ;;  %v4356_v48 = vld [vmem:[#allocation17_spill] sm:$0xff]  ;;  %v4358_v55 = vld [vmem:[#allocation19_spill] sm:$0xff] }
 0x463   :  { %3522 = vpow2.f32 %v3178_v54 }
 0x464   :  { %3524 = vpow2.f32 %v3179_v58 }
 0x465   :  { %3526 = vpow2.f32 %v3180_v59 }
 0x466   :  { %3528 = vtanh.f32 %v1704_v43 }
 0x46d   :  { %v3523_v60 = vpop.eup %3522 }
 0x46e   :  { %v3525_v61 = vpop.eup %3524  ;;  %v1709_v62 = vadd.f32 1.0, %v3523_v60 }
 0x46f   :  { %v1715_v1 = vadd.f32 1.0, %v3525_v61  ;;  %v3527_v2 = vpop.eup %3526 }
 0x470   :  { %3530 = vrcp.f32 %v1709_v62  ;;  %v3529_v3 = vpop.eup %3528  ;;  %v1722_v52 = vadd.f32 1.0, %v3527_v2 }
 0x471   :  { %3532 = vrcp.f32 %v1715_v1 }
 0x472   :  { %3534 = vrcp.f32 %v1722_v52 }
 0x47a   :  { %v3531_v5 = vpop.eup %3530 }
 0x47b   :  { %v3533_v6 = vpop.eup %3532  ;;  %v1727_v35 = vmul.f32 %v3531_v5, %v3529_v3 }
 0x47c   :  { %v1726_v63 = vmul.f32 %v3533_v6, %v4057_v4  ;;  %v3535_v39 = vpop.eup %3534 }
 0x47e   :  { %v4168_v38 = vadd.f32 %v1727_v35, %v1726_v63 }
 0x480   :  { %3536 = vtanh.f32 %v4168_v38 }
 0x48a   :  { %v3537_v40 = vpop.eup %3536 }
 0x48b   :  { %v1730_v41 = vmul.f32 %v3537_v40, %v3535_v39 }
 0x48d   :  { %v1731_v42 = vpack.c.bf16 %v1730_v41, %v1730_v41 }
 0x48f   :  { %1734 = vst [vmem:[%s4323_s6 + $0xc] sm:$0xf] %v1731_v42  ;;  %1733 = vst [vmem:[#allocation3] sm:$0xf] %v1731_v42 }
 0x496   :  { %v1739_v43 = vld [vmem:[#allocation3] sm:$0xf] }
 0x497   :  { %1965 = vmatmul.mubr.bf16.vlgmr.msra.gmra.mrb[32].mxu0 %v1739_v43  ;;  %2006 = vmatmul.mubr.bf16.vlgmr.msra.gmra.mrb[32].mxu1 %v1739_v43 }
 0x498   :  { %2245 = vmatpush1.bf16.msra.mxu0 %v4069_v16  ;;  %2286 = vmatpush1.bf16.msra.mxu1 %v4071_v15 }
 0x499   :  { %2246 = vmatprep.subr.bf16.mxu0 %v4077_v17  ;;  %2287 = vmatprep.subr.bf16.mxu1 %v4079_v19 }
 0x49a   :  { %2276 = vmatprep.mubr.bf16.mxu0 %v4349_v7  ;;  %2317 = vmatprep.mubr.bf16.mxu1 %v4349_v7 }
 0x49c   :  { %2247 = vmatpush1.bf16.msra.mxu0 %v4081_v18  ;;  %2288 = vmatpush1.bf16.msra.mxu1 %v4083_v20 }
 0x49d   :  { %2248 = vmatprep.subr.bf16.mxu0 %v4089_v0  ;;  %2289 = vmatprep.subr.bf16.mxu1 %v4091_v21 }
 0x4a0   :  { %2249 = vmatpush1.bf16.msra.mxu0 %v4093_v22  ;;  %2290 = vmatpush1.bf16.msra.mxu1 %v4095_v33 }
 0x4a1   :  { %2250 = vmatprep.subr.bf16.mxu0 %v4101_v34  ;;  %2291 = vmatprep.subr.bf16.mxu1 %v4103_v10 }
 0x4a4   :  { %2251 = vmatpush1.bf16.msra.mxu0 %v4105_v8  ;;  %2292 = vmatpush1.bf16.msra.mxu1 %v4107_v25 }
 0x4a5   :  { %2252 = vmatprep.subr.bf16.mxu0 %v4113_v27  ;;  %2293 = vmatprep.subr.bf16.mxu1 %v4115_v29 }
 0x4a8   :  { %2253 = vmatpush1.bf16.msra.mxu0 %v4117_v12  ;;  %2294 = vmatpush1.bf16.msra.mxu1 %v4119_v30 }
 0x4a9   :  { %2254 = vmatprep.subr.bf16.mxu0 %v4125_v28  ;;  %2295 = vmatprep.subr.bf16.mxu1 %v4127_v56 }
 0x4ac   :  { %2255 = vmatpush1.bf16.msra.mxu0 %v4129_v23  ;;  %2296 = vmatpush1.bf16.msra.mxu1 %v4131_v44 }
 0x4ad   :  { %2256 = vmatprep.subr.bf16.mxu0 %v4137_v11  ;;  %2297 = vmatprep.subr.bf16.mxu1 %v4139_v31 }
 0x4b0   :  { %2257 = vmatpush1.bf16.msra.mxu0 %v4141_v14  ;;  %2298 = vmatpush1.bf16.msra.mxu1 %v4143_v9 }
 0x4b1   :  { %2258 = vmatprep.subr.bf16.mxu0 %v4147_v13  ;;  %2299 = vmatprep.subr.bf16.mxu1 %v4149_v24 }
 0x4b4   :  { %2259 = vmatpush1.bf16.msra.mxu0 %v4153_v36  ;;  %2300 = vmatpush1.bf16.msra.mxu1 %v4155_v37 }
 0x4b5   :  { %2556 = vmatprep.subr.bf16.mxu0 %v4065_v26  ;;  %2597 = vmatprep.subr.bf16.mxu1 %v4067_v32 }
 0x56a   :  { %v1966_v4 = vpop.f32.mrb[32].mxu0  ;;  %v2007_v45 = vpop.f32.mrb[32].mxu1 }
 0x56b   :  { %v2014_v47 = vadd.f32 %v1966_v4, %v4355_v46  ;;  %v2016_v49 = vadd.f32 %v2007_v45, %v4356_v48  ;;  %v1968_v50 = vpop.f32.mrb[33].mxu0  ;;  %v2009_v51 = vpop.f32.mrb[33].mxu1 }
 0x56c   :  { %v2015_v54 = vadd.f32 %v1968_v50, %v4357_v53  ;;  %v2017_v57 = vadd.f32 %v2009_v51, %v4358_v55  ;;  %v1970_v58 = vpop.f32.mrb[34].mxu0  ;;  %v2011_v59 = vpop.f32.mrb[34].mxu1  ;;  %v4359_v51 = vld [vmem:[#allocation20_spill] sm:$0xff] }
 0x56d   :  { %v3213_v60 = vmul.f32 -1.442695, %v2014_v47  ;;  %v1971_v61 = vpop.f32.mrb[35].mxu0  ;;  %v2012_v62 = vpop.f32.mrb[35].mxu1  ;;  %v4361_v59 = vld [vmem:[#allocation22_spill] sm:$0xff] }
 0x56e   :  { %v3214_v1 = vmul.f32 -1.442695, %v2015_v54  ;;  %v3215_v2 = vmul.f32 -1.442695, %v2017_v57  ;;  %v4360_v54 = vld [vmem:[#allocation21_spill] sm:$0xff]  ;;  %v4362_v61 = vld [vmem:[#allocation23_spill] sm:$0xff] }
 0x56f   :  { %3538 = vpow2.f32 %v3213_v60 }
 0x570   :  { %3540 = vpow2.f32 %v3214_v1 }
 0x571   :  { %3542 = vpow2.f32 %v3215_v2 }
 0x572   :  { %3544 = vtanh.f32 %v2016_v49 }
 0x579   :  { %v3539_v3 = vpop.eup %3538 }
 0x57a   :  { %v3541_v5 = vpop.eup %3540  ;;  %v2021_v6 = vadd.f32 1.0, %v3539_v3 }
 0x57b   :  { %v2027_v35 = vadd.f32 1.0, %v3541_v5  ;;  %v3543_v52 = vpop.eup %3542 }
 0x57c   :  { %3546 = vrcp.f32 %v2021_v6  ;;  %v3545_v63 = vpop.eup %3544  ;;  %v2034_v42 = vadd.f32 1.0, %v3543_v52 }
 0x57d   :  { %3548 = vrcp.f32 %v2027_v35 }
 0x57e   :  { %3550 = vrcp.f32 %v2034_v42 }
 0x586   :  { %v3547_v39 = vpop.eup %3546 }
 0x587   :  { %v3549_v40 = vpop.eup %3548  ;;  %v2039_v41 = vmul.f32 %v3547_v39, %v3545_v63 }
 0x588   :  { %v2038_v43 = vmul.f32 %v3549_v40, %v4168_v38  ;;  %v3551_v45 = vpop.eup %3550 }
 0x58a   :  { %v4213_v4 = vadd.f32 %v2039_v41, %v2038_v43 }
 0x58c   :  { %3552 = vtanh.f32 %v4213_v4 }
 0x596   :  { %v3553_v46 = vpop.eup %3552 }
 0x597   :  { %v2042_v47 = vmul.f32 %v3553_v46, %v3551_v45 }
 0x599   :  { %v2043_v48 = vpack.c.bf16 %v2042_v47, %v2042_v47 }
 0x59b   :  { %2046 = vst [vmem:[%s4323_s6 + $0x10] sm:$0xf] %v2043_v48  ;;  %2045 = vst [vmem:[#allocation3] sm:$0xf] %v2043_v48 }
 0x5a2   :  { %v2051_v49 = vld [vmem:[#allocation3] sm:$0xf] }
 0x5a3   :  { %2277 = vmatmul.mubr.bf16.vlgmr.msra.gmra.mrb[36].mxu0 %v2051_v49  ;;  %2318 = vmatmul.mubr.bf16.vlgmr.msra.gmra.mrb[36].mxu1 %v2051_v49 }
 0x5a4   :  { %2557 = vmatpush1.bf16.msra.mxu0 %v4069_v16  ;;  %2598 = vmatpush1.bf16.msra.mxu1 %v4071_v15 }
 0x5a5   :  { %2558 = vmatprep.subr.bf16.mxu0 %v4077_v17  ;;  %2599 = vmatprep.subr.bf16.mxu1 %v4079_v19 }
 0x5a6   :  { %2588 = vmatprep.mubr.bf16.mxu0 %v4349_v7  ;;  %2629 = vmatprep.mubr.bf16.mxu1 %v4349_v7 }
 0x5a8   :  { %2559 = vmatpush1.bf16.msra.mxu0 %v4081_v18  ;;  %2600 = vmatpush1.bf16.msra.mxu1 %v4083_v20 }
 0x5a9   :  { %2560 = vmatprep.subr.bf16.mxu0 %v4089_v0  ;;  %2601 = vmatprep.subr.bf16.mxu1 %v4091_v21 }
 0x5ac   :  { %2561 = vmatpush1.bf16.msra.mxu0 %v4093_v22  ;;  %2602 = vmatpush1.bf16.msra.mxu1 %v4095_v33 }
 0x5ad   :  { %2562 = vmatprep.subr.bf16.mxu0 %v4101_v34  ;;  %2603 = vmatprep.subr.bf16.mxu1 %v4103_v10 }
 0x5b0   :  { %2563 = vmatpush1.bf16.msra.mxu0 %v4105_v8  ;;  %2604 = vmatpush1.bf16.msra.mxu1 %v4107_v25 }
 0x5b1   :  { %2564 = vmatprep.subr.bf16.mxu0 %v4113_v27  ;;  %2605 = vmatprep.subr.bf16.mxu1 %v4115_v29 }
 0x5b4   :  { %2565 = vmatpush1.bf16.msra.mxu0 %v4117_v12  ;;  %2606 = vmatpush1.bf16.msra.mxu1 %v4119_v30 }
 0x5b5   :  { %2566 = vmatprep.subr.bf16.mxu0 %v4125_v28  ;;  %2607 = vmatprep.subr.bf16.mxu1 %v4127_v56 }
 0x5b8   :  { %2567 = vmatpush1.bf16.msra.mxu0 %v4129_v23  ;;  %2608 = vmatpush1.bf16.msra.mxu1 %v4131_v44 }
 0x5b9   :  { %2568 = vmatprep.subr.bf16.mxu0 %v4137_v11  ;;  %2609 = vmatprep.subr.bf16.mxu1 %v4139_v31 }
 0x5bc   :  { %2569 = vmatpush1.bf16.msra.mxu0 %v4141_v14  ;;  %2610 = vmatpush1.bf16.msra.mxu1 %v4143_v9 }
 0x5bd   :  { %2570 = vmatprep.subr.bf16.mxu0 %v4147_v13  ;;  %2611 = vmatprep.subr.bf16.mxu1 %v4149_v24 }
 0x5c0   :  { %2571 = vmatpush1.bf16.msra.mxu0 %v4153_v36  ;;  %2612 = vmatpush1.bf16.msra.mxu1 %v4155_v37 }
 0x5c1   :  { %2868 = vmatprep.subr.bf16.mxu0 %v4065_v26  ;;  %2909 = vmatprep.subr.bf16.mxu1 %v4067_v32 }
 0x676   :  { %v2278_v38 = vpop.f32.mrb[36].mxu0  ;;  %v2319_v50 = vpop.f32.mrb[36].mxu1 }
 0x677   :  { %v2326_v53 = vadd.f32 %v2278_v38, %v4359_v51  ;;  %v2328_v55 = vadd.f32 %v2319_v50, %v4360_v54  ;;  %v2280_v57 = vpop.f32.mrb[37].mxu0  ;;  %v2321_v58 = vpop.f32.mrb[37].mxu1 }
 0x678   :  { %v2327_v60 = vadd.f32 %v2280_v57, %v4361_v59  ;;  %v2329_v62 = vadd.f32 %v2321_v58, %v4362_v61  ;;  %v2282_v1 = vpop.f32.mrb[38].mxu0  ;;  %v2323_v2 = vpop.f32.mrb[38].mxu1  ;;  %v4367_v61 = vld [vmem:[#allocation28_spill] sm:$0xff] }
 0x679   :  { %v3248_v3 = vmul.f32 -1.442695, %v2326_v53  ;;  %v2283_v5 = vpop.f32.mrb[39].mxu0  ;;  %v2324_v6 = vpop.f32.mrb[39].mxu1  ;;  %v4368_v1 = vld [vmem:[#allocation29_spill] sm:$0xff] }
 0x67a   :  { %v3249_v26 = vmul.f32 -1.442695, %v2327_v60  ;;  %v3250_v32 = vmul.f32 -1.442695, %v2329_v62  ;;  %v4369_v6 = vld [vmem:[#allocation30_spill] sm:$0xff] }
 0x67b   :  { %3554 = vpow2.f32 %v3248_v3 }
 0x67c   :  { %3556 = vpow2.f32 %v3249_v26 }
 0x67d   :  { %3558 = vpow2.f32 %v3250_v32  ;;  %v4370_v32 = vld [vmem:[#allocation31_spill] sm:$0xff] }
 0x67e   :  { %3560 = vtanh.f32 %v2328_v55 }
 0x685   :  { %v3555_v35 = vpop.eup %3554 }
 0x686   :  { %v3557_v52 = vpop.eup %3556  ;;  %v2333_v63 = vadd.f32 1.0, %v3555_v35 }
 0x687   :  { %v2339_v39 = vadd.f32 1.0, %v3557_v52  ;;  %v3559_v40 = vpop.eup %3558 }
 0x688   :  { %3562 = vrcp.f32 %v2333_v63  ;;  %v3561_v41 = vpop.eup %3560  ;;  %v2346_v46 = vadd.f32 1.0, %v3559_v40 }
 0x689   :  { %3564 = vrcp.f32 %v2339_v39 }
 0x68a   :  { %3566 = vrcp.f32 %v2346_v46 }
 0x692   :  { %v3563_v42 = vpop.eup %3562 }
 0x693   :  { %v3565_v43 = vpop.eup %3564  ;;  %v2351_v45 = vmul.f32 %v3563_v42, %v3561_v41 }
 0x694   :  { %v2350_v47 = vmul.f32 %v3565_v43, %v4213_v4  ;;  %v3567_v49 = vpop.eup %3566 }
 0x696   :  { %v4258_v48 = vadd.f32 %v2351_v45, %v2350_v47 }
 0x698   :  { %3568 = vtanh.f32 %v4258_v48 }
 0x6a2   :  { %v3569_v38 = vpop.eup %3568 }
 0x6a3   :  { %v2354_v50 = vmul.f32 %v3569_v38, %v3567_v49 }
 0x6a5   :  { %v2355_v51 = vpack.c.bf16 %v2354_v50, %v2354_v50 }
 0x6a7   :  { %2358 = vst [vmem:[%s4323_s6 + $0x14] sm:$0xf] %v2355_v51  ;;  %2357 = vst [vmem:[#allocation3] sm:$0xf] %v2355_v51 }
 0x6ae   :  { %v2363_v53 = vld [vmem:[#allocation3] sm:$0xf] }
 0x6af   :  { %2589 = vmatmul.mubr.bf16.vlgmr.msra.gmra.mrb[40].mxu0 %v2363_v53  ;;  %2630 = vmatmul.mubr.bf16.vlgmr.msra.gmra.mrb[40].mxu1 %v2363_v53 }
 0x6b0   :  { %2869 = vmatpush1.bf16.msra.mxu0 %v4069_v16  ;;  %2910 = vmatpush1.bf16.msra.mxu1 %v4071_v15  ;;  %v4363_v15 = vld [vmem:[#allocation24_spill] sm:$0xff] }
 0x6b1   :  { %2870 = vmatprep.subr.bf16.mxu0 %v4077_v17  ;;  %2911 = vmatprep.subr.bf16.mxu1 %v4079_v19  ;;  %v4364_v19 = vld [vmem:[#allocation25_spill] sm:$0xff] }
 0x6b2   :  { %2900 = vmatprep.mubr.bf16.mxu0 %v4349_v7  ;;  %2941 = vmatprep.mubr.bf16.mxu1 %v4349_v7 }
 0x6b4   :  { %2871 = vmatpush1.bf16.msra.mxu0 %v4081_v18  ;;  %2912 = vmatpush1.bf16.msra.mxu1 %v4083_v20 }
 0x6b5   :  { %2872 = vmatprep.subr.bf16.mxu0 %v4089_v0  ;;  %2913 = vmatprep.subr.bf16.mxu1 %v4091_v21  ;;  %v4365_v21 = vld [vmem:[#allocation26_spill] sm:$0xff] }
 0x6b8   :  { %2873 = vmatpush1.bf16.msra.mxu0 %v4093_v22  ;;  %2914 = vmatpush1.bf16.msra.mxu1 %v4095_v33  ;;  %v4366_v33 = vld [vmem:[#allocation27_spill] sm:$0xff] }
 0x6b9   :  { %2874 = vmatprep.subr.bf16.mxu0 %v4101_v34  ;;  %2915 = vmatprep.subr.bf16.mxu1 %v4103_v10 }
 0x6bc   :  { %2875 = vmatpush1.bf16.msra.mxu0 %v4105_v8  ;;  %2916 = vmatpush1.bf16.msra.mxu1 %v4107_v25 }
 0x6bd   :  { %2876 = vmatprep.subr.bf16.mxu0 %v4113_v27  ;;  %2917 = vmatprep.subr.bf16.mxu1 %v4115_v29 }
 0x6c0   :  { %2877 = vmatpush1.bf16.msra.mxu0 %v4117_v12  ;;  %2918 = vmatpush1.bf16.msra.mxu1 %v4119_v30 }
 0x6c1   :  { %2878 = vmatprep.subr.bf16.mxu0 %v4125_v28  ;;  %2919 = vmatprep.subr.bf16.mxu1 %v4127_v56 }
 0x6c4   :  { %2879 = vmatpush1.bf16.msra.mxu0 %v4129_v23  ;;  %2920 = vmatpush1.bf16.msra.mxu1 %v4131_v44 }
 0x6c5   :  { %2880 = vmatprep.subr.bf16.mxu0 %v4137_v11  ;;  %2921 = vmatprep.subr.bf16.mxu1 %v4139_v31 }
 0x6c8   :  { %2881 = vmatpush1.bf16.msra.mxu0 %v4141_v14  ;;  %2922 = vmatpush1.bf16.msra.mxu1 %v4143_v9 }
 0x6c9   :  { %2882 = vmatprep.subr.bf16.mxu0 %v4147_v13  ;;  %2923 = vmatprep.subr.bf16.mxu1 %v4149_v24 }
 0x6cc   :  { %2883 = vmatpush1.bf16.msra.mxu0 %v4153_v36  ;;  %2924 = vmatpush1.bf16.msra.mxu1 %v4155_v37 }
 0x782   :  { %v2590_v7 = vpop.f32.mrb[40].mxu0  ;;  %v2631_v16 = vpop.f32.mrb[40].mxu1 }
 0x783   :  { %v2638_v17 = vadd.f32 %v2590_v7, %v4363_v15  ;;  %v2640_v18 = vadd.f32 %v2631_v16, %v4364_v19  ;;  %v2592_v20 = vpop.f32.mrb[41].mxu0  ;;  %v2633_v0 = vpop.f32.mrb[41].mxu1 }
 0x784   :  { %v2639_v22 = vadd.f32 %v2592_v20, %v4365_v21  ;;  %v2641_v34 = vadd.f32 %v2633_v0, %v4366_v33  ;;  %v2594_v10 = vpop.f32.mrb[42].mxu0  ;;  %v2635_v8 = vpop.f32.mrb[42].mxu1 }
 0x785   :  { %v3283_v25 = vmul.f32 -1.442695, %v2638_v17  ;;  %v2595_v27 = vpop.f32.mrb[43].mxu0  ;;  %v2636_v29 = vpop.f32.mrb[43].mxu1 }
 0x786   :  { %v3284_v12 = vmul.f32 -1.442695, %v2639_v22  ;;  %v3285_v30 = vmul.f32 -1.442695, %v2641_v34 }
 0x787   :  { %3570 = vpow2.f32 %v3283_v25 }
 0x788   :  { %3572 = vpow2.f32 %v3284_v12 }
 0x789   :  { %3574 = vpow2.f32 %v3285_v30 }
 0x78a   :  { %3576 = vtanh.f32 %v2640_v18 }
 0x791   :  { %v3571_v28 = vpop.eup %3570 }
 0x792   :  { %v3573_v56 = vpop.eup %3572  ;;  %v2645_v23 = vadd.f32 1.0, %v3571_v28 }
 0x793   :  { %v2651_v44 = vadd.f32 1.0, %v3573_v56  ;;  %v3575_v11 = vpop.eup %3574 }
 0x794   :  { %3578 = vrcp.f32 %v2645_v23  ;;  %v3577_v31 = vpop.eup %3576  ;;  %v2658_v24 = vadd.f32 1.0, %v3575_v11 }
 0x795   :  { %3580 = vrcp.f32 %v2651_v44 }
 0x796   :  { %3582 = vrcp.f32 %v2658_v24 }
 0x79e   :  { %v3579_v14 = vpop.eup %3578 }
 0x79f   :  { %v3581_v9 = vpop.eup %3580  ;;  %v2663_v13 = vmul.f32 %v3579_v14, %v3577_v31 }
 0x7a0   :  { %v2662_v36 = vmul.f32 %v3581_v9, %v4258_v48  ;;  %v3583_v4 = vpop.eup %3582 }
 0x7a2   :  { %v2664_v37 = vadd.f32 %v2663_v13, %v2662_v36 }
 0x7a4   :  { %3584 = vtanh.f32 %v2664_v37 }
 0x7ae   :  { %v3585_v54 = vpop.eup %3584 }
 0x7af   :  { %v2666_v55 = vmul.f32 %v3585_v54, %v3583_v4 }
 0x7b1   :  { %v2667_v57 = vpack.c.bf16 %v2666_v55, %v2666_v55 }
 0x7b3   :  { %2670 = vst [vmem:[%s4323_s6 + $0x18] sm:$0xf] %v2667_v57  ;;  %2669 = vst [vmem:[#allocation3] sm:$0xf] %v2667_v57 }
 0x7ba   :  { %v2675_v58 = vld [vmem:[#allocation3] sm:$0xf] }
 0x7bb   :  { %2901 = vmatmul.mubr.bf16.vlgmr.msra.gmra.mrb[44].mxu0 %v2675_v58  ;;  %2942 = vmatmul.mubr.bf16.vlgmr.msra.gmra.mrb[44].mxu1 %v2675_v58 }
 0x88e   :  { %v2902_v59 = vpop.f32.mrb[44].mxu0  ;;  %v2943_v60 = vpop.f32.mrb[44].mxu1 }
 0x88f   :  { %v2950_v62 = vadd.f32 %v2902_v59, %v4367_v61  ;;  %v2952_v2 = vadd.f32 %v2943_v60, %v4368_v1  ;;  %v2904_v3 = vpop.f32.mrb[45].mxu0  ;;  %v2945_v5 = vpop.f32.mrb[45].mxu1 }
 0x890   :  { %v2951_v26 = vadd.f32 %v2904_v3, %v4369_v6  ;;  %v2953_v35 = vadd.f32 %v2945_v5, %v4370_v32  ;;  %v2906_v52 = vpop.f32.mrb[46].mxu0  ;;  %v2947_v63 = vpop.f32.mrb[46].mxu1 }
 0x891   :  { %v3318_v39 = vmul.f32 -1.442695, %v2950_v62  ;;  %v2907_v40 = vpop.f32.mrb[47].mxu0  ;;  %v2948_v41 = vpop.f32.mrb[47].mxu1 }
 0x892   :  { %v3319_v42 = vmul.f32 -1.442695, %v2951_v26  ;;  %v3320_v43 = vmul.f32 -1.442695, %v2953_v35 }
 0x893   :  { %3586 = vpow2.f32 %v3318_v39 }
 0x894   :  { %3588 = vpow2.f32 %v3319_v42 }
 0x895   :  { %3590 = vpow2.f32 %v3320_v43 }
 0x896   :  { %3592 = vtanh.f32 %v2952_v2 }
 0x89d   :  { %v3587_v45 = vpop.eup %3586 }
 0x89e   :  { %v3589_v46 = vpop.eup %3588  ;;  %v2957_v47 = vadd.f32 1.0, %v3587_v45 }
 0x89f   :  { %v2963_v48 = vadd.f32 1.0, %v3589_v46  ;;  %v3591_v49 = vpop.eup %3590 }
 0x8a0   :  { %3594 = vrcp.f32 %v2957_v47  ;;  %v3593_v38 = vpop.eup %3592  ;;  %v2970_v7 = vadd.f32 1.0, %v3591_v49 }
 0x8a1   :  { %3596 = vrcp.f32 %v2963_v48 }
 0x8a2   :  { %3598 = vrcp.f32 %v2970_v7 }
 0x8aa   :  { %v3595_v50 = vpop.eup %3594 }
 0x8ab   :  { %v3597_v51 = vpop.eup %3596  ;;  %v2975_v53 = vmul.f32 %v3595_v50, %v3593_v38 }
 0x8ac   :  { %v2974_v16 = vmul.f32 %v3597_v51, %v2664_v37  ;;  %v3599_v17 = vpop.eup %3598 }
 0x8ae   :  { %v2976_v15 = vadd.f32 %v2975_v53, %v2974_v16 }
 0x8b0   :  { %3600 = vtanh.f32 %v2976_v15  ;;  %2990 = vst [vmem:[%s4325_s8] sm:$0xff] %v2976_v15 }
 0x8ba   :  { %v3601_v19 = vpop.eup %3600 }
 0x8bb   :  { %v2978_v18 = vmul.f32 %v3601_v19, %v3599_v17 }
 0x8bd   :  { %v2979_v20 = vpack.c.bf16 %v2978_v18, %v2978_v18 }
 0x8bf   :  { %2981 = vst [vmem:[#allocation3] sm:$0xf] %v2979_v20  ;;  %2982 = vst [vmem:[%s4323_s6 + $0x1c] sm:$0xf] %v2979_v20 }
 0x8c6   :  { %v2986_v0 = vld [vmem:[#allocation3] sm:$0xf] }
 0x8c7   :  { %v2987_v21 = vunpack.c.l.bf16 %v2986_v0 }
 0x8c9   :  { %2988 = vst [vmem:[%s4324_s7] sm:$0xff] %v2987_v21 }
 0x8ca   :  { %3003 = vsyncpa [#allocation6], 1 }
 0x8cb   :  { %3004 = vsyncpa [#allocation8], 1 }

// kernel: rnn_model_forward.4
= control target key start
LH: loop header
LB: loop body
LE: loop exit
PB: predicated region body
PF: predicated region fallthrough
CT: control target
= control target key end

     0   :  { %v4504_v1 = vmov 0   ;;  %s4495_s1 = inlined_call_operand.vmem [shape: bf16[128,512], index: 1, kind: input, shape index: {}]   ;;  %s4496_s0 = inlined_call_operand.vmem [shape: bf16[64,128], index: 0, kind: input, shape index: {}]   ;;  %s4497_s2 = inlined_call_operand.vmem [shape: bf16[128,512], index: 2, kind: input, shape index: {}]   ;;  %s4498_s4 = inlined_call_operand.vmem [shape: bf16[8,128], index: 4, kind: input, shape index: {}]   ;;  %s4499_s3 = inlined_call_operand.vmem [shape: f32[1,512], index: 3, kind: input, shape index: {}]   ;;  %s4500_s5 = inlined_call_operand.vmem [shape: f32[8,128], index: 5, kind: input, shape index: {}]   ;;  %s4501_s6 = inlined_call_operand.vmem [shape: bf16[64,128], index: 6, kind: output, shape index: {0}]   ;;  %s4502_s8 = inlined_call_operand.vmem [shape: f32[8,128], index: 8, kind: output, shape index: {2}]   ;;  %s4503_s7 = inlined_call_operand.vmem [shape: f32[8,128], index: 7, kind: output, shape index: {1}]  }
   0x1   :  { %v3292_v0 = vld [vmem:[%s4495_s1 + $0x4] ss:$16 sps:$4 sm:$0xff]   ;;  %313 = vmatprep.mubr.bf16.mxu0 %v4504_v1  ;;  %386 = vmatprep.mubr.bf16.mxu1 %v4504_v1  ;;  %v3294_v2 = vld [vmem:[%s4495_s1 + $0xc] ss:$16 sps:$4 sm:$0xff]   ;;  %v3296_v3 = vld [vmem:[%s4495_s1] ss:$16 sps:$4 sm:$0xff]  }
   0x2   :  { %281 = vmatprep.subr.bf16.mxu0 %v3292_v0  ;;  %v3297_v4 = vld [vmem:[%s4495_s1 + $0x8] ss:$16 sps:$4 sm:$0xff]   ;;  %354 = vmatprep.subr.bf16.mxu1 %v3294_v2  ;;  %v3298_v5 = vld [vmem:[%s4495_s1 + $0x24] ss:$16 sps:$4 sm:$0xff]   ;;  %v3300_v6 = vld [vmem:[%s4495_s1 + $0x2c] ss:$16 sps:$4 sm:$0xff]  }
   0x3   :  { %282 = vmatpush1.bf16.msra.mxu0 %v3296_v3  ;;  %355 = vmatpush1.bf16.msra.mxu1 %v3297_v4  ;;  %v3302_v7 = vld [vmem:[%s4495_s1 + $0x20] ss:$16 sps:$4 sm:$0xff]   ;;  %v3303_v8 = vld [vmem:[%s4495_s1 + $0x28] ss:$16 sps:$4 sm:$0xff]   ;;  %v3304_v9 = vld [vmem:[%s4495_s1 + $0x44] ss:$16 sps:$4 sm:$0xff]  }
   0x4   :  { %283 = vmatprep.subr.bf16.mxu0 %v3298_v5  ;;  %356 = vmatprep.subr.bf16.mxu1 %v3300_v6  ;;  %v3306_v10 = vld [vmem:[%s4495_s1 + $0x4c] ss:$16 sps:$4 sm:$0xff]   ;;  %v3308_v11 = vld [vmem:[%s4495_s1 + $0x40] ss:$16 sps:$4 sm:$0xff]   ;;  %v3309_v12 = vld [vmem:[%s4495_s1 + $0x48] ss:$16 sps:$4 sm:$0xff]  }
   0x5   :  { %v3310_v13 = vld [vmem:[%s4495_s1 + $0x64] ss:$16 sps:$4 sm:$0xff]   ;;  %v3312_v14 = vld [vmem:[%s4495_s1 + $0x6c] ss:$16 sps:$4 sm:$0xff]   ;;  %v3314_v15 = vld [vmem:[%s4495_s1 + $0x60] ss:$16 sps:$4 sm:$0xff]  }
   0x6   :  { %v3315_v16 = vld [vmem:[%s4495_s1 + $0x68] ss:$16 sps:$4 sm:$0xff]   ;;  %v3316_v17 = vld [vmem:[%s4495_s1 + $0x84] ss:$16 sps:$4 sm:$0xff]   ;;  %v3318_v18 = vld [vmem:[%s4495_s1 + $0x8c] ss:$16 sps:$4 sm:$0xff]  }
   0x7   :  { %284 = vmatpush1.bf16.msra.mxu0 %v3302_v7  ;;  %357 = vmatpush1.bf16.msra.mxu1 %v3303_v8  ;;  %v3320_v19 = vld [vmem:[%s4495_s1 + $0x80] ss:$16 sps:$4 sm:$0xff]   ;;  %v3321_v20 = vld [vmem:[%s4495_s1 + $0x88] ss:$16 sps:$4 sm:$0xff]   ;;  %v3322_v21 = vld [vmem:[%s4495_s1 + $0xa4] ss:$16 sps:$4 sm:$0xff]   ;;  %v77_v8 = vlaneseq }
   0x8   :  { %285 = vmatprep.subr.bf16.mxu0 %v3304_v9  ;;  %358 = vmatprep.subr.bf16.mxu1 %v3306_v10  ;;  %v3324_v22 = vld [vmem:[%s4495_s1 + $0xac] ss:$16 sps:$4 sm:$0xff]   ;;  %v3326_v23 = vld [vmem:[%s4495_s1 + $0xa0] ss:$16 sps:$4 sm:$0xff]   ;;  %v3327_v24 = vld [vmem:[%s4495_s1 + $0xa8] ss:$16 sps:$4 sm:$0xff]  }
   0x9   :  { %v3328_v25 = vld [vmem:[%s4495_s1 + $0xc4] ss:$16 sps:$4 sm:$0xff]   ;;  %v3330_v26 = vld [vmem:[%s4495_s1 + $0xcc] ss:$16 sps:$4 sm:$0xff]   ;;  %v3332_v27 = vld [vmem:[%s4495_s1 + $0xc0] ss:$16 sps:$4 sm:$0xff]  }
   0xa   :  { %v3333_v28 = vld [vmem:[%s4495_s1 + $0xc8] ss:$16 sps:$4 sm:$0xff]   ;;  %v3334_v29 = vld [vmem:[%s4495_s1 + $0xe4] ss:$16 sps:$4 sm:$0xff]   ;;  %v3336_v30 = vld [vmem:[%s4495_s1 + $0xec] ss:$16 sps:$4 sm:$0xff]  }
   0xb   :  { %286 = vmatpush1.bf16.msra.mxu0 %v3308_v11  ;;  %359 = vmatpush1.bf16.msra.mxu1 %v3309_v12  ;;  %v3338_v31 = vld [vmem:[%s4495_s1 + $0xe0] ss:$16 sps:$4 sm:$0xff]   ;;  %v3339_v32 = vld [vmem:[%s4495_s1 + $0xe8] ss:$16 sps:$4 sm:$0xff]   ;;  %v3715_v33 = vld [vmem:[%s4497_s2 + $0x4] ss:$16 sps:$4 sm:$0xff]  }
   0xc   :  { %287 = vmatprep.subr.bf16.mxu0 %v3310_v13  ;;  %360 = vmatprep.subr.bf16.mxu1 %v3312_v14  ;;  %v3720_v34 = vld [vmem:[%s4497_s2 + $0xc] ss:$16 sps:$4 sm:$0xff]   ;;  %v3340_v35 = vld [vmem:[%s4496_s0] sm:$0xff]   ;;  %v3733_v37 = vld [vmem:[%s4497_s2 + $0x8] ss:$16 sps:$4 sm:$0xff]   ;;  %v78_v9 = vshrl.u32 %v77_v8, 7 }
   0xd   :  { %v3728_v36 = vld [vmem:[%s4497_s2] ss:$16 sps:$4 sm:$0xff]   ;;  %v3740_v38 = vld [vmem:[%s4497_s2 + $0x24] ss:$16 sps:$4 sm:$0xff]   ;;  %v3745_v39 = vld [vmem:[%s4497_s2 + $0x2c] ss:$16 sps:$4 sm:$0xff]  }
   0xe   :  { %v3750_v40 = vld [vmem:[%s4497_s2 + $0x20] ss:$16 sps:$4 sm:$0xff]   ;;  %v3757_v41 = vld [vmem:[%s4497_s2 + $0x28] ss:$16 sps:$4 sm:$0xff]   ;;  %v3764_v42 = vld [vmem:[%s4497_s2 + $0x44] ss:$16 sps:$4 sm:$0xff]  }
   0xf   :  { %288 = vmatpush1.bf16.msra.mxu0 %v3314_v15  ;;  %361 = vmatpush1.bf16.msra.mxu1 %v3315_v16  ;;  %v3769_v43 = vld [vmem:[%s4497_s2 + $0x4c] ss:$16 sps:$4 sm:$0xff]   ;;  %v3779_v45 = vld [vmem:[%s4497_s2 + $0x40] ss:$16 sps:$4 sm:$0xff]   ;;  %v3784_v46 = vld [vmem:[%s4497_s2 + $0x48] ss:$16 sps:$4 sm:$0xff]  }
  0x10   :  { %289 = vmatprep.subr.bf16.mxu0 %v3316_v17  ;;  %362 = vmatprep.subr.bf16.mxu1 %v3318_v18  ;;  %v3353_v44 = vld [vmem:[%s4496_s0 + $0x8] sm:$0xff]   ;;  %v3791_v47 = vld [vmem:[%s4497_s2 + $0x64] ss:$16 sps:$4 sm:$0xff]   ;;  %v3803_v49 = vld [vmem:[%s4497_s2 + $0x60] ss:$16 sps:$4 sm:$0xff]   ;;  %v87_v10 = vsub.s32 2, %v78_v9 }
  0x11   :  { %v3798_v48 = vld [vmem:[%s4497_s2 + $0x6c] ss:$16 sps:$4 sm:$0xff]   ;;  %v3808_v50 = vld [vmem:[%s4497_s2 + $0x68] ss:$16 sps:$4 sm:$0xff]   ;;  %v3815_v51 = vld [vmem:[%s4497_s2 + $0x84] ss:$16 sps:$4 sm:$0xff]  }
  0x12   :  { %v3366_v52 = vld [vmem:[%s4496_s0 + $0x10] sm:$0xff]   ;;  %v3825_v53 = vld [vmem:[%s4497_s2 + $0x8c] ss:$16 sps:$4 sm:$0xff]   ;;  %v3837_v55 = vld [vmem:[%s4497_s2 + $0x88] ss:$16 sps:$4 sm:$0xff]   ;;  %v91_v11 = vsub.s32 3, %v78_v9 }
  0x13   :  { %290 = vmatpush1.bf16.msra.mxu0 %v3320_v19  ;;  %363 = vmatpush1.bf16.msra.mxu1 %v3321_v20  ;;  %v3832_v54 = vld [vmem:[%s4497_s2 + $0x80] ss:$16 sps:$4 sm:$0xff]   ;;  %v3845_v57 = vld [vmem:[%s4497_s2 + $0xa4] ss:$16 sps:$4 sm:$0xff]   ;;  %v3850_v58 = vld [vmem:[%s4497_s2 + $0xac] ss:$16 sps:$4 sm:$0xff]  }
  0x14   :  { %291 = vmatprep.subr.bf16.mxu0 %v3322_v21  ;;  %364 = vmatprep.subr.bf16.mxu1 %v3324_v22  ;;  %v31_v56 = vld [vmem:[%s4498_s4] sm:$0xf]  ;;  %v3864_v60 = vld [vmem:[%s4497_s2 + $0xa8] ss:$16 sps:$4 sm:$0xff]   ;;  %v3869_v61 = vld [vmem:[%s4497_s2 + $0xc4] ss:$16 sps:$4 sm:$0xff]  }
  0x15   :  { %32 = vst [vmem:[#allocation3] sm:$0xf] %v31_v56  ;;  %v3859_v59 = vld [vmem:[%s4497_s2 + $0xa0] ss:$16 sps:$4 sm:$0xff]   ;;  %v3874_v62 = vld [vmem:[%s4497_s2 + $0xcc] ss:$16 sps:$4 sm:$0xff]  }
  0x16   :  { %v3379_v63 = vld [vmem:[%s4496_s0 + $0x18] sm:$0xff]   ;;  %v3888_v0 = vld [vmem:[%s4497_s2 + $0xc0] ss:$16 sps:$4 sm:$0xff]   ;;  %v3898_v3 = vld [vmem:[%s4497_s2 + $0xe4] ss:$16 sps:$4 sm:$0xff]   ;;  %v79_v12 = vsub.s32 0, %v78_v9 }
  0x17   :  { %292 = vmatpush1.bf16.msra.mxu0 %v3326_v23  ;;  %365 = vmatpush1.bf16.msra.mxu1 %v3327_v24  ;;  %v3893_v2 = vld [vmem:[%s4497_s2 + $0xc8] ss:$16 sps:$4 sm:$0xff]   ;;  %v3903_v4 = vld [vmem:[%s4497_s2 + $0xec] ss:$16 sps:$4 sm:$0xff]   ;;  %v3914_v5 = vld [vmem:[%s4497_s2 + $0xe0] ss:$16 sps:$4 sm:$0xff]  }
  0x18   :  { %293 = vmatprep.subr.bf16.mxu0 %v3328_v25  ;;  %366 = vmatprep.subr.bf16.mxu1 %v3330_v26  ;;  %v3919_v6 = vld [vmem:[%s4497_s2 + $0xe8] ss:$16 sps:$4 sm:$0xff]   ;;  %v75_v13 = vld [vmem:[%s4499_s3] sm:$0xf]  ;;  %v83_v14 = vsub.s32 1, %v78_v9 }
  0x19   :  { %v3966_v15 = vrot.slane %v75_v13, %v87_v10  ;;  %v3972_v18 = vrot.slane %v75_v13, %v91_v11  ;;  %v80_v19 = vrot.slane %v75_v13, %v79_v12 }
  0x1a   :  { %v84_v22 = vrot.slane %v75_v13, %v83_v14 }
  0x1b   :  { %294 = vmatpush1.bf16.msra.mxu0 %v3332_v27  ;;  %367 = vmatpush1.bf16.msra.mxu1 %v3333_v28 }
  0x1c   :  { %295 = vmatprep.subr.bf16.mxu0 %v3334_v29  ;;  %368 = vmatprep.subr.bf16.mxu1 %v3336_v30  ;;  %v463_v7 = vld [vmem:[#allocation3] sm:$0xf] }
  0x1f   :  { %296 = vmatpush1.bf16.msra.mxu0 %v3338_v31  ;;  %369 = vmatpush1.bf16.msra.mxu1 %v3339_v32 }
  0x20   :  { %656 = vmatprep.subr.bf16.mxu0 %v3715_v33  ;;  %697 = vmatprep.subr.bf16.mxu1 %v3720_v34 }
  0x22   :  { %314 = vmatmul.mubr.bf16.vlgmr.msra.gmra.mrb[0].mxu0 %v3340_v35  ;;  %387 = vmatmul.mubr.bf16.vlgmr.msra.gmra.mrb[0].mxu1 %v3340_v35 }
  0x23   :  { %657 = vmatpush1.bf16.msra.mxu0 %v3728_v36  ;;  %698 = vmatpush1.bf16.msra.mxu1 %v3733_v37 }
  0x24   :  { %658 = vmatprep.subr.bf16.mxu0 %v3740_v38  ;;  %699 = vmatprep.subr.bf16.mxu1 %v3745_v39 }
  0x25   :  { %323 = vmatprep.mubr.bf16.mxu0 %v4504_v1  ;;  %396 = vmatprep.mubr.bf16.mxu1 %v4504_v1 }
  0x27   :  { %659 = vmatpush1.bf16.msra.mxu0 %v3750_v40  ;;  %700 = vmatpush1.bf16.msra.mxu1 %v3757_v41 }
  0x28   :  { %660 = vmatprep.subr.bf16.mxu0 %v3764_v42  ;;  %701 = vmatprep.subr.bf16.mxu1 %v3769_v43 }
  0x2a   :  { %324 = vmatmul.mubr.bf16.gmra.mrb[4].mxu0 %v3353_v44  ;;  %397 = vmatmul.mubr.bf16.gmra.mrb[4].mxu1 %v3353_v44 }
  0x2b   :  { %661 = vmatpush1.bf16.msra.mxu0 %v3779_v45  ;;  %702 = vmatpush1.bf16.msra.mxu1 %v3784_v46 }
  0x2c   :  { %662 = vmatprep.subr.bf16.mxu0 %v3791_v47  ;;  %703 = vmatprep.subr.bf16.mxu1 %v3798_v48 }
  0x2d   :  { %333 = vmatprep.mubr.bf16.mxu0 %v4504_v1  ;;  %406 = vmatprep.mubr.bf16.mxu1 %v4504_v1 }
  0x2f   :  { %663 = vmatpush1.bf16.msra.mxu0 %v3803_v49  ;;  %704 = vmatpush1.bf16.msra.mxu1 %v3808_v50 }
  0x30   :  { %664 = vmatprep.subr.bf16.mxu0 %v3815_v51  ;;  %705 = vmatprep.subr.bf16.mxu1 %v3825_v53 }
  0x32   :  { %334 = vmatmul.mubr.bf16.gmra.mrb[8].mxu0 %v3366_v52  ;;  %407 = vmatmul.mubr.bf16.gmra.mrb[8].mxu1 %v3366_v52 }
  0x33   :  { %665 = vmatpush1.bf16.msra.mxu0 %v3832_v54  ;;  %706 = vmatpush1.bf16.msra.mxu1 %v3837_v55 }
  0x34   :  { %666 = vmatprep.subr.bf16.mxu0 %v3845_v57  ;;  %707 = vmatprep.subr.bf16.mxu1 %v3850_v58 }
  0x35   :  { %343 = vmatprep.mubr.bf16.mxu0 %v4504_v1  ;;  %416 = vmatprep.mubr.bf16.mxu1 %v4504_v1 }
  0x37   :  { %667 = vmatpush1.bf16.msra.mxu0 %v3859_v59  ;;  %708 = vmatpush1.bf16.msra.mxu1 %v3864_v60 }
  0x38   :  { %668 = vmatprep.subr.bf16.mxu0 %v3869_v61  ;;  %709 = vmatprep.subr.bf16.mxu1 %v3874_v62 }
  0x3a   :  { %344 = vmatmul.mubr.bf16.gmra.mrb[12].mxu0 %v3379_v63  ;;  %417 = vmatmul.mubr.bf16.gmra.mrb[12].mxu1 %v3379_v63 }
  0x3b   :  { %669 = vmatpush1.bf16.msra.mxu0 %v3888_v0  ;;  %710 = vmatpush1.bf16.msra.mxu1 %v3893_v2 }
  0x3c   :  { %670 = vmatprep.subr.bf16.mxu0 %v3898_v3  ;;  %711 = vmatprep.subr.bf16.mxu1 %v3903_v4 }
  0x3d   :  { %688 = vmatprep.mubr.bf16.mxu0 %v4504_v1  ;;  %729 = vmatprep.mubr.bf16.mxu1 %v4504_v1 }
  0x3f   :  { %671 = vmatpush1.bf16.msra.mxu0 %v3914_v5  ;;  %712 = vmatpush1.bf16.msra.mxu1 %v3919_v6 }
  0x40   :  { %968 = vmatprep.subr.bf16.mxu0 %v3715_v33  ;;  %1009 = vmatprep.subr.bf16.mxu1 %v3720_v34 }
  0x42   :  { %689 = vmatmul.mubr.bf16.vlgmr.msra.gmra.mrb[16].mxu0 %v463_v7  ;;  %730 = vmatmul.mubr.bf16.vlgmr.msra.gmra.mrb[16].mxu1 %v463_v7 }
  0x43   :  { %969 = vmatpush1.bf16.msra.mxu0 %v3728_v36  ;;  %1010 = vmatpush1.bf16.msra.mxu1 %v3733_v37 }
  0x44   :  { %970 = vmatprep.subr.bf16.mxu0 %v3740_v38  ;;  %1011 = vmatprep.subr.bf16.mxu1 %v3745_v39 }
  0x45   :  { %1000 = vmatprep.mubr.bf16.mxu0 %v4504_v1  ;;  %1041 = vmatprep.mubr.bf16.mxu1 %v4504_v1 }
  0x47   :  { %971 = vmatpush1.bf16.msra.mxu0 %v3750_v40  ;;  %1012 = vmatpush1.bf16.msra.mxu1 %v3757_v41 }
  0x48   :  { %972 = vmatprep.subr.bf16.mxu0 %v3764_v42  ;;  %1013 = vmatprep.subr.bf16.mxu1 %v3769_v43 }
  0x4b   :  { %973 = vmatpush1.bf16.msra.mxu0 %v3779_v45  ;;  %1014 = vmatpush1.bf16.msra.mxu1 %v3784_v46 }
  0x4c   :  { %974 = vmatprep.subr.bf16.mxu0 %v3791_v47  ;;  %1015 = vmatprep.subr.bf16.mxu1 %v3798_v48 }
  0x4f   :  { %975 = vmatpush1.bf16.msra.mxu0 %v3803_v49  ;;  %1016 = vmatpush1.bf16.msra.mxu1 %v3808_v50 }
  0x50   :  { %976 = vmatprep.subr.bf16.mxu0 %v3815_v51  ;;  %1017 = vmatprep.subr.bf16.mxu1 %v3825_v53 }
  0x53   :  { %977 = vmatpush1.bf16.msra.mxu0 %v3832_v54  ;;  %1018 = vmatpush1.bf16.msra.mxu1 %v3837_v55 }
  0x54   :  { %978 = vmatprep.subr.bf16.mxu0 %v3845_v57  ;;  %1019 = vmatprep.subr.bf16.mxu1 %v3850_v58 }
  0x57   :  { %979 = vmatpush1.bf16.msra.mxu0 %v3859_v59  ;;  %1020 = vmatpush1.bf16.msra.mxu1 %v3864_v60 }
  0x58   :  { %980 = vmatprep.subr.bf16.mxu0 %v3869_v61  ;;  %1021 = vmatprep.subr.bf16.mxu1 %v3874_v62 }
  0x5b   :  { %981 = vmatpush1.bf16.msra.mxu0 %v3888_v0  ;;  %1022 = vmatpush1.bf16.msra.mxu1 %v3893_v2 }
  0x5c   :  { %982 = vmatprep.subr.bf16.mxu0 %v3898_v3  ;;  %1023 = vmatprep.subr.bf16.mxu1 %v3903_v4 }
  0x5f   :  { %983 = vmatpush1.bf16.msra.mxu0 %v3914_v5  ;;  %1024 = vmatpush1.bf16.msra.mxu1 %v3919_v6 }
  0x60   :  { %1280 = vmatprep.subr.bf16.mxu0 %v3715_v33  ;;  %1321 = vmatprep.subr.bf16.mxu1 %v3720_v34 }
  0xf5   :  { %v3968_v16 = vpop.f32.mrb[0].mxu0  ;;  %v3970_v17 = vpop.f32.mrb[0].mxu1 }
  0xf6   :  { %v317_v20 = vpop.f32.mrb[1].mxu0  ;;  %v390_v21 = vpop.f32.mrb[1].mxu1 }
  0xf7   :  { %v319_v23 = vpop.f32.mrb[2].mxu0  ;;  %v392_v24 = vpop.f32.mrb[2].mxu1 }
  0xf8   :  { %v3974_v25 = vadd.f32 %v319_v23, %v80_v19  ;;  %v321_v26 = vpop.f32.mrb[3].mxu0  ;;  %v3977_v27 = vadd.f32 %v392_v24, %v3966_v15  ;;  %v394_v28 = vpop.f32.mrb[3].mxu1 }
  0xf9   :  { %v3979_v29 = vadd.f32 %v321_v26, %v84_v22  ;;  %v3982_v30 = vadd.f32 %v394_v28, %v3972_v18 }
  0xfd   :  { %v325_v31 = vpop.f32.mrb[4].mxu0  ;;  %v398_v32 = vpop.f32.mrb[4].mxu1 }
  0xfe   :  { %v3984_v35 = vadd.f32 %v325_v31, %v80_v19  ;;  %v327_v44 = vpop.f32.mrb[5].mxu0  ;;  %v3987_v52 = vadd.f32 %v398_v32, %v3966_v15  ;;  %v400_v56 = vpop.f32.mrb[5].mxu1 }
  0xff   :  { %v3989_v63 = vadd.f32 %v327_v44, %v84_v22  ;;  %v329_v7 = vpop.f32.mrb[6].mxu0  ;;  %v3992_v8 = vadd.f32 %v400_v56, %v3972_v18  ;;  %v402_v9 = vpop.f32.mrb[6].mxu1 }
 0x100   :  { %v3994_v10 = vadd.f32 %v329_v7, %v80_v19  ;;  %v331_v11 = vpop.f32.mrb[7].mxu0  ;;  %v3997_v12 = vadd.f32 %v402_v9, %v3966_v15  ;;  %v404_v13 = vpop.f32.mrb[7].mxu1 }
 0x101   :  { %4506 = vst [vmem:[#allocation5_spill] sm:$0xff] %v3992_v8  ;;  %v3999_v14 = vadd.f32 %v331_v11, %v84_v22  ;;  %v4002_v23 = vadd.f32 %v404_v13, %v3972_v18 }
 0x102   :  { %4507 = vst [vmem:[#allocation6_spill] sm:$0xff] %v3994_v10  ;;  %4508 = vst [vmem:[#allocation7_spill] sm:$0xff] %v3997_v12 }
 0x103   :  { %4509 = vst [vmem:[#allocation8_spill] sm:$0xff] %v3999_v14  ;;  %4510 = vst [vmem:[#allocation9_spill] sm:$0xff] %v4002_v23 }
 0x105   :  { %v335_v24 = vpop.f32.mrb[8].mxu0  ;;  %v408_v26 = vpop.f32.mrb[8].mxu1 }
 0x106   :  { %v4004_v28 = vadd.f32 %v335_v24, %v80_v19  ;;  %v337_v31 = vpop.f32.mrb[9].mxu0  ;;  %v4007_v32 = vadd.f32 %v408_v26, %v3966_v15  ;;  %v410_v44 = vpop.f32.mrb[9].mxu1 }
 0x107   :  { %v4009_v56 = vadd.f32 %v337_v31, %v84_v22  ;;  %v339_v7 = vpop.f32.mrb[10].mxu0  ;;  %v4012_v9 = vadd.f32 %v410_v44, %v3972_v18  ;;  %v412_v11 = vpop.f32.mrb[10].mxu1 }
 0x108   :  { %4511 = vst [vmem:[#allocation10_spill] sm:$0xff] %v4004_v28  ;;  %4512 = vst [vmem:[#allocation11_spill] sm:$0xff] %v4007_v32  ;;  %v4014_v1 = vadd.f32 %v339_v7, %v80_v19  ;;  %v341_v13 = vpop.f32.mrb[11].mxu0  ;;  %v4017_v23 = vadd.f32 %v412_v11, %v3966_v15  ;;  %v414_v24 = vpop.f32.mrb[11].mxu1 }
 0x109   :  { %4513 = vst [vmem:[#allocation12_spill] sm:$0xff] %v4009_v56  ;;  %4514 = vst [vmem:[#allocation13_spill] sm:$0xff] %v4012_v9  ;;  %v4019_v28 = vadd.f32 %v341_v13, %v84_v22  ;;  %v4022_v26 = vadd.f32 %v414_v24, %v3972_v18 }
 0x10a   :  { %4515 = vst [vmem:[#allocation14_spill] sm:$0xff] %v4014_v1  ;;  %4516 = vst [vmem:[#allocation15_spill] sm:$0xff] %v4017_v23 }
 0x10b   :  { %4517 = vst [vmem:[#allocation16_spill] sm:$0xff] %v4019_v28  ;;  %4518 = vst [vmem:[#allocation17_spill] sm:$0xff] %v4022_v26 }
 0x10d   :  { %v345_v32 = vpop.f32.mrb[12].mxu0  ;;  %v418_v31 = vpop.f32.mrb[12].mxu1 }
 0x10e   :  { %v4024_v56 = vadd.f32 %v345_v32, %v80_v19  ;;  %v347_v14 = vpop.f32.mrb[13].mxu0  ;;  %v4027_v44 = vadd.f32 %v418_v31, %v3966_v15  ;;  %v420_v7 = vpop.f32.mrb[13].mxu1 }
 0x10f   :  { %v4029_v1 = vadd.f32 %v347_v14, %v84_v22  ;;  %v349_v9 = vpop.f32.mrb[14].mxu0  ;;  %v4032_v11 = vadd.f32 %v420_v7, %v3972_v18  ;;  %v422_v13 = vpop.f32.mrb[14].mxu1  ;;  %v316_v14 = vadd.f32 %v3968_v16, %v80_v19  ;;  %v318_v7 = vadd.f32 %v317_v20, %v84_v22 }
 0x110   :  { %4519 = vst [vmem:[#allocation18_spill] sm:$0xff] %v4024_v56  ;;  %4520 = vst [vmem:[#allocation19_spill] sm:$0xff] %v4027_v44  ;;  %v4034_v28 = vadd.f32 %v349_v9, %v80_v19  ;;  %v351_v24 = vpop.f32.mrb[15].mxu0  ;;  %v4037_v26 = vadd.f32 %v422_v13, %v3966_v15  ;;  %v424_v32 = vpop.f32.mrb[15].mxu1 }
 0x111   :  { %4521 = vst [vmem:[#allocation20_spill] sm:$0xff] %v4029_v1  ;;  %4522 = vst [vmem:[#allocation21_spill] sm:$0xff] %v4032_v11  ;;  %v4039_v56 = vadd.f32 %v351_v24, %v84_v22  ;;  %v4042_v31 = vadd.f32 %v424_v32, %v3972_v18  ;;  %v389_v1 = vadd.f32 %v3970_v17, %v3966_v15  ;;  %v33_v22 = vld [vmem:[%s4500_s5] sm:$0xff] }
 0x112   :  { %4523 = vst [vmem:[#allocation22_spill] sm:$0xff] %v4034_v28  ;;  %4524 = vst [vmem:[#allocation23_spill] sm:$0xff] %v4037_v26  ;;  %v391_v11 = vadd.f32 %v390_v21, %v3972_v18 }
 0x113   :  { %4525 = vst [vmem:[#allocation24_spill] sm:$0xff] %v4039_v56  ;;  %4526 = vst [vmem:[#allocation25_spill] sm:$0xff] %v4042_v31 }
 0x115   :  { %v690_v9 = vpop.f32.mrb[16].mxu0  ;;  %v731_v28 = vpop.f32.mrb[16].mxu1 }
 0x116   :  { %v738_v44 = vadd.f32 %v690_v9, %v316_v14  ;;  %v740_v23 = vadd.f32 %v731_v28, %v389_v1  ;;  %v692_v13 = vpop.f32.mrb[17].mxu0  ;;  %v733_v26 = vpop.f32.mrb[17].mxu1 }
 0x117   :  { %v739_v12 = vadd.f32 %v692_v13, %v318_v7  ;;  %v741_v24 = vadd.f32 %v733_v26, %v391_v11  ;;  %v694_v56 = vpop.f32.mrb[18].mxu0  ;;  %v735_v10 = vpop.f32.mrb[18].mxu1  ;;  %v4527_v7 = vmov 0  }
 0x118   :  { %v3043_v32 = vmul.f32 -1.442695, %v738_v44  ;;  %v695_v31 = vpop.f32.mrb[19].mxu0  ;;  %v736_v8 = vpop.f32.mrb[19].mxu1 }
 0x119   :  { %v3044_v16 = vmul.f32 -1.442695, %v739_v12  ;;  %v3045_v15 = vmul.f32 -1.442695, %v741_v24 }
 0x11a   :  { %3440 = vpow2.f32 %v3043_v32 }
 0x11b   :  { %3442 = vpow2.f32 %v3044_v16 }
 0x11c   :  { %3444 = vpow2.f32 %v3045_v15 }
 0x11d   :  { %3446 = vtanh.f32 %v740_v23 }
 0x124   :  { %v3441_v17 = vpop.eup %3440 }
 0x125   :  { %v3443_v19 = vpop.eup %3442  ;;  %v745_v18 = vadd.f32 1.0, %v3441_v17 }
 0x126   :  { %v751_v20 = vadd.f32 1.0, %v3443_v19  ;;  %v3445_v1 = vpop.eup %3444 }
 0x127   :  { %3448 = vrcp.f32 %v745_v18  ;;  %v3447_v21 = vpop.eup %3446  ;;  %v758_v28 = vadd.f32 1.0, %v3445_v1 }
 0x128   :  { %3450 = vrcp.f32 %v751_v20 }
 0x129   :  { %3452 = vrcp.f32 %v758_v28 }
 0x131   :  { %v3449_v10 = vpop.eup %3448 }
 0x132   :  { %v3451_v8 = vpop.eup %3450  ;;  %v763_v12 = vmul.f32 %v3449_v10, %v3447_v21 }
 0x133   :  { %v762_v56 = vmul.f32 %v3451_v8, %v33_v22  ;;  %v3453_v23 = vpop.eup %3452 }
 0x135   :  { %v4051_v26 = vadd.f32 %v763_v12, %v762_v56 }
 0x137   :  { %3454 = vtanh.f32 %v4051_v26 }
 0x141   :  { %v3455_v44 = vpop.eup %3454 }
 0x142   :  { %v766_v11 = vmul.f32 %v3455_v44, %v3453_v23 }
 0x144   :  { %v767_v31 = vpack.c.bf16 %v766_v11, %v766_v11 }
 0x146   :  { %769 = vst [vmem:[#allocation3] sm:$0xf] %v767_v31  ;;  %770 = vst [vmem:[%s4501_s6] sm:$0xf] %v767_v31 }
 0x14d   :  { %v775_v14 = vld [vmem:[#allocation3] sm:$0xf] }
 0x14e   :  { %1001 = vmatmul.mubr.bf16.vlgmr.msra.gmra.mrb[20].mxu0 %v775_v14  ;;  %1042 = vmatmul.mubr.bf16.vlgmr.msra.gmra.mrb[20].mxu1 %v775_v14 }
 0x14f   :  { %1281 = vmatpush1.bf16.msra.mxu0 %v3728_v36  ;;  %1322 = vmatpush1.bf16.msra.mxu1 %v3733_v37 }
 0x150   :  { %1282 = vmatprep.subr.bf16.mxu0 %v3740_v38  ;;  %1323 = vmatprep.subr.bf16.mxu1 %v3745_v39 }
 0x151   :  { %1312 = vmatprep.mubr.bf16.mxu0 %v4527_v7  ;;  %1353 = vmatprep.mubr.bf16.mxu1 %v4527_v7 }
 0x153   :  { %1283 = vmatpush1.bf16.msra.mxu0 %v3750_v40  ;;  %1324 = vmatpush1.bf16.msra.mxu1 %v3757_v41 }
 0x154   :  { %1284 = vmatprep.subr.bf16.mxu0 %v3764_v42  ;;  %1325 = vmatprep.subr.bf16.mxu1 %v3769_v43 }
 0x157   :  { %1285 = vmatpush1.bf16.msra.mxu0 %v3779_v45  ;;  %1326 = vmatpush1.bf16.msra.mxu1 %v3784_v46 }
 0x158   :  { %1286 = vmatprep.subr.bf16.mxu0 %v3791_v47  ;;  %1327 = vmatprep.subr.bf16.mxu1 %v3798_v48 }
 0x15b   :  { %1287 = vmatpush1.bf16.msra.mxu0 %v3803_v49  ;;  %1328 = vmatpush1.bf16.msra.mxu1 %v3808_v50 }
 0x15c   :  { %1288 = vmatprep.subr.bf16.mxu0 %v3815_v51  ;;  %1329 = vmatprep.subr.bf16.mxu1 %v3825_v53 }
 0x15f   :  { %1289 = vmatpush1.bf16.msra.mxu0 %v3832_v54  ;;  %1330 = vmatpush1.bf16.msra.mxu1 %v3837_v55 }
 0x160   :  { %1290 = vmatprep.subr.bf16.mxu0 %v3845_v57  ;;  %1331 = vmatprep.subr.bf16.mxu1 %v3850_v58 }
 0x163   :  { %1291 = vmatpush1.bf16.msra.mxu0 %v3859_v59  ;;  %1332 = vmatpush1.bf16.msra.mxu1 %v3864_v60 }
 0x164   :  { %1292 = vmatprep.subr.bf16.mxu0 %v3869_v61  ;;  %1333 = vmatprep.subr.bf16.mxu1 %v3874_v62 }
 0x167   :  { %1293 = vmatpush1.bf16.msra.mxu0 %v3888_v0  ;;  %1334 = vmatpush1.bf16.msra.mxu1 %v3893_v2 }
 0x168   :  { %1294 = vmatprep.subr.bf16.mxu0 %v3898_v3  ;;  %1335 = vmatprep.subr.bf16.mxu1 %v3903_v4 }
 0x16b   :  { %1295 = vmatpush1.bf16.msra.mxu0 %v3914_v5  ;;  %1336 = vmatpush1.bf16.msra.mxu1 %v3919_v6 }
 0x16c   :  { %1592 = vmatprep.subr.bf16.mxu0 %v3715_v33  ;;  %1633 = vmatprep.subr.bf16.mxu1 %v3720_v34 }
 0x221   :  { %v1002_v9 = vpop.f32.mrb[20].mxu0  ;;  %v1043_v13 = vpop.f32.mrb[20].mxu1 }
 0x222   :  { %v1050_v24 = vadd.f32 %v1002_v9, %v3974_v25  ;;  %v1052_v32 = vadd.f32 %v1043_v13, %v3977_v27  ;;  %v1004_v16 = vpop.f32.mrb[21].mxu0  ;;  %v1045_v15 = vpop.f32.mrb[21].mxu1 }
 0x223   :  { %v1051_v17 = vadd.f32 %v1004_v16, %v3979_v29  ;;  %v1053_v19 = vadd.f32 %v1045_v15, %v3982_v30  ;;  %v1006_v18 = vpop.f32.mrb[22].mxu0  ;;  %v1047_v20 = vpop.f32.mrb[22].mxu1  ;;  %v4160_v16 = vld [vmem:[%s4497_s2] ss:$16 sps:$4 sm:$0xff]   ;;  %v4165_v15 = vld [vmem:[%s4497_s2 + $0x8] ss:$16 sps:$4 sm:$0xff]  }
 0x224   :  { %v3078_v1 = vmul.f32 -1.442695, %v1050_v24  ;;  %v1007_v21 = vpop.f32.mrb[23].mxu0  ;;  %v1048_v22 = vpop.f32.mrb[23].mxu1  ;;  %v4184_v18 = vld [vmem:[%s4497_s2 + $0x20] ss:$16 sps:$4 sm:$0xff]  }
 0x225   :  { %v3079_v33 = vmul.f32 -1.442695, %v1051_v17  ;;  %v3080_v34 = vmul.f32 -1.442695, %v1053_v19  ;;  %v4174_v17 = vld [vmem:[%s4497_s2 + $0x24] ss:$16 sps:$4 sm:$0xff]  }
 0x226   :  { %3456 = vpow2.f32 %v3078_v1  ;;  %v4179_v19 = vld [vmem:[%s4497_s2 + $0x2c] ss:$16 sps:$4 sm:$0xff]   ;;  %v4189_v20 = vld [vmem:[%s4497_s2 + $0x28] ss:$16 sps:$4 sm:$0xff]   ;;  %v4198_v1 = vld [vmem:[%s4497_s2 + $0x44] ss:$16 sps:$4 sm:$0xff]  }
 0x227   :  { %3458 = vpow2.f32 %v3079_v33  ;;  %v4203_v21 = vld [vmem:[%s4497_s2 + $0x4c] ss:$16 sps:$4 sm:$0xff]   ;;  %v4208_v22 = vld [vmem:[%s4497_s2 + $0x40] ss:$16 sps:$4 sm:$0xff]   ;;  %v4213_v33 = vld [vmem:[%s4497_s2 + $0x48] ss:$16 sps:$4 sm:$0xff]  }
 0x228   :  { %3460 = vpow2.f32 %v3080_v34  ;;  %v4222_v34 = vld [vmem:[%s4497_s2 + $0x64] ss:$16 sps:$4 sm:$0xff]  }
 0x229   :  { %3462 = vtanh.f32 %v1052_v32  ;;  %v4155_v32 = vld [vmem:[%s4497_s2 + $0xc] ss:$16 sps:$4 sm:$0xff]  }
 0x230   :  { %v3457_v10 = vpop.eup %3456 }
 0x231   :  { %v3459_v8 = vpop.eup %3458  ;;  %v1057_v25 = vadd.f32 1.0, %v3457_v10  ;;  %v4227_v10 = vld [vmem:[%s4497_s2 + $0x6c] ss:$16 sps:$4 sm:$0xff]  }
 0x232   :  { %v1063_v27 = vadd.f32 1.0, %v3459_v8  ;;  %v3461_v29 = vpop.eup %3460  ;;  %v4232_v8 = vld [vmem:[%s4497_s2 + $0x60] ss:$16 sps:$4 sm:$0xff]  }
 0x233   :  { %3464 = vrcp.f32 %v1057_v25  ;;  %v3463_v12 = vpop.eup %3462  ;;  %v1070_v23 = vadd.f32 1.0, %v3461_v29  ;;  %v4237_v25 = vld [vmem:[%s4497_s2 + $0x68] ss:$16 sps:$4 sm:$0xff]   ;;  %v4251_v29 = vld [vmem:[%s4497_s2 + $0x8c] ss:$16 sps:$4 sm:$0xff]  }
 0x234   :  { %3466 = vrcp.f32 %v1063_v27  ;;  %v4246_v27 = vld [vmem:[%s4497_s2 + $0x84] ss:$16 sps:$4 sm:$0xff]  }
 0x235   :  { %3468 = vrcp.f32 %v1070_v23  ;;  %v4280_v23 = vld [vmem:[%s4497_s2 + $0xa0] ss:$16 sps:$4 sm:$0xff]  }
 0x23d   :  { %v3465_v30 = vpop.eup %3464 }
 0x23e   :  { %v3467_v28 = vpop.eup %3466  ;;  %v1075_v56 = vmul.f32 %v3465_v30, %v3463_v12  ;;  %v4256_v12 = vld [vmem:[%s4497_s2 + $0x80] ss:$16 sps:$4 sm:$0xff]   ;;  %v4261_v30 = vld [vmem:[%s4497_s2 + $0x88] ss:$16 sps:$4 sm:$0xff]  }
 0x23f   :  { %v1074_v44 = vmul.f32 %v3467_v28, %v4051_v26  ;;  %v3469_v31 = vpop.eup %3468  ;;  %v4150_v26 = vld [vmem:[%s4497_s2 + $0x4] ss:$16 sps:$4 sm:$0xff]  }
 0x240   :  { %v4270_v28 = vld [vmem:[%s4497_s2 + $0xa4] ss:$16 sps:$4 sm:$0xff]  }
 0x241   :  { %v4096_v11 = vadd.f32 %v1075_v56, %v1074_v44  ;;  %v4275_v56 = vld [vmem:[%s4497_s2 + $0xac] ss:$16 sps:$4 sm:$0xff]   ;;  %v4285_v44 = vld [vmem:[%s4497_s2 + $0xa8] ss:$16 sps:$4 sm:$0xff]  }
 0x243   :  { %3470 = vtanh.f32 %v4096_v11 }
 0x24d   :  { %v3471_v14 = vpop.eup %3470 }
 0x24e   :  { %v1078_v9 = vmul.f32 %v3471_v14, %v3469_v31  ;;  %v4299_v31 = vld [vmem:[%s4497_s2 + $0xcc] ss:$16 sps:$4 sm:$0xff]   ;;  %v4304_v14 = vld [vmem:[%s4497_s2 + $0xc0] ss:$16 sps:$4 sm:$0xff]  }
 0x250   :  { %v1079_v13 = vpack.c.bf16 %v1078_v9, %v1078_v9  ;;  %v4309_v9 = vld [vmem:[%s4497_s2 + $0xc8] ss:$16 sps:$4 sm:$0xff]  }
 0x252   :  { %1081 = vst [vmem:[#allocation3] sm:$0xf] %v1079_v13  ;;  %1082 = vst [vmem:[%s4501_s6 + $0x4] sm:$0xf] %v1079_v13  ;;  %v4316_v13 = vld [vmem:[%s4497_s2 + $0xe4] ss:$16 sps:$4 sm:$0xff]  }
 0x259   :  { %v1087_v24 = vld [vmem:[#allocation3] sm:$0xf] }
 0x25a   :  { %1313 = vmatmul.mubr.bf16.vlgmr.msra.gmra.mrb[24].mxu0 %v1087_v24  ;;  %1354 = vmatmul.mubr.bf16.vlgmr.msra.gmra.mrb[24].mxu1 %v1087_v24  ;;  %v4321_v24 = vld [vmem:[%s4497_s2 + $0xec] ss:$16 sps:$4 sm:$0xff]  }
 0x25b   :  { %1593 = vmatpush1.bf16.msra.mxu0 %v3728_v36  ;;  %1634 = vmatpush1.bf16.msra.mxu1 %v3733_v37 }
 0x25c   :  { %1594 = vmatprep.subr.bf16.mxu0 %v3740_v38  ;;  %1635 = vmatprep.subr.bf16.mxu1 %v3745_v39 }
 0x25d   :  { %1624 = vmatprep.mubr.bf16.mxu0 %v4527_v7  ;;  %1665 = vmatprep.mubr.bf16.mxu1 %v4527_v7 }
 0x25f   :  { %1595 = vmatpush1.bf16.msra.mxu0 %v3750_v40  ;;  %1636 = vmatpush1.bf16.msra.mxu1 %v3757_v41 }
 0x260   :  { %1596 = vmatprep.subr.bf16.mxu0 %v3764_v42  ;;  %1637 = vmatprep.subr.bf16.mxu1 %v3769_v43  ;;  %v4528_v43 = vld [vmem:[#allocation5_spill] sm:$0xff] }
 0x263   :  { %1597 = vmatpush1.bf16.msra.mxu0 %v3779_v45  ;;  %1638 = vmatpush1.bf16.msra.mxu1 %v3784_v46 }
 0x264   :  { %1598 = vmatprep.subr.bf16.mxu0 %v3791_v47  ;;  %1639 = vmatprep.subr.bf16.mxu1 %v3798_v48 }
 0x267   :  { %1599 = vmatpush1.bf16.msra.mxu0 %v3803_v49  ;;  %1640 = vmatpush1.bf16.msra.mxu1 %v3808_v50 }
 0x268   :  { %1600 = vmatprep.subr.bf16.mxu0 %v3815_v51  ;;  %1641 = vmatprep.subr.bf16.mxu1 %v3825_v53 }
 0x26b   :  { %1601 = vmatpush1.bf16.msra.mxu0 %v3832_v54  ;;  %1642 = vmatpush1.bf16.msra.mxu1 %v3837_v55 }
 0x26c   :  { %1602 = vmatprep.subr.bf16.mxu0 %v3845_v57  ;;  %1643 = vmatprep.subr.bf16.mxu1 %v3850_v58 }
 0x26f   :  { %1603 = vmatpush1.bf16.msra.mxu0 %v3859_v59  ;;  %1644 = vmatpush1.bf16.msra.mxu1 %v3864_v60 }
 0x270   :  { %1604 = vmatprep.subr.bf16.mxu0 %v3869_v61  ;;  %1645 = vmatprep.subr.bf16.mxu1 %v3874_v62 }
 0x273   :  { %1605 = vmatpush1.bf16.msra.mxu0 %v3888_v0  ;;  %1646 = vmatpush1.bf16.msra.mxu1 %v3893_v2 }
 0x274   :  { %1606 = vmatprep.subr.bf16.mxu0 %v3898_v3  ;;  %1647 = vmatprep.subr.bf16.mxu1 %v3903_v4 }
 0x277   :  { %1607 = vmatpush1.bf16.msra.mxu0 %v3914_v5  ;;  %1648 = vmatpush1.bf16.msra.mxu1 %v3919_v6 }
 0x278   :  { %1904 = vmatprep.subr.bf16.mxu0 %v4150_v26  ;;  %1945 = vmatprep.subr.bf16.mxu1 %v4155_v32 }
 0x32d   :  { %v1314_v36 = vpop.f32.mrb[24].mxu0  ;;  %v1355_v37 = vpop.f32.mrb[24].mxu1 }
 0x32e   :  { %v1362_v38 = vadd.f32 %v1314_v36, %v3984_v35  ;;  %v1364_v39 = vadd.f32 %v1355_v37, %v3987_v52  ;;  %v1316_v40 = vpop.f32.mrb[25].mxu0  ;;  %v1357_v41 = vpop.f32.mrb[25].mxu1  ;;  %v4328_v36 = vld [vmem:[%s4497_s2 + $0xe0] ss:$16 sps:$4 sm:$0xff]   ;;  %v4333_v37 = vld [vmem:[%s4497_s2 + $0xe8] ss:$16 sps:$4 sm:$0xff]  }
 0x32f   :  { %v1363_v42 = vadd.f32 %v1316_v40, %v3989_v63  ;;  %v1365_v45 = vadd.f32 %v1357_v41, %v4528_v43  ;;  %v1318_v46 = vpop.f32.mrb[26].mxu0  ;;  %v1359_v47 = vpop.f32.mrb[26].mxu1  ;;  %v4529_v40 = vld [vmem:[#allocation6_spill] sm:$0xff] }
 0x330   :  { %v3113_v48 = vmul.f32 -1.442695, %v1362_v38  ;;  %v1319_v49 = vpop.f32.mrb[27].mxu0  ;;  %v1360_v50 = vpop.f32.mrb[27].mxu1  ;;  %v4531_v47 = vld [vmem:[#allocation8_spill] sm:$0xff] }
 0x331   :  { %v3114_v51 = vmul.f32 -1.442695, %v1363_v42  ;;  %v3115_v53 = vmul.f32 -1.442695, %v1365_v45  ;;  %v4530_v42 = vld [vmem:[#allocation7_spill] sm:$0xff]  ;;  %v4532_v49 = vld [vmem:[#allocation9_spill] sm:$0xff] }
 0x332   :  { %3472 = vpow2.f32 %v3113_v48 }
 0x333   :  { %3474 = vpow2.f32 %v3114_v51 }
 0x334   :  { %3476 = vpow2.f32 %v3115_v53 }
 0x335   :  { %3478 = vtanh.f32 %v1364_v39 }
 0x33c   :  { %v3473_v54 = vpop.eup %3472 }
 0x33d   :  { %v3475_v55 = vpop.eup %3474  ;;  %v1369_v57 = vadd.f32 1.0, %v3473_v54 }
 0x33e   :  { %v1375_v58 = vadd.f32 1.0, %v3475_v55  ;;  %v3477_v59 = vpop.eup %3476 }
 0x33f   :  { %3480 = vrcp.f32 %v1369_v57  ;;  %v3479_v60 = vpop.eup %3478  ;;  %v1382_v2 = vadd.f32 1.0, %v3477_v59 }
 0x340   :  { %3482 = vrcp.f32 %v1375_v58 }
 0x341   :  { %3484 = vrcp.f32 %v1382_v2 }
 0x349   :  { %v3481_v61 = vpop.eup %3480 }
 0x34a   :  { %v3483_v62 = vpop.eup %3482  ;;  %v1387_v0 = vmul.f32 %v3481_v61, %v3479_v60 }
 0x34b   :  { %v1386_v3 = vmul.f32 %v3483_v62, %v4096_v11  ;;  %v3485_v5 = vpop.eup %3484  ;;  %v4294_v11 = vld [vmem:[%s4497_s2 + $0xc4] ss:$16 sps:$4 sm:$0xff]  }
 0x34d   :  { %v4139_v4 = vadd.f32 %v1387_v0, %v1386_v3 }
 0x34f   :  { %3486 = vtanh.f32 %v4139_v4 }
 0x359   :  { %v3487_v6 = vpop.eup %3486 }
 0x35a   :  { %v1390_v35 = vmul.f32 %v3487_v6, %v3485_v5 }
 0x35c   :  { %v1391_v52 = vpack.c.bf16 %v1390_v35, %v1390_v35 }
 0x35e   :  { %1393 = vst [vmem:[#allocation3] sm:$0xf] %v1391_v52  ;;  %1394 = vst [vmem:[%s4501_s6 + $0x8] sm:$0xf] %v1391_v52 }
 0x365   :  { %v1399_v63 = vld [vmem:[#allocation3] sm:$0xf] }
 0x366   :  { %1625 = vmatmul.mubr.bf16.vlgmr.msra.gmra.mrb[28].mxu0 %v1399_v63  ;;  %1666 = vmatmul.mubr.bf16.vlgmr.msra.gmra.mrb[28].mxu1 %v1399_v63 }
 0x367   :  { %1936 = vmatprep.mubr.bf16.mxu0 %v4527_v7  ;;  %1977 = vmatprep.mubr.bf16.mxu1 %v4527_v7 }
 0x368   :  { %1905 = vmatpush1.bf16.msra.mxu0 %v4160_v16  ;;  %1946 = vmatpush1.bf16.msra.mxu1 %v4165_v15 }
 0x369   :  { %1906 = vmatprep.subr.bf16.mxu0 %v4174_v17  ;;  %1947 = vmatprep.subr.bf16.mxu1 %v4179_v19 }
 0x36c   :  { %1907 = vmatpush1.bf16.msra.mxu0 %v4184_v18  ;;  %1948 = vmatpush1.bf16.msra.mxu1 %v4189_v20 }
 0x36d   :  { %1908 = vmatprep.subr.bf16.mxu0 %v4198_v1  ;;  %1949 = vmatprep.subr.bf16.mxu1 %v4203_v21 }
 0x370   :  { %1909 = vmatpush1.bf16.msra.mxu0 %v4208_v22  ;;  %1950 = vmatpush1.bf16.msra.mxu1 %v4213_v33 }
 0x371   :  { %1910 = vmatprep.subr.bf16.mxu0 %v4222_v34  ;;  %1951 = vmatprep.subr.bf16.mxu1 %v4227_v10 }
 0x374   :  { %1911 = vmatpush1.bf16.msra.mxu0 %v4232_v8  ;;  %1952 = vmatpush1.bf16.msra.mxu1 %v4237_v25 }
 0x375   :  { %1912 = vmatprep.subr.bf16.mxu0 %v4246_v27  ;;  %1953 = vmatprep.subr.bf16.mxu1 %v4251_v29 }
 0x378   :  { %1913 = vmatpush1.bf16.msra.mxu0 %v4256_v12  ;;  %1954 = vmatpush1.bf16.msra.mxu1 %v4261_v30 }
 0x379   :  { %1914 = vmatprep.subr.bf16.mxu0 %v4270_v28  ;;  %1955 = vmatprep.subr.bf16.mxu1 %v4275_v56 }
 0x37c   :  { %1915 = vmatpush1.bf16.msra.mxu0 %v4280_v23  ;;  %1956 = vmatpush1.bf16.msra.mxu1 %v4285_v44 }
 0x37d   :  { %1916 = vmatprep.subr.bf16.mxu0 %v4294_v11  ;;  %1957 = vmatprep.subr.bf16.mxu1 %v4299_v31 }
 0x380   :  { %1917 = vmatpush1.bf16.msra.mxu0 %v4304_v14  ;;  %1958 = vmatpush1.bf16.msra.mxu1 %v4309_v9 }
 0x381   :  { %1918 = vmatprep.subr.bf16.mxu0 %v4316_v13  ;;  %1959 = vmatprep.subr.bf16.mxu1 %v4321_v24 }
 0x384   :  { %1919 = vmatpush1.bf16.msra.mxu0 %v4328_v36  ;;  %1960 = vmatpush1.bf16.msra.mxu1 %v4333_v37 }
 0x385   :  { %2216 = vmatprep.subr.bf16.mxu0 %v4150_v26  ;;  %2257 = vmatprep.subr.bf16.mxu1 %v4155_v32 }
 0x439   :  { %v1626_v38 = vpop.f32.mrb[28].mxu0  ;;  %v1667_v39 = vpop.f32.mrb[28].mxu1 }
 0x43a   :  { %v1674_v41 = vadd.f32 %v1626_v38, %v4529_v40  ;;  %v1676_v43 = vadd.f32 %v1667_v39, %v4530_v42  ;;  %v1628_v45 = vpop.f32.mrb[29].mxu0  ;;  %v1669_v46 = vpop.f32.mrb[29].mxu1 }
 0x43b   :  { %v1675_v48 = vadd.f32 %v1628_v45, %v4531_v47  ;;  %v1677_v50 = vadd.f32 %v1669_v46, %v4532_v49  ;;  %v1630_v51 = vpop.f32.mrb[30].mxu0  ;;  %v1671_v53 = vpop.f32.mrb[30].mxu1  ;;  %v4533_v46 = vld [vmem:[#allocation10_spill] sm:$0xff] }
 0x43c   :  { %v3148_v54 = vmul.f32 -1.442695, %v1674_v41  ;;  %v1631_v55 = vpop.f32.mrb[31].mxu0  ;;  %v1672_v57 = vpop.f32.mrb[31].mxu1  ;;  %v4535_v53 = vld [vmem:[#allocation12_spill] sm:$0xff] }
 0x43d   :  { %v3149_v58 = vmul.f32 -1.442695, %v1675_v48  ;;  %v3150_v59 = vmul.f32 -1.442695, %v1677_v50  ;;  %v4534_v48 = vld [vmem:[#allocation11_spill] sm:$0xff]  ;;  %v4536_v55 = vld [vmem:[#allocation13_spill] sm:$0xff] }
 0x43e   :  { %3488 = vpow2.f32 %v3148_v54 }
 0x43f   :  { %3490 = vpow2.f32 %v3149_v58 }
 0x440   :  { %3492 = vpow2.f32 %v3150_v59 }
 0x441   :  { %3494 = vtanh.f32 %v1676_v43 }
 0x448   :  { %v3489_v60 = vpop.eup %3488 }
 0x449   :  { %v3491_v61 = vpop.eup %3490  ;;  %v1681_v62 = vadd.f32 1.0, %v3489_v60 }
 0x44a   :  { %v1687_v0 = vadd.f32 1.0, %v3491_v61  ;;  %v3493_v2 = vpop.eup %3492 }
 0x44b   :  { %3496 = vrcp.f32 %v1681_v62  ;;  %v3495_v3 = vpop.eup %3494  ;;  %v1694_v52 = vadd.f32 1.0, %v3493_v2 }
 0x44c   :  { %3498 = vrcp.f32 %v1687_v0 }
 0x44d   :  { %3500 = vrcp.f32 %v1694_v52 }
 0x455   :  { %v3497_v5 = vpop.eup %3496 }
 0x456   :  { %v3499_v6 = vpop.eup %3498  ;;  %v1699_v35 = vmul.f32 %v3497_v5, %v3495_v3 }
 0x457   :  { %v1698_v63 = vmul.f32 %v3499_v6, %v4139_v4  ;;  %v3501_v39 = vpop.eup %3500 }
 0x459   :  { %v4346_v38 = vadd.f32 %v1699_v35, %v1698_v63 }
 0x45b   :  { %3502 = vtanh.f32 %v4346_v38 }
 0x465   :  { %v3503_v40 = vpop.eup %3502 }
 0x466   :  { %v1702_v41 = vmul.f32 %v3503_v40, %v3501_v39 }
 0x468   :  { %v1703_v42 = vpack.c.bf16 %v1702_v41, %v1702_v41 }
 0x46a   :  { %1705 = vst [vmem:[#allocation3] sm:$0xf] %v1703_v42  ;;  %1706 = vst [vmem:[%s4501_s6 + $0xc] sm:$0xf] %v1703_v42 }
 0x471   :  { %v1711_v43 = vld [vmem:[#allocation3] sm:$0xf] }
 0x472   :  { %1937 = vmatmul.mubr.bf16.vlgmr.msra.gmra.mrb[32].mxu0 %v1711_v43  ;;  %1978 = vmatmul.mubr.bf16.vlgmr.msra.gmra.mrb[32].mxu1 %v1711_v43 }
 0x473   :  { %2217 = vmatpush1.bf16.msra.mxu0 %v4160_v16  ;;  %2258 = vmatpush1.bf16.msra.mxu1 %v4165_v15 }
 0x474   :  { %2218 = vmatprep.subr.bf16.mxu0 %v4174_v17  ;;  %2259 = vmatprep.subr.bf16.mxu1 %v4179_v19 }
 0x475   :  { %2248 = vmatprep.mubr.bf16.mxu0 %v4527_v7  ;;  %2289 = vmatprep.mubr.bf16.mxu1 %v4527_v7 }
 0x477   :  { %2219 = vmatpush1.bf16.msra.mxu0 %v4184_v18  ;;  %2260 = vmatpush1.bf16.msra.mxu1 %v4189_v20 }
 0x478   :  { %2220 = vmatprep.subr.bf16.mxu0 %v4198_v1  ;;  %2261 = vmatprep.subr.bf16.mxu1 %v4203_v21 }
 0x47b   :  { %2221 = vmatpush1.bf16.msra.mxu0 %v4208_v22  ;;  %2262 = vmatpush1.bf16.msra.mxu1 %v4213_v33 }
 0x47c   :  { %2222 = vmatprep.subr.bf16.mxu0 %v4222_v34  ;;  %2263 = vmatprep.subr.bf16.mxu1 %v4227_v10 }
 0x47f   :  { %2223 = vmatpush1.bf16.msra.mxu0 %v4232_v8  ;;  %2264 = vmatpush1.bf16.msra.mxu1 %v4237_v25 }
 0x480   :  { %2224 = vmatprep.subr.bf16.mxu0 %v4246_v27  ;;  %2265 = vmatprep.subr.bf16.mxu1 %v4251_v29 }
 0x483   :  { %2225 = vmatpush1.bf16.msra.mxu0 %v4256_v12  ;;  %2266 = vmatpush1.bf16.msra.mxu1 %v4261_v30 }
 0x484   :  { %2226 = vmatprep.subr.bf16.mxu0 %v4270_v28  ;;  %2267 = vmatprep.subr.bf16.mxu1 %v4275_v56 }
 0x487   :  { %2227 = vmatpush1.bf16.msra.mxu0 %v4280_v23  ;;  %2268 = vmatpush1.bf16.msra.mxu1 %v4285_v44 }
 0x488   :  { %2228 = vmatprep.subr.bf16.mxu0 %v4294_v11  ;;  %2269 = vmatprep.subr.bf16.mxu1 %v4299_v31 }
 0x48b   :  { %2229 = vmatpush1.bf16.msra.mxu0 %v4304_v14  ;;  %2270 = vmatpush1.bf16.msra.mxu1 %v4309_v9 }
 0x48c   :  { %2230 = vmatprep.subr.bf16.mxu0 %v4316_v13  ;;  %2271 = vmatprep.subr.bf16.mxu1 %v4321_v24 }
 0x48f   :  { %2231 = vmatpush1.bf16.msra.mxu0 %v4328_v36  ;;  %2272 = vmatpush1.bf16.msra.mxu1 %v4333_v37 }
 0x490   :  { %2528 = vmatprep.subr.bf16.mxu0 %v4150_v26  ;;  %2569 = vmatprep.subr.bf16.mxu1 %v4155_v32 }
 0x545   :  { %v1938_v4 = vpop.f32.mrb[32].mxu0  ;;  %v1979_v45 = vpop.f32.mrb[32].mxu1 }
 0x546   :  { %v1986_v47 = vadd.f32 %v1938_v4, %v4533_v46  ;;  %v1988_v49 = vadd.f32 %v1979_v45, %v4534_v48  ;;  %v1940_v50 = vpop.f32.mrb[33].mxu0  ;;  %v1981_v51 = vpop.f32.mrb[33].mxu1 }
 0x547   :  { %v1987_v54 = vadd.f32 %v1940_v50, %v4535_v53  ;;  %v1989_v57 = vadd.f32 %v1981_v51, %v4536_v55  ;;  %v1942_v58 = vpop.f32.mrb[34].mxu0  ;;  %v1983_v59 = vpop.f32.mrb[34].mxu1  ;;  %v4537_v51 = vld [vmem:[#allocation14_spill] sm:$0xff] }
 0x548   :  { %v3183_v60 = vmul.f32 -1.442695, %v1986_v47  ;;  %v1943_v61 = vpop.f32.mrb[35].mxu0  ;;  %v1984_v62 = vpop.f32.mrb[35].mxu1  ;;  %v4539_v59 = vld [vmem:[#allocation16_spill] sm:$0xff] }
 0x549   :  { %v3184_v0 = vmul.f32 -1.442695, %v1987_v54  ;;  %v3185_v2 = vmul.f32 -1.442695, %v1989_v57  ;;  %v4538_v54 = vld [vmem:[#allocation15_spill] sm:$0xff]  ;;  %v4540_v61 = vld [vmem:[#allocation17_spill] sm:$0xff] }
 0x54a   :  { %3504 = vpow2.f32 %v3183_v60 }
 0x54b   :  { %3506 = vpow2.f32 %v3184_v0 }
 0x54c   :  { %3508 = vpow2.f32 %v3185_v2 }
 0x54d   :  { %3510 = vtanh.f32 %v1988_v49 }
 0x554   :  { %v3505_v3 = vpop.eup %3504 }
 0x555   :  { %v3507_v5 = vpop.eup %3506  ;;  %v1993_v6 = vadd.f32 1.0, %v3505_v3 }
 0x556   :  { %v1999_v35 = vadd.f32 1.0, %v3507_v5  ;;  %v3509_v52 = vpop.eup %3508 }
 0x557   :  { %3512 = vrcp.f32 %v1993_v6  ;;  %v3511_v63 = vpop.eup %3510  ;;  %v2006_v42 = vadd.f32 1.0, %v3509_v52 }
 0x558   :  { %3514 = vrcp.f32 %v1999_v35 }
 0x559   :  { %3516 = vrcp.f32 %v2006_v42 }
 0x561   :  { %v3513_v39 = vpop.eup %3512 }
 0x562   :  { %v3515_v40 = vpop.eup %3514  ;;  %v2011_v41 = vmul.f32 %v3513_v39, %v3511_v63 }
 0x563   :  { %v2010_v43 = vmul.f32 %v3515_v40, %v4346_v38  ;;  %v3517_v45 = vpop.eup %3516 }
 0x565   :  { %v4391_v4 = vadd.f32 %v2011_v41, %v2010_v43 }
 0x567   :  { %3518 = vtanh.f32 %v4391_v4 }
 0x571   :  { %v3519_v46 = vpop.eup %3518 }
 0x572   :  { %v2014_v47 = vmul.f32 %v3519_v46, %v3517_v45 }
 0x574   :  { %v2015_v48 = vpack.c.bf16 %v2014_v47, %v2014_v47 }
 0x576   :  { %2018 = vst [vmem:[%s4501_s6 + $0x10] sm:$0xf] %v2015_v48  ;;  %2017 = vst [vmem:[#allocation3] sm:$0xf] %v2015_v48 }
 0x57d   :  { %v2023_v49 = vld [vmem:[#allocation3] sm:$0xf] }
 0x57e   :  { %2249 = vmatmul.mubr.bf16.vlgmr.msra.gmra.mrb[36].mxu0 %v2023_v49  ;;  %2290 = vmatmul.mubr.bf16.vlgmr.msra.gmra.mrb[36].mxu1 %v2023_v49 }
 0x57f   :  { %2529 = vmatpush1.bf16.msra.mxu0 %v4160_v16  ;;  %2570 = vmatpush1.bf16.msra.mxu1 %v4165_v15 }
 0x580   :  { %2530 = vmatprep.subr.bf16.mxu0 %v4174_v17  ;;  %2571 = vmatprep.subr.bf16.mxu1 %v4179_v19 }
 0x581   :  { %2560 = vmatprep.mubr.bf16.mxu0 %v4527_v7  ;;  %2601 = vmatprep.mubr.bf16.mxu1 %v4527_v7 }
 0x583   :  { %2531 = vmatpush1.bf16.msra.mxu0 %v4184_v18  ;;  %2572 = vmatpush1.bf16.msra.mxu1 %v4189_v20 }
 0x584   :  { %2532 = vmatprep.subr.bf16.mxu0 %v4198_v1  ;;  %2573 = vmatprep.subr.bf16.mxu1 %v4203_v21 }
 0x587   :  { %2533 = vmatpush1.bf16.msra.mxu0 %v4208_v22  ;;  %2574 = vmatpush1.bf16.msra.mxu1 %v4213_v33 }
 0x588   :  { %2534 = vmatprep.subr.bf16.mxu0 %v4222_v34  ;;  %2575 = vmatprep.subr.bf16.mxu1 %v4227_v10 }
 0x58b   :  { %2535 = vmatpush1.bf16.msra.mxu0 %v4232_v8  ;;  %2576 = vmatpush1.bf16.msra.mxu1 %v4237_v25 }
 0x58c   :  { %2536 = vmatprep.subr.bf16.mxu0 %v4246_v27  ;;  %2577 = vmatprep.subr.bf16.mxu1 %v4251_v29 }
 0x58f   :  { %2537 = vmatpush1.bf16.msra.mxu0 %v4256_v12  ;;  %2578 = vmatpush1.bf16.msra.mxu1 %v4261_v30 }
 0x590   :  { %2538 = vmatprep.subr.bf16.mxu0 %v4270_v28  ;;  %2579 = vmatprep.subr.bf16.mxu1 %v4275_v56 }
 0x593   :  { %2539 = vmatpush1.bf16.msra.mxu0 %v4280_v23  ;;  %2580 = vmatpush1.bf16.msra.mxu1 %v4285_v44 }
 0x594   :  { %2540 = vmatprep.subr.bf16.mxu0 %v4294_v11  ;;  %2581 = vmatprep.subr.bf16.mxu1 %v4299_v31 }
 0x597   :  { %2541 = vmatpush1.bf16.msra.mxu0 %v4304_v14  ;;  %2582 = vmatpush1.bf16.msra.mxu1 %v4309_v9 }
 0x598   :  { %2542 = vmatprep.subr.bf16.mxu0 %v4316_v13  ;;  %2583 = vmatprep.subr.bf16.mxu1 %v4321_v24 }
 0x59b   :  { %2543 = vmatpush1.bf16.msra.mxu0 %v4328_v36  ;;  %2584 = vmatpush1.bf16.msra.mxu1 %v4333_v37 }
 0x59c   :  { %2840 = vmatprep.subr.bf16.mxu0 %v4150_v26  ;;  %2881 = vmatprep.subr.bf16.mxu1 %v4155_v32 }
 0x651   :  { %v2250_v38 = vpop.f32.mrb[36].mxu0  ;;  %v2291_v50 = vpop.f32.mrb[36].mxu1 }
 0x652   :  { %v2298_v53 = vadd.f32 %v2250_v38, %v4537_v51  ;;  %v2300_v55 = vadd.f32 %v2291_v50, %v4538_v54  ;;  %v2252_v57 = vpop.f32.mrb[37].mxu0  ;;  %v2293_v58 = vpop.f32.mrb[37].mxu1 }
 0x653   :  { %v2299_v60 = vadd.f32 %v2252_v57, %v4539_v59  ;;  %v2301_v62 = vadd.f32 %v2293_v58, %v4540_v61  ;;  %v2254_v0 = vpop.f32.mrb[38].mxu0  ;;  %v2295_v2 = vpop.f32.mrb[38].mxu1  ;;  %v4545_v61 = vld [vmem:[#allocation22_spill] sm:$0xff] }
 0x654   :  { %v3218_v3 = vmul.f32 -1.442695, %v2298_v53  ;;  %v2255_v5 = vpop.f32.mrb[39].mxu0  ;;  %v2296_v6 = vpop.f32.mrb[39].mxu1  ;;  %v4546_v0 = vld [vmem:[#allocation23_spill] sm:$0xff] }
 0x655   :  { %v3219_v26 = vmul.f32 -1.442695, %v2299_v60  ;;  %v3220_v32 = vmul.f32 -1.442695, %v2301_v62  ;;  %v4547_v6 = vld [vmem:[#allocation24_spill] sm:$0xff] }
 0x656   :  { %3520 = vpow2.f32 %v3218_v3 }
 0x657   :  { %3522 = vpow2.f32 %v3219_v26 }
 0x658   :  { %3524 = vpow2.f32 %v3220_v32  ;;  %v4548_v32 = vld [vmem:[#allocation25_spill] sm:$0xff] }
 0x659   :  { %3526 = vtanh.f32 %v2300_v55 }
 0x660   :  { %v3521_v35 = vpop.eup %3520 }
 0x661   :  { %v3523_v52 = vpop.eup %3522  ;;  %v2305_v63 = vadd.f32 1.0, %v3521_v35 }
 0x662   :  { %v2311_v39 = vadd.f32 1.0, %v3523_v52  ;;  %v3525_v40 = vpop.eup %3524 }
 0x663   :  { %3528 = vrcp.f32 %v2305_v63  ;;  %v3527_v41 = vpop.eup %3526  ;;  %v2318_v46 = vadd.f32 1.0, %v3525_v40 }
 0x664   :  { %3530 = vrcp.f32 %v2311_v39 }
 0x665   :  { %3532 = vrcp.f32 %v2318_v46 }
 0x66d   :  { %v3529_v42 = vpop.eup %3528 }
 0x66e   :  { %v3531_v43 = vpop.eup %3530  ;;  %v2323_v45 = vmul.f32 %v3529_v42, %v3527_v41 }
 0x66f   :  { %v2322_v47 = vmul.f32 %v3531_v43, %v4391_v4  ;;  %v3533_v49 = vpop.eup %3532 }
 0x671   :  { %v4436_v48 = vadd.f32 %v2323_v45, %v2322_v47 }
 0x673   :  { %3534 = vtanh.f32 %v4436_v48 }
 0x67d   :  { %v3535_v38 = vpop.eup %3534 }
 0x67e   :  { %v2326_v50 = vmul.f32 %v3535_v38, %v3533_v49 }
 0x680   :  { %v2327_v51 = vpack.c.bf16 %v2326_v50, %v2326_v50 }
 0x682   :  { %2330 = vst [vmem:[%s4501_s6 + $0x14] sm:$0xf] %v2327_v51  ;;  %2329 = vst [vmem:[#allocation3] sm:$0xf] %v2327_v51 }
 0x689   :  { %v2335_v53 = vld [vmem:[#allocation3] sm:$0xf] }
 0x68a   :  { %2561 = vmatmul.mubr.bf16.vlgmr.msra.gmra.mrb[40].mxu0 %v2335_v53  ;;  %2602 = vmatmul.mubr.bf16.vlgmr.msra.gmra.mrb[40].mxu1 %v2335_v53 }
 0x68b   :  { %2841 = vmatpush1.bf16.msra.mxu0 %v4160_v16  ;;  %2882 = vmatpush1.bf16.msra.mxu1 %v4165_v15  ;;  %v4541_v15 = vld [vmem:[#allocation18_spill] sm:$0xff] }
 0x68c   :  { %2842 = vmatprep.subr.bf16.mxu0 %v4174_v17  ;;  %2883 = vmatprep.subr.bf16.mxu1 %v4179_v19  ;;  %v4542_v19 = vld [vmem:[#allocation19_spill] sm:$0xff] }
 0x68d   :  { %2872 = vmatprep.mubr.bf16.mxu0 %v4527_v7  ;;  %2913 = vmatprep.mubr.bf16.mxu1 %v4527_v7 }
 0x68f   :  { %2843 = vmatpush1.bf16.msra.mxu0 %v4184_v18  ;;  %2884 = vmatpush1.bf16.msra.mxu1 %v4189_v20 }
 0x690   :  { %2844 = vmatprep.subr.bf16.mxu0 %v4198_v1  ;;  %2885 = vmatprep.subr.bf16.mxu1 %v4203_v21  ;;  %v4543_v21 = vld [vmem:[#allocation20_spill] sm:$0xff] }
 0x693   :  { %2845 = vmatpush1.bf16.msra.mxu0 %v4208_v22  ;;  %2886 = vmatpush1.bf16.msra.mxu1 %v4213_v33  ;;  %v4544_v33 = vld [vmem:[#allocation21_spill] sm:$0xff] }
 0x694   :  { %2846 = vmatprep.subr.bf16.mxu0 %v4222_v34  ;;  %2887 = vmatprep.subr.bf16.mxu1 %v4227_v10 }
 0x697   :  { %2847 = vmatpush1.bf16.msra.mxu0 %v4232_v8  ;;  %2888 = vmatpush1.bf16.msra.mxu1 %v4237_v25 }
 0x698   :  { %2848 = vmatprep.subr.bf16.mxu0 %v4246_v27  ;;  %2889 = vmatprep.subr.bf16.mxu1 %v4251_v29 }
 0x69b   :  { %2849 = vmatpush1.bf16.msra.mxu0 %v4256_v12  ;;  %2890 = vmatpush1.bf16.msra.mxu1 %v4261_v30 }
 0x69c   :  { %2850 = vmatprep.subr.bf16.mxu0 %v4270_v28  ;;  %2891 = vmatprep.subr.bf16.mxu1 %v4275_v56 }
 0x69f   :  { %2851 = vmatpush1.bf16.msra.mxu0 %v4280_v23  ;;  %2892 = vmatpush1.bf16.msra.mxu1 %v4285_v44 }
 0x6a0   :  { %2852 = vmatprep.subr.bf16.mxu0 %v4294_v11  ;;  %2893 = vmatprep.subr.bf16.mxu1 %v4299_v31 }
 0x6a3   :  { %2853 = vmatpush1.bf16.msra.mxu0 %v4304_v14  ;;  %2894 = vmatpush1.bf16.msra.mxu1 %v4309_v9 }
 0x6a4   :  { %2854 = vmatprep.subr.bf16.mxu0 %v4316_v13  ;;  %2895 = vmatprep.subr.bf16.mxu1 %v4321_v24 }
 0x6a7   :  { %2855 = vmatpush1.bf16.msra.mxu0 %v4328_v36  ;;  %2896 = vmatpush1.bf16.msra.mxu1 %v4333_v37 }
 0x75d   :  { %v2562_v7 = vpop.f32.mrb[40].mxu0  ;;  %v2603_v16 = vpop.f32.mrb[40].mxu1 }
 0x75e   :  { %v2610_v17 = vadd.f32 %v2562_v7, %v4541_v15  ;;  %v2612_v18 = vadd.f32 %v2603_v16, %v4542_v19  ;;  %v2564_v20 = vpop.f32.mrb[41].mxu0  ;;  %v2605_v1 = vpop.f32.mrb[41].mxu1 }
 0x75f   :  { %v2611_v22 = vadd.f32 %v2564_v20, %v4543_v21  ;;  %v2613_v34 = vadd.f32 %v2605_v1, %v4544_v33  ;;  %v2566_v10 = vpop.f32.mrb[42].mxu0  ;;  %v2607_v8 = vpop.f32.mrb[42].mxu1 }
 0x760   :  { %v3253_v25 = vmul.f32 -1.442695, %v2610_v17  ;;  %v2567_v27 = vpop.f32.mrb[43].mxu0  ;;  %v2608_v29 = vpop.f32.mrb[43].mxu1 }
 0x761   :  { %v3254_v12 = vmul.f32 -1.442695, %v2611_v22  ;;  %v3255_v30 = vmul.f32 -1.442695, %v2613_v34 }
 0x762   :  { %3536 = vpow2.f32 %v3253_v25 }
 0x763   :  { %3538 = vpow2.f32 %v3254_v12 }
 0x764   :  { %3540 = vpow2.f32 %v3255_v30 }
 0x765   :  { %3542 = vtanh.f32 %v2612_v18 }
 0x76c   :  { %v3537_v28 = vpop.eup %3536 }
 0x76d   :  { %v3539_v56 = vpop.eup %3538  ;;  %v2617_v23 = vadd.f32 1.0, %v3537_v28 }
 0x76e   :  { %v2623_v44 = vadd.f32 1.0, %v3539_v56  ;;  %v3541_v11 = vpop.eup %3540 }
 0x76f   :  { %3544 = vrcp.f32 %v2617_v23  ;;  %v3543_v31 = vpop.eup %3542  ;;  %v2630_v24 = vadd.f32 1.0, %v3541_v11 }
 0x770   :  { %3546 = vrcp.f32 %v2623_v44 }
 0x771   :  { %3548 = vrcp.f32 %v2630_v24 }
 0x779   :  { %v3545_v14 = vpop.eup %3544 }
 0x77a   :  { %v3547_v9 = vpop.eup %3546  ;;  %v2635_v13 = vmul.f32 %v3545_v14, %v3543_v31 }
 0x77b   :  { %v2634_v36 = vmul.f32 %v3547_v9, %v4436_v48  ;;  %v3549_v4 = vpop.eup %3548 }
 0x77d   :  { %v2636_v37 = vadd.f32 %v2635_v13, %v2634_v36 }
 0x77f   :  { %3550 = vtanh.f32 %v2636_v37 }
 0x789   :  { %v3551_v54 = vpop.eup %3550 }
 0x78a   :  { %v2638_v55 = vmul.f32 %v3551_v54, %v3549_v4 }
 0x78c   :  { %v2639_v57 = vpack.c.bf16 %v2638_v55, %v2638_v55 }
 0x78e   :  { %2642 = vst [vmem:[%s4501_s6 + $0x18] sm:$0xf] %v2639_v57  ;;  %2641 = vst [vmem:[#allocation3] sm:$0xf] %v2639_v57 }
 0x795   :  { %v2647_v58 = vld [vmem:[#allocation3] sm:$0xf] }
 0x796   :  { %2873 = vmatmul.mubr.bf16.vlgmr.msra.gmra.mrb[44].mxu0 %v2647_v58  ;;  %2914 = vmatmul.mubr.bf16.vlgmr.msra.gmra.mrb[44].mxu1 %v2647_v58 }
 0x869   :  { %v2874_v59 = vpop.f32.mrb[44].mxu0  ;;  %v2915_v60 = vpop.f32.mrb[44].mxu1 }
 0x86a   :  { %v2922_v62 = vadd.f32 %v2874_v59, %v4545_v61  ;;  %v2924_v2 = vadd.f32 %v2915_v60, %v4546_v0  ;;  %v2876_v3 = vpop.f32.mrb[45].mxu0  ;;  %v2917_v5 = vpop.f32.mrb[45].mxu1 }
 0x86b   :  { %v2923_v26 = vadd.f32 %v2876_v3, %v4547_v6  ;;  %v2925_v35 = vadd.f32 %v2917_v5, %v4548_v32  ;;  %v2878_v52 = vpop.f32.mrb[46].mxu0  ;;  %v2919_v63 = vpop.f32.mrb[46].mxu1 }
 0x86c   :  { %v3288_v39 = vmul.f32 -1.442695, %v2922_v62  ;;  %v2879_v40 = vpop.f32.mrb[47].mxu0  ;;  %v2920_v41 = vpop.f32.mrb[47].mxu1 }
 0x86d   :  { %v3289_v42 = vmul.f32 -1.442695, %v2923_v26  ;;  %v3290_v43 = vmul.f32 -1.442695, %v2925_v35 }
 0x86e   :  { %3552 = vpow2.f32 %v3288_v39 }
 0x86f   :  { %3554 = vpow2.f32 %v3289_v42 }
 0x870   :  { %3556 = vpow2.f32 %v3290_v43 }
 0x871   :  { %3558 = vtanh.f32 %v2924_v2 }
 0x878   :  { %v3553_v45 = vpop.eup %3552 }
 0x879   :  { %v3555_v46 = vpop.eup %3554  ;;  %v2929_v47 = vadd.f32 1.0, %v3553_v45 }
 0x87a   :  { %v2935_v48 = vadd.f32 1.0, %v3555_v46  ;;  %v3557_v49 = vpop.eup %3556 }
 0x87b   :  { %3560 = vrcp.f32 %v2929_v47  ;;  %v3559_v38 = vpop.eup %3558  ;;  %v2942_v7 = vadd.f32 1.0, %v3557_v49 }
 0x87c   :  { %3562 = vrcp.f32 %v2935_v48 }
 0x87d   :  { %3564 = vrcp.f32 %v2942_v7 }
 0x885   :  { %v3561_v50 = vpop.eup %3560 }
 0x886   :  { %v3563_v51 = vpop.eup %3562  ;;  %v2947_v53 = vmul.f32 %v3561_v50, %v3559_v38 }
 0x887   :  { %v2946_v16 = vmul.f32 %v3563_v51, %v2636_v37  ;;  %v3565_v17 = vpop.eup %3564 }
 0x889   :  { %v2948_v15 = vadd.f32 %v2947_v53, %v2946_v16 }
 0x88b   :  { %3566 = vtanh.f32 %v2948_v15  ;;  %2962 = vst [vmem:[%s4502_s8] sm:$0xff] %v2948_v15 }
 0x895   :  { %v3567_v19 = vpop.eup %3566 }
 0x896   :  { %v2950_v18 = vmul.f32 %v3567_v19, %v3565_v17 }
 0x898   :  { %v2951_v20 = vpack.c.bf16 %v2950_v18, %v2950_v18 }
 0x89a   :  { %2953 = vst [vmem:[#allocation3] sm:$0xf] %v2951_v20  ;;  %2954 = vst [vmem:[%s4501_s6 + $0x1c] sm:$0xf] %v2951_v20 }
 0x8a1   :  { %v2958_v1 = vld [vmem:[#allocation3] sm:$0xf] }
 0x8a2   :  { %v2959_v21 = vunpack.c.l.bf16 %v2958_v1 }
 0x8a4   :  { %2960 = vst [vmem:[%s4503_s7] sm:$0xff] %v2959_v21 }

</bundles_post_ra>
